<compile_context>
chip_gen: v6e
topology: v6e:2x2x1
jax: 0.10.0
libtpu: 0.0.40
codegen_flags: <defaults>
</compile_context>

<pallas_src>
import functools

import jax
import jax.numpy as jnp
from jax import lax
from jax.experimental import pallas as pl
from jax.experimental.pallas import tpu as pltpu


def _round_up(x, m):
    return (x + m - 1) // m * m


def _resblock_kernel(x_ref, w1_ref, s1_ref, b1_ref, w2_ref, s2_ref, b2_ref,
                     out_ref, *, H, W, Wp):
    # x_ref   : (1, H, W, Cin)     bf16 NHWC input block
    # w*_ref  : (3, 3*C, Cout)     bf16 folded weights, w[kw, kh*C + ci, co]
    # s*/b*   : (1, Cout)          f32 folded BatchNorm scale / bias
    # out_ref : (1, H, W, Cout)
    Cin = x_ref.shape[3]
    Cout = out_ref.shape[3]
    cdt = x_ref.dtype
    n_rows = H * Wp

    def conv3x3(src_pad, w_ref):
        # src_pad: ((H+2)*Wp, C) value.  Image row h, col w sits at flattened
        # row (h+1)*Wp + w; cols W..Wp-1 and the border rows are zero.
        # The 3 kh taps are folded into the contraction: lhs row r holds the
        # padded rows r, r+Wp, r+2*Wp side by side (K = 3*C, all 16-aligned
        # row offsets), so each kw is ONE matmul.  The kw column offset is
        # applied afterwards with a single XLU roll of the f32 partial sum
        # (centre tap needs none), so the MXU never sees an unaligned tile.
        lhs = jnp.concatenate(
            [src_pad[kh * Wp:kh * Wp + n_rows, :] for kh in range(3)],
            axis=-1)
        p0 = jnp.dot(lhs, w_ref[0], preferred_element_type=jnp.float32)
        p1 = jnp.dot(lhs, w_ref[1], preferred_element_type=jnp.float32)
        p2 = jnp.dot(lhs, w_ref[2], preferred_element_type=jnp.float32)
        total = p1                                               # col w
        total = total + pltpu.roll(p0, shift=1, axis=0)          # col w-1
        total = total + pltpu.roll(p2, shift=n_rows - 1, axis=0) # col w+1
        return total          # (n_rows, Cout) f32; cols >= W are garbage

    # ---- build the zero-padded input slab in VMEM (no padded HBM copy) ----
    zrow_in = jnp.zeros((Wp, Cin), cdt)
    x_rows = jnp.concatenate(
        [x_ref[0], jnp.zeros((H, Wp - W, Cin), cdt)], axis=1
    ).reshape(n_rows, Cin)                 # data rows, pad cols W..Wp-1 zero
    xpad = jnp.concatenate([zrow_in, x_rows, zrow_in], axis=0)

    # "column inside the image" mask (iota, no integer modulo)
    col = lax.broadcasted_iota(jnp.int32, (H, Wp, 1), 1).reshape(n_rows, 1)
    in_img = col < W

    # ---- conv1 -> bn1 -> relu ---------------------------------------------
    a1 = conv3x3(xpad, w1_ref)
    h1 = jnp.maximum(a1 * s1_ref[...] + b1_ref[...], 0.0)
    h1 = jnp.where(in_img, h1, 0.0)        # zero pad cols (conv2's halo)

    zrow_h = jnp.zeros((Wp, Cout), cdt)
    h1pad = jnp.concatenate([zrow_h, h1.astype(cdt), zrow_h], axis=0)

    # ---- conv2 -> bn2 -> +identity -> relu ---------------------------------
    a2 = conv3x3(h1pad, w2_ref)
    ident = x_rows.astype(jnp.float32)     # same frame as a2 -> no roll
    out = jnp.maximum(a2 * s2_ref[...] + b2_ref[...] + ident, 0.0)
    out_ref[0] = out.reshape(H, Wp, Cout)[:, :W, :].astype(out_ref.dtype)


def residual_block(x_nchw, w1, g1, be1, rm1, rv1, w2, g2, be2, rm2, rv2,
                   eps=1e-5, compute_dtype=jnp.bfloat16, out_dtype=None):
    """ResidualBlock forward (stride=1, downsample=None).  x_nchw: (N,C,H,W)."""
    N, Cin, H, W = x_nchw.shape
    Cout = w1.shape[0]
    assert Cin == Cout, "downsample=None path requires in_channels == out_channels"
    assert w1.shape == (Cout, Cin, 3, 3) and w2.shape == (Cout, Cout, 3, 3)
    out_dtype = out_dtype or x_nchw.dtype

    # Padded width: one zero column past the image (kw=2 tap) and the cyclic
    # row-wrap of the kw=0 tap must land on a zero column -> Wp >= W+1,
    # rounded up to the bf16 sublane tile (16) so every kh*Wp row offset and
    # every (H, Wp) <-> (H*Wp,) reshape stays tile aligned.
    # NOTE: (Wp-W)/Wp of each matmul row / roll is padding waste: 50% at
    # W=16, 12.5% at ResNet widths 56/28, ~6% at 112.
    Wp = _round_up(W + 1, 16)

    # NCHW -> NHWC + bf16 cast only (one fused XLA pass); padding is done
    # inside the kernel, so no enlarged padded HBM copy of the activation.
    x = jnp.transpose(x_nchw, (0, 2, 3, 1)).astype(compute_dtype)

    # torch OIHW -> (kw, kh*Cin + ci, co), matching the in-kernel kh fold.
    w1_fold = jnp.transpose(w1, (3, 2, 1, 0)).reshape(3, 3 * Cin, Cout)
    w2_fold = jnp.transpose(w2, (3, 2, 1, 0)).reshape(3, 3 * Cout, Cout)
    w1_fold = w1_fold.astype(compute_dtype)
    w2_fold = w2_fold.astype(compute_dtype)

    # Fold eval-mode BatchNorm into per-channel scale / bias (kept in f32).
    inv1 = (g1 / jnp.sqrt(rv1 + eps)).astype(jnp.float32)
    inv2 = (g2 / jnp.sqrt(rv2 + eps)).astype(jnp.float32)
    s1 = inv1.reshape(1, Cout)
    b1 = (be1.astype(jnp.float32) - rm1 * inv1).reshape(1, Cout)
    s2 = inv2.reshape(1, Cout)
    b2 = (be2.astype(jnp.float32) - rm2 * inv2).reshape(1, Cout)

    # VMEM budget sized from the actual working set (v5e/v6e: 128 MiB
    # physical).  On v7x large H*W*C shapes need the H-strip grid (TODO)
    # rather than a bigger limit.
    cb = jnp.dtype(compute_dtype).itemsize
    ob = jnp.dtype(out_dtype).itemsize
    n_rows = H * Wp
    est = (2 * H * W * Cin * cb + 2 * H * W * Cout * ob   # I/O blocks (x2 buf)
           + 4 * 9 * Cin * Cout * cb                      # both conv weights (x2 buf)
           + (H + 2) * Wp * (Cin + Cout) * cb             # padded x / h1 slabs
           + 3 * n_rows * (Cin + Cout) * cb               # folded-kh lhs values
           + 6 * n_rows * Cout * 4)                       # live f32 partials/totals
    vmem_limit = int(min(96 * 2 ** 20, max(32 * 2 ** 20, 2 * est)))

    kernel = functools.partial(_resblock_kernel, H=H, W=W, Wp=Wp)

    out_nhwc = pl.pallas_call(
        kernel,
        out_shape=jax.ShapeDtypeStruct((N, H, W, Cout), out_dtype),
        grid_spec=pltpu.PrefetchScalarGridSpec(
            num_scalar_prefetch=0,
            grid=(N,),
            in_specs=[
                pl.BlockSpec((1, H, W, Cin), lambda n: (n, 0, 0, 0)),
                pl.BlockSpec((3, 3 * Cin, Cout), lambda n: (0, 0, 0)),
                pl.BlockSpec((1, Cout), lambda n: (0, 0)),
                pl.BlockSpec((1, Cout), lambda n: (0, 0)),
                pl.BlockSpec((3, 3 * Cout, Cout), lambda n: (0, 0, 0)),
                pl.BlockSpec((1, Cout), lambda n: (0, 0)),
                pl.BlockSpec((1, Cout), lambda n: (0, 0)),
            ],
            out_specs=pl.BlockSpec((1, H, W, Cout), lambda n: (n, 0, 0, 0)),
        ),
        compiler_params=pltpu.CompilerParams(
            dimension_semantics=("parallel",),
            vmem_limit_bytes=vmem_limit),
    )(x, w1_fold, s1, b1, w2_fold, s2, b2)

    # NHWC -> NCHW to match the PyTorch module's I/O layout.
    # TODO(synk): keep NHWC (skip this transpose) when chaining blocks.
    return jnp.transpose(out_nhwc, (0, 3, 1, 2))


def _reference(x, w1, g1, be1, rm1, rv1, w2, g2, be2, rm2, rv2,
               eps=1e-5, compute_dtype=jnp.bfloat16):
    # Mirrors the kernel's mixed precision: bf16 conv inputs/weights, f32
    # accumulation, f32 BatchNorm / ReLU / residual add.
    dn = ('NCHW', 'OIHW', 'NCHW')
    inv1 = (g1 / jnp.sqrt(rv1 + eps)).reshape(1, -1, 1, 1)
    bia1 = (be1 - rm1 * g1 / jnp.sqrt(rv1 + eps)).reshape(1, -1, 1, 1)
    inv2 = (g2 / jnp.sqrt(rv2 + eps)).reshape(1, -1, 1, 1)
    bia2 = (be2 - rm2 * g2 / jnp.sqrt(rv2 + eps)).reshape(1, -1, 1, 1)
    xc = x.astype(compute_dtype)
    y = lax.conv_general_dilated(xc, w1.astype(compute_dtype), (1, 1),
                                 ((1, 1), (1, 1)), dimension_numbers=dn,
                                 preferred_element_type=jnp.float32)
    y = jnp.maximum(y * inv1 + bia1, 0.0)
    y = lax.conv_general_dilated(y.astype(compute_dtype),
                                 w2.astype(compute_dtype), (1, 1),
                                 ((1, 1), (1, 1)), dimension_numbers=dn,
                                 preferred_element_type=jnp.float32)
    y = y * inv2 + bia2 + xc.astype(jnp.float32)
    return jnp.maximum(y, 0.0)


if __name__ == "__main__":
    N, C, H, W = 2, 4, 16, 16
    key = jax.random.PRNGKey(0)
    k = jax.random.split(key, 7)

    x = jax.random.normal(k[0], (N, C, H, W), jnp.float32)
    # conv weights (OIHW, no bias)
    w1 = 0.1 * jax.random.normal(k[1], (C, C, 3, 3), jnp.float32)
    w2 = 0.1 * jax.random.normal(k[2], (C, C, 3, 3), jnp.float32)
    # BatchNorm params: gamma/beta randomized, running stats at init values
    g1 = 1.0 + 0.1 * jax.random.normal(k[3], (C,), jnp.float32)
    be1 = 0.1 * jax.random.normal(k[4], (C,), jnp.float32)
    g2 = 1.0 + 0.1 * jax.random.normal(k[5], (C,), jnp.float32)
    be2 = 0.1 * jax.random.normal(k[6], (C,), jnp.float32)
    rm1 = jnp.zeros((C,), jnp.float32)
    rv1 = jnp.ones((C,), jnp.float32)
    rm2 = jnp.zeros((C,), jnp.float32)
    rv2 = jnp.ones((C,), jnp.float32)

    out = residual_block(x, w1, g1, be1, rm1, rv1, w2, g2, be2, rm2, rv2)
    out = jax.block_until_ready(out)

    ref = _reference(x, w1, g1, be1, rm1, rv1, w2, g2, be2, rm2, rv2)
    err = float(jnp.max(jnp.abs(out - ref)))
    if err > 1e-2:
        raise AssertionError(f"mismatch vs reference: max abs err = {err}")
    print("KERNEL_OK")
</pallas_src>

<mosaic_0001>
module attributes {stable_mosaic.version = 11 : i64} {
  func.func @_resblock_kernel(%arg0: i32, %arg1: memref<1x16x16x4xbf16, #tpu.memory_space<vmem>>, %arg2: memref<3x12x4xbf16, #tpu.memory_space<vmem>>, %arg3: memref<1x4xf32, #tpu.memory_space<vmem>>, %arg4: memref<1x4xf32, #tpu.memory_space<vmem>>, %arg5: memref<3x12x4xbf16, #tpu.memory_space<vmem>>, %arg6: memref<1x4xf32, #tpu.memory_space<vmem>>, %arg7: memref<1x4xf32, #tpu.memory_space<vmem>>, %arg8: memref<1x16x16x4xf32, #tpu.memory_space<vmem>>) attributes {dimension_semantics = [#tpu.dimension_semantics<parallel>], iteration_bounds = array<i64: 2>, scalar_prefetch = 0 : i64, scratch_operands = 0 : i64, tpu.core_type = #tpu.core_type<tc>, window_params = [{transform_indices = @transform_0, window_bounds = array<i64: 1, 16, 16, 4>}, {pipeline_mode = #tpu.pipeline_mode<synchronous>, transform_indices = @transform_1, window_bounds = array<i64: 3, 12, 4>}, {pipeline_mode = #tpu.pipeline_mode<synchronous>, transform_indices = @transform_2, window_bounds = array<i64: 1, 4>}, {pipeline_mode = #tpu.pipeline_mode<synchronous>, transform_indices = @transform_3, window_bounds = array<i64: 1, 4>}, {pipeline_mode = #tpu.pipeline_mode<synchronous>, transform_indices = @transform_4, window_bounds = array<i64: 3, 12, 4>}, {pipeline_mode = #tpu.pipeline_mode<synchronous>, transform_indices = @transform_5, window_bounds = array<i64: 1, 4>}, {pipeline_mode = #tpu.pipeline_mode<synchronous>, transform_indices = @transform_6, window_bounds = array<i64: 1, 4>}, {transform_indices = @transform_7, window_bounds = array<i64: 1, 16, 16, 4>}]} {
    %cst = arith.constant 0.000000e+00 : bf16
    %0 = vector.broadcast %cst : bf16 to vector<32x4xbf16>
    %c0 = arith.constant 0 : index
    %c0_0 = arith.constant 0 : index
    %c0_1 = arith.constant 0 : index
    %c0_2 = arith.constant 0 : index
    %1 = vector.load %arg1[%c0, %c0_0, %c0_1, %c0_2] : memref<1x16x16x4xbf16, #tpu.memory_space<vmem>>, vector<1x16x16x4xbf16>
    %2 = vector.shape_cast %1 : vector<1x16x16x4xbf16> to vector<16x16x4xbf16>
    %cst_3 = arith.constant 0.000000e+00 : bf16
    %3 = vector.broadcast %cst_3 : bf16 to vector<16x16x4xbf16>
    %4 = tpu.concatenate %2, %3 in 1 : vector<16x16x4xbf16>, vector<16x16x4xbf16> -> vector<16x32x4xbf16>
    %5 = vector.shape_cast %4 : vector<16x32x4xbf16> to vector<512x4xbf16>
    %6 = tpu.concatenate %0, %5, %0 in 0 : vector<32x4xbf16>, vector<512x4xbf16>, vector<32x4xbf16> -> vector<576x4xbf16>
    %7 = tpu.iota {dimensions = array<i32: 1>} : vector<16x32x1xi32>
    %8 = vector.shape_cast %7 : vector<16x32x1xi32> to vector<512x1xi32>
    %c16_i32 = arith.constant 16 : i32
    %9 = vector.broadcast %c16_i32 : i32 to vector<512x1xi32>
    %10 = arith.cmpi slt, %8, %9 : vector<512x1xi32>
    %11 = vector.extract_strided_slice %6 {offsets = [0, 0], sizes = [512, 4], strides = [1, 1]} : vector<576x4xbf16> to vector<512x4xbf16>
    %12 = vector.extract_strided_slice %6 {offsets = [32, 0], sizes = [512, 4], strides = [1, 1]} : vector<576x4xbf16> to vector<512x4xbf16>
    %13 = vector.extract_strided_slice %6 {offsets = [64, 0], sizes = [512, 4], strides = [1, 1]} : vector<576x4xbf16> to vector<512x4xbf16>
    %14 = tpu.concatenate %11, %12, %13 in 1 : vector<512x4xbf16>, vector<512x4xbf16>, vector<512x4xbf16> -> vector<512x12xbf16>
    %c0_4 = arith.constant 0 : index
    %c0_5 = arith.constant 0 : index
    %c0_6 = arith.constant 0 : index
    %15 = vector.load %arg2[%c0_4, %c0_5, %c0_6] : memref<3x12x4xbf16, #tpu.memory_space<vmem>>, vector<1x12x4xbf16>
    %16 = vector.shape_cast %15 : vector<1x12x4xbf16> to vector<12x4xbf16>
    %cst_7 = arith.constant dense<0.000000e+00> : vector<512x4xf32>
    %17 = tpu.matmul %14, %16, %cst_7 {dimension_numbers = #tpu.dot_dimension_numbers<[1], [0], [0], [1], [0, 0, 1, 1], [], []>} : vector<512x12xbf16>, vector<12x4xbf16>, vector<512x4xf32> -> vector<512x4xf32>
    %c1 = arith.constant 1 : index
    %c0_8 = arith.constant 0 : index
    %c0_9 = arith.constant 0 : index
    %18 = vector.load %arg2[%c1, %c0_8, %c0_9] : memref<3x12x4xbf16, #tpu.memory_space<vmem>>, vector<1x12x4xbf16>
    %19 = vector.shape_cast %18 : vector<1x12x4xbf16> to vector<12x4xbf16>
    %cst_10 = arith.constant dense<0.000000e+00> : vector<512x4xf32>
    %20 = tpu.matmul %14, %19, %cst_10 {dimension_numbers = #tpu.dot_dimension_numbers<[1], [0], [0], [1], [0, 0, 1, 1], [], []>} : vector<512x12xbf16>, vector<12x4xbf16>, vector<512x4xf32> -> vector<512x4xf32>
    %c2 = arith.constant 2 : index
    %c0_11 = arith.constant 0 : index
    %c0_12 = arith.constant 0 : index
    %21 = vector.load %arg2[%c2, %c0_11, %c0_12] : memref<3x12x4xbf16, #tpu.memory_space<vmem>>, vector<1x12x4xbf16>
    %22 = vector.shape_cast %21 : vector<1x12x4xbf16> to vector<12x4xbf16>
    %cst_13 = arith.constant dense<0.000000e+00> : vector<512x4xf32>
    %23 = tpu.matmul %14, %22, %cst_13 {dimension_numbers = #tpu.dot_dimension_numbers<[1], [0], [0], [1], [0, 0, 1, 1], [], []>} : vector<512x12xbf16>, vector<12x4xbf16>, vector<512x4xf32> -> vector<512x4xf32>
    %c1_i32 = arith.constant 1 : i32
    %24 = tpu.dynamic_rotate %17 by %c1_i32 dim 0 : vector<512x4xf32>, i32 -> vector<512x4xf32>
    %25 = arith.addf %20, %24 : vector<512x4xf32>
    %c511_i32 = arith.constant 511 : i32
    %26 = tpu.dynamic_rotate %23 by %c511_i32 dim 0 : vector<512x4xf32>, i32 -> vector<512x4xf32>
    %27 = arith.addf %25, %26 : vector<512x4xf32>
    %c0_14 = arith.constant 0 : index
    %c0_15 = arith.constant 0 : index
    %28 = vector.load %arg3[%c0_14, %c0_15] : memref<1x4xf32, #tpu.memory_space<vmem>>, vector<1x4xf32>
    %29 = vector.broadcast %28 : vector<1x4xf32> to vector<512x4xf32>
    %30 = arith.mulf %27, %29 : vector<512x4xf32>
    %c0_16 = arith.constant 0 : index
    %c0_17 = arith.constant 0 : index
    %31 = vector.load %arg4[%c0_16, %c0_17] : memref<1x4xf32, #tpu.memory_space<vmem>>, vector<1x4xf32>
    %32 = vector.broadcast %31 : vector<1x4xf32> to vector<512x4xf32>
    %33 = arith.addf %30, %32 : vector<512x4xf32>
    %cst_18 = arith.constant 0.000000e+00 : f32
    %34 = vector.broadcast %cst_18 : f32 to vector<512x4xf32>
    %35 = arith.maximumf %33, %34 : vector<512x4xf32>
    %cst_19 = arith.constant 0.000000e+00 : f32
    %36 = vector.shape_cast %10 : vector<512x1xi1> to vector<512x1xi1>
    %37 = vector.broadcast %36 : vector<512x1xi1> to vector<512x4xi1>
    %38 = vector.broadcast %cst_19 : f32 to vector<512x4xf32>
    %39 = arith.select %37, %35, %38 : vector<512x4xi1>, vector<512x4xf32>
    %cst_20 = arith.constant 0.000000e+00 : bf16
    %40 = vector.broadcast %cst_20 : bf16 to vector<32x4xbf16>
    %41 = arith.truncf %39 : vector<512x4xf32> to vector<512x4xbf16>
    %42 = tpu.concatenate %40, %41, %40 in 0 : vector<32x4xbf16>, vector<512x4xbf16>, vector<32x4xbf16> -> vector<576x4xbf16>
    %43 = vector.extract_strided_slice %42 {offsets = [0, 0], sizes = [512, 4], strides = [1, 1]} : vector<576x4xbf16> to vector<512x4xbf16>
    %44 = vector.extract_strided_slice %42 {offsets = [32, 0], sizes = [512, 4], strides = [1, 1]} : vector<576x4xbf16> to vector<512x4xbf16>
    %45 = vector.extract_strided_slice %42 {offsets = [64, 0], sizes = [512, 4], strides = [1, 1]} : vector<576x4xbf16> to vector<512x4xbf16>
    %46 = tpu.concatenate %43, %44, %45 in 1 : vector<512x4xbf16>, vector<512x4xbf16>, vector<512x4xbf16> -> vector<512x12xbf16>
    %c0_21 = arith.constant 0 : index
    %c0_22 = arith.constant 0 : index
    %c0_23 = arith.constant 0 : index
    %47 = vector.load %arg5[%c0_21, %c0_22, %c0_23] : memref<3x12x4xbf16, #tpu.memory_space<vmem>>, vector<1x12x4xbf16>
    %48 = vector.shape_cast %47 : vector<1x12x4xbf16> to vector<12x4xbf16>
    %cst_24 = arith.constant dense<0.000000e+00> : vector<512x4xf32>
    %49 = tpu.matmul %46, %48, %cst_24 {dimension_numbers = #tpu.dot_dimension_numbers<[1], [0], [0], [1], [0, 0, 1, 1], [], []>} : vector<512x12xbf16>, vector<12x4xbf16>, vector<512x4xf32> -> vector<512x4xf32>
    %c1_25 = arith.constant 1 : index
    %c0_26 = arith.constant 0 : index
    %c0_27 = arith.constant 0 : index
    %50 = vector.load %arg5[%c1_25, %c0_26, %c0_27] : memref<3x12x4xbf16, #tpu.memory_space<vmem>>, vector<1x12x4xbf16>
    %51 = vector.shape_cast %50 : vector<1x12x4xbf16> to vector<12x4xbf16>
    %cst_28 = arith.constant dense<0.000000e+00> : vector<512x4xf32>
    %52 = tpu.matmul %46, %51, %cst_28 {dimension_numbers = #tpu.dot_dimension_numbers<[1], [0], [0], [1], [0, 0, 1, 1], [], []>} : vector<512x12xbf16>, vector<12x4xbf16>, vector<512x4xf32> -> vector<512x4xf32>
    %c2_29 = arith.constant 2 : index
    %c0_30 = arith.constant 0 : index
    %c0_31 = arith.constant 0 : index
    %53 = vector.load %arg5[%c2_29, %c0_30, %c0_31] : memref<3x12x4xbf16, #tpu.memory_space<vmem>>, vector<1x12x4xbf16>
    %54 = vector.shape_cast %53 : vector<1x12x4xbf16> to vector<12x4xbf16>
    %cst_32 = arith.constant dense<0.000000e+00> : vector<512x4xf32>
    %55 = tpu.matmul %46, %54, %cst_32 {dimension_numbers = #tpu.dot_dimension_numbers<[1], [0], [0], [1], [0, 0, 1, 1], [], []>} : vector<512x12xbf16>, vector<12x4xbf16>, vector<512x4xf32> -> vector<512x4xf32>
    %c1_i32_33 = arith.constant 1 : i32
    %56 = tpu.dynamic_rotate %49 by %c1_i32_33 dim 0 : vector<512x4xf32>, i32 -> vector<512x4xf32>
    %57 = arith.addf %52, %56 : vector<512x4xf32>
    %c511_i32_34 = arith.constant 511 : i32
    %58 = tpu.dynamic_rotate %55 by %c511_i32_34 dim 0 : vector<512x4xf32>, i32 -> vector<512x4xf32>
    %59 = arith.addf %57, %58 : vector<512x4xf32>
    %60 = arith.extf %5 : vector<512x4xbf16> to vector<512x4xf32>
    %c0_35 = arith.constant 0 : index
    %c0_36 = arith.constant 0 : index
    %61 = vector.load %arg6[%c0_35, %c0_36] : memref<1x4xf32, #tpu.memory_space<vmem>>, vector<1x4xf32>
    %62 = vector.broadcast %61 : vector<1x4xf32> to vector<512x4xf32>
    %63 = arith.mulf %59, %62 : vector<512x4xf32>
    %c0_37 = arith.constant 0 : index
    %c0_38 = arith.constant 0 : index
    %64 = vector.load %arg7[%c0_37, %c0_38] : memref<1x4xf32, #tpu.memory_space<vmem>>, vector<1x4xf32>
    %65 = vector.broadcast %64 : vector<1x4xf32> to vector<512x4xf32>
    %66 = arith.addf %63, %65 : vector<512x4xf32>
    %67 = arith.addf %66, %60 : vector<512x4xf32>
    %cst_39 = arith.constant 0.000000e+00 : f32
    %68 = vector.broadcast %cst_39 : f32 to vector<512x4xf32>
    %69 = arith.maximumf %67, %68 : vector<512x4xf32>
    %70 = vector.shape_cast %69 : vector<512x4xf32> to vector<16x32x4xf32>
    %71 = vector.extract_strided_slice %70 {offsets = [0, 0, 0], sizes = [16, 16, 4], strides = [1, 1, 1]} : vector<16x32x4xf32> to vector<16x16x4xf32>
    %c0_40 = arith.constant 0 : index
    %c0_41 = arith.constant 0 : index
    %c0_42 = arith.constant 0 : index
    %c0_43 = arith.constant 0 : index
    %72 = vector.load %arg8[%c0_40, %c0_41, %c0_42, %c0_43] : memref<1x16x16x4xf32, #tpu.memory_space<vmem>>, vector<1x16x16x4xf32>
    %73 = vector.shape_cast %72 : vector<1x16x16x4xf32> to vector<16x16x4xf32>
    %74 = vector.shape_cast %71 : vector<16x16x4xf32> to vector<1x16x16x4xf32>
    tpu.vector_store %arg8[%c0_40, %c0_41, %c0_42, %c0_43], %74 {strides = array<i32>} : memref<1x16x16x4xf32, #tpu.memory_space<vmem>>, vector<1x16x16x4xf32>,
    return
  }
  func.func @transform_0(%arg0: i32) -> (i32, i32, i32, i32) {
    %c0_i32 = arith.constant 0 : i32
    %c0_i32_0 = arith.constant 0 : i32
    %c0_i32_1 = arith.constant 0 : i32
    %c0_i32_2 = arith.constant 0 : i32
    return %arg0, %c0_i32, %c0_i32_0, %c0_i32_1 : i32, i32, i32, i32
  }
  func.func @transform_1(%arg0: i32) -> (i32, i32, i32) {
    %c0_i32 = arith.constant 0 : i32
    %c0_i32_0 = arith.constant 0 : i32
    %c0_i32_1 = arith.constant 0 : i32
    %c0_i32_2 = arith.constant 0 : i32
    return %c0_i32, %c0_i32_0, %c0_i32_1 : i32, i32, i32
  }
  func.func @transform_2(%arg0: i32) -> (i32, i32) {
    %c0_i32 = arith.constant 0 : i32
    %c0_i32_0 = arith.constant 0 : i32
    %c0_i32_1 = arith.constant 0 : i32
    return %c0_i32, %c0_i32_0 : i32, i32
  }
  func.func @transform_3(%arg0: i32) -> (i32, i32) {
    %c0_i32 = arith.constant 0 : i32
    %c0_i32_0 = arith.constant 0 : i32
    %c0_i32_1 = arith.constant 0 : i32
    return %c0_i32, %c0_i32_0 : i32, i32
  }
  func.func @transform_4(%arg0: i32) -> (i32, i32, i32) {
    %c0_i32 = arith.constant 0 : i32
    %c0_i32_0 = arith.constant 0 : i32
    %c0_i32_1 = arith.constant 0 : i32
    %c0_i32_2 = arith.constant 0 : i32
    return %c0_i32, %c0_i32_0, %c0_i32_1 : i32, i32, i32
  }
  func.func @transform_5(%arg0: i32) -> (i32, i32) {
    %c0_i32 = arith.constant 0 : i32
    %c0_i32_0 = arith.constant 0 : i32
    %c0_i32_1 = arith.constant 0 : i32
    return %c0_i32, %c0_i32_0 : i32, i32
  }
  func.func @transform_6(%arg0: i32) -> (i32, i32) {
    %c0_i32 = arith.constant 0 : i32
    %c0_i32_0 = arith.constant 0 : i32
    %c0_i32_1 = arith.constant 0 : i32
    return %c0_i32, %c0_i32_0 : i32, i32
  }
  func.func @transform_7(%arg0: i32) -> (i32, i32, i32, i32) {
    %c0_i32 = arith.constant 0 : i32
    %c0_i32_0 = arith.constant 0 : i32
    %c0_i32_1 = arith.constant 0 : i32
    %c0_i32_2 = arith.constant 0 : i32
    return %arg0, %c0_i32, %c0_i32_0, %c0_i32_1 : i32, i32, i32, i32
  }
}

</mosaic_0001>

<bundles_post_ra>
// kernel: tpu_custom_call.1
= control target key start
LH: loop header
LB: loop body
LE: loop exit
PB: predicated region body
PF: predicated region fallthrough
CT: control target
= control target key end

     0   :  { %s4741_s24 = smov 0   ;;  %s6722_s0 = inlined_call_operand.vmem [shape: bf16[2,16,16,4], index: 0, kind: input, shape index: {}]   ;;  %s6723_s1 = inlined_call_operand.vmem [shape: bf16[3,12,4], index: 1, kind: input, shape index: {}]   ;;  %s6724_s2 = inlined_call_operand.vmem [shape: f32[1,4], index: 2, kind: input, shape index: {}]   ;;  %s6725_s3 = inlined_call_operand.vmem [shape: f32[1,4], index: 3, kind: input, shape index: {}]   ;;  %s6726_s4 = inlined_call_operand.vmem [shape: bf16[3,12,4], index: 4, kind: input, shape index: {}]   ;;  %s6727_s5 = inlined_call_operand.vmem [shape: f32[1,4], index: 5, kind: input, shape index: {}]   ;;  %s6728_s6 = inlined_call_operand.vmem [shape: f32[1,4], index: 6, kind: input, shape index: {}]   ;;  %s6729_s7 = inlined_call_operand.vmem [shape: f32[2,16,16,4], index: 7, kind: output, shape index: {}]  }
   0x1 LB: > { %s3800_s25 = sadd.s32 4294967295, %s4695_s24   ;;  %p3804_p0 = scmp.ge.s32.totalorder %s4695_s24, 1  ;;  %s4695_s24 = sphi %s4741_s24, %s17_s24  }
   0x2   : > { %p237_p1 = scmp.lt.s32.totalorder %s4695_s24, 3 }
   0x4   : > { %p238_p2 = pnand %p3804_p0, %p237_p1 }
   0x6   : > { %241 = sbr.rel (%p238_p2) target bundleno = 1062 (0x426), region = 48 }
   0xb   : > { %p269_p3 = scmp.lt.s32.totalorder %s3800_s25, 1  ;;  %vm611_vm0 = vcmask 1045504   ;;  %v4667_v0 = vld [vmem:[%s6723_s1] sm:$0x3f]   ;;  %v4668_v1 = vld [vmem:[%s6723_s1 + $0x10] sm:$0x3f]  }
   0xc   : > { %4633 = vmatprep.subr.msk.bf16.mxu0 %vm611_vm0, %v4667_v0  ;;  %v613_v2 = vsel %vm611_vm0, %v4667_v0, 0  ;;  %v4763_v3 = vld [vmem:[%s6723_s1 + $0x8] sm:$0x3f]   ;;  %4634 = vmatprep.subr.msk.bf16.mxu1 %vm611_vm0, %v4668_v1  ;;  %v916_v4 = vsel %vm611_vm0, %v4668_v1, 0  ;;  %s4697_s13 = smov 4   ;;  %s4698_s14 = smov 8  }
   0xd   : > { %s6883_s25 = smov (!%p269_p3, %s3800_s25), 1  ;;  %4238 = vmatpush3.bf16.msra.mxu0 %v613_v2  ;;  %4304 = vmatpush3.bf16.msra.mxu1 %v916_v4  ;;  %v4699_v7 = vmov 0   ;;  %v4700_v22 = vmov 0.0|0.0   ;;  %vm484_vm1 = vcmask 31744   ;;  %vm535_vm2 = vcmask 64512  }
   0xe   : > { %s4037_s30 = sshll.u32 %s6883_s25, 7  ;;  %4635 = vmatprep.subr.msk.bf16.mxu0 %vm611_vm0, %v4763_v3  ;;  %vm576_vm3 = vcmask 97280   ;;  %v1342_v30 = vsel %vm611_vm0, %v4763_v3, 0  ;;  %s4038_s8 = sshll.u32 %s6883_s25, 8 }
   0xf   : > { %s4768_s12 = scalar_lea.vmem %s6722_s0, %s4037_s30  ;;  %s6514_s11 = scalar_lea.vmem %s6729_s7, %s4038_s8 }
  0x10   : > { %v4773_v5 = vld [vmem:[%s4768_s12] sm:$0xff]   ;;  %v4778_v6 = vld [vmem:[%s4768_s12 + $0x8] sm:$0xff]   ;;  %v4787_v8 = vld [vmem:[%s4768_s12 + $0x10] sm:$0xff]  }
  0x11   : > { %418 = vrot.lane.b32.xlu0 %v4773_v5, %s4697_s13  ;;  %452 = vrot.lane.b32.xlu1 %v4778_v6, %s4698_s14  ;;  %v4794_v9 = vld [vmem:[%s4768_s12 + $0x18] sm:$0xff]   ;;  %v4801_v10 = vld [vmem:[%s4768_s12 + $0x20] sm:$0xff]  }
  0x12   : > { %v4808_v11 = vld [vmem:[%s4768_s12 + $0x28] sm:$0xff]   ;;  %v4815_v12 = vld [vmem:[%s4768_s12 + $0x30] sm:$0xff]   ;;  %v4822_v13 = vld [vmem:[%s4768_s12 + $0x38] sm:$0xff]  }
  0x13   : > { %v4829_v14 = vld [vmem:[%s4768_s12 + $0x40] sm:$0xff]   ;;  %v4836_v15 = vld [vmem:[%s4768_s12 + $0x48] sm:$0xff]   ;;  %v4843_v16 = vld [vmem:[%s4768_s12 + $0x50] sm:$0xff]  }
  0x14   : > { %v4850_v17 = vld [vmem:[%s4768_s12 + $0x58] sm:$0xff]   ;;  %v4857_v18 = vld [vmem:[%s4768_s12 + $0x60] sm:$0xff]   ;;  %v4864_v19 = vld [vmem:[%s4768_s12 + $0x68] sm:$0xff]  }
  0x15   : > { %420 = vrot.lane.b32.xlu0 %v4699_v7, %s4697_s13  ;;  %454 = vrot.lane.b32.xlu1 %v4699_v7, %s4698_s14  ;;  %v4871_v20 = vld [vmem:[%s4768_s12 + $0x70] sm:$0xff]   ;;  %v4666_v21 = vld [vmem:[%s4768_s12 + $0x78] sm:$0xff]  }
  0x19   : > { %422 = vrot.lane.b32.xlu0 %v4778_v6, %s4697_s13  ;;  %456 = vrot.lane.b32.xlu1 %v4787_v8, %s4698_s14 }
  0x1d   : > { %424 = vrot.lane.b32.xlu0 %v4787_v8, %s4697_s13  ;;  %458 = vrot.lane.b32.xlu1 %v4794_v9, %s4698_s14 }
  0x21   : > { %426 = vrot.lane.b32.xlu0 %v4794_v9, %s4697_s13  ;;  %460 = vrot.lane.b32.xlu1 %v4801_v10, %s4698_s14 }
  0x25   : > { %428 = vrot.lane.b32.xlu0 %v4801_v10, %s4697_s13  ;;  %462 = vrot.lane.b32.xlu1 %v4808_v11, %s4698_s14 }
  0x29   : > { %430 = vrot.lane.b32.xlu0 %v4808_v11, %s4697_s13  ;;  %464 = vrot.lane.b32.xlu1 %v4815_v12, %s4698_s14 }
  0x2d   : > { %432 = vrot.lane.b32.xlu0 %v4815_v12, %s4697_s13  ;;  %466 = vrot.lane.b32.xlu1 %v4822_v13, %s4698_s14 }
  0x31   : > { %434 = vrot.lane.b32.xlu0 %v4822_v13, %s4697_s13  ;;  %468 = vrot.lane.b32.xlu1 %v4829_v14, %s4698_s14 }
  0x35   : > { %436 = vrot.lane.b32.xlu0 %v4829_v14, %s4697_s13  ;;  %470 = vrot.lane.b32.xlu1 %v4836_v15, %s4698_s14 }
  0x39   : > { %438 = vrot.lane.b32.xlu0 %v4836_v15, %s4697_s13  ;;  %472 = vrot.lane.b32.xlu1 %v4843_v16, %s4698_s14 }
  0x3d   : > { %440 = vrot.lane.b32.xlu0 %v4843_v16, %s4697_s13  ;;  %474 = vrot.lane.b32.xlu1 %v4850_v17, %s4698_s14 }
  0x41   : > { %442 = vrot.lane.b32.xlu0 %v4850_v17, %s4697_s13  ;;  %476 = vrot.lane.b32.xlu1 %v4857_v18, %s4698_s14 }
  0x45   : > { %444 = vrot.lane.b32.xlu0 %v4857_v18, %s4697_s13  ;;  %478 = vrot.lane.b32.xlu1 %v4864_v19, %s4698_s14 }
  0x49   : > { %446 = vrot.lane.b32.xlu0 %v4864_v19, %s4697_s13  ;;  %480 = vrot.lane.b32.xlu1 %v4871_v20, %s4698_s14 }
  0x4d   : > { %448 = vrot.lane.b32.xlu0 %v4871_v20, %s4697_s13  ;;  %482 = vrot.lane.b32.xlu1 %v4666_v21, %s4698_s14 }
  0x51   : > { %450 = vrot.lane.b32.xlu0 %v4666_v21, %s4697_s13 }
  0x55   : > { %2170 = vrot.lane.b32.xlu0 %v4700_v22, %s4697_s13 }
  0x59   : > { %2234 = vrot.lane.b32.xlu0 %v4700_v22, %s4698_s14 }
  0x5d   : > { %2174 = vrot.lane.b32.xlu0 %v4700_v22, %s4697_s13 }
  0x61   : > { %2238 = vrot.lane.b32.xlu0 %v4700_v22, %s4698_s14 }
  0x65   : > { %2178 = vrot.lane.b32.xlu0 %v4700_v22, %s4697_s13 }
  0x69   : > { %2242 = vrot.lane.b32.xlu0 %v4700_v22, %s4698_s14 }
  0x6d   : > { %2182 = vrot.lane.b32.xlu0 %v4700_v22, %s4697_s13 }
  0x71   : > { %2246 = vrot.lane.b32.xlu0 %v4700_v22, %s4698_s14 }
  0x75   : > { %2186 = vrot.lane.b32.xlu0 %v4700_v22, %s4697_s13 }
  0x79   : > { %2250 = vrot.lane.b32.xlu0 %v4700_v22, %s4698_s14 }
  0x7d   : > { %2190 = vrot.lane.b32.xlu0 %v4700_v22, %s4697_s13 }
  0x81   : > { %2254 = vrot.lane.b32.xlu0 %v4700_v22, %s4698_s14 }
  0x83   : > { %v419_v23 = vpop.permute.xlu0 %418  ;;  %v453_v25 = vpop.permute.xlu1 %452 }
  0x84   : > { %v487_v24 = vsel %vm484_vm1, 0, %v419_v23 }
  0x85   : > { %2194 = vrot.lane.b32.xlu0 %v4700_v22, %s4697_s13  ;;  %v4910_v26 = vsel %vm535_vm2, %v487_v24, %v453_v25 }
  0x86   : > { %4239 = vmatprep.mubr.msk.bf16.mxu0 %vm576_vm3, %v4910_v26  ;;  %4305 = vmatprep.mubr.msk.bf16.mxu1 %vm576_vm3, %v4910_v26 }
  0x87   : > { %v421_v27 = vpop.permute.xlu0 %420  ;;  %v4917_v29 = vpop.permute.xlu1 %454 }
  0x88   : > { %v489_v28 = vsel %vm484_vm1, 0, %v421_v27  ;;  %6756 = vst [vmem:[#allocation2_spill] sm:$0xff] %v4917_v29 }
  0x89   : > { %v4923_v31 = vsel %vm535_vm2, %v489_v28, %v4917_v29  ;;  %2258 = vrot.lane.b32.xlu0 %v4700_v22, %s4698_s14 }
  0x8a   : > { %4240 = vmatmul.mubr.msk.bf16.vlgmr.msra.gmra.mxu0 %vm576_vm3, %v4923_v31  ;;  %4306 = vmatmul.mubr.msk.bf16.vlgmr.msra.gmra.mxu1 %vm576_vm3, %v4923_v31 }
  0x8b   : > { %4370 = vmatpush3.bf16.msra.mxu0 %v1342_v30  ;;  %v423_v32 = vpop.permute.xlu0 %422  ;;  %v457_v34 = vpop.permute.xlu1 %456 }
  0x8c   : > { %v492_v33 = vsel %vm484_vm1, %v4773_v5, %v423_v32 }
  0x8d   : > { %2198 = vrot.lane.b32.xlu0 %v4700_v22, %s4697_s13  ;;  %v4936_v35 = vsel %vm535_vm2, %v492_v33, %v457_v34 }
  0x8e   : > { %4243 = vmatprep.mubr.msk.bf16.mxu0 %vm576_vm3, %v4936_v35  ;;  %4309 = vmatprep.mubr.msk.bf16.mxu1 %vm576_vm3, %v4936_v35 }
  0x8f   : > { %v425_v36 = vpop.permute.xlu0 %424  ;;  %v459_v38 = vpop.permute.xlu1 %458 }
  0x90   : > { %v495_v37 = vsel %vm484_vm1, %v4778_v6, %v425_v36 }
  0x91   : > { %2262 = vrot.lane.b32.xlu0 %v4700_v22, %s4698_s14  ;;  %v4947_v39 = vsel %vm535_vm2, %v495_v37, %v459_v38 }
  0x92   : > { %4244 = vmatmul.mubr.msk.bf16.gmra.mxu0 %vm576_vm3, %v4923_v31  ;;  %4310 = vmatmul.mubr.msk.bf16.gmra.mxu1 %vm576_vm3, %v4923_v31 }
  0x93   : > { %4247 = vmatprep.mubr.msk.bf16.mxu0 %vm576_vm3, %v4947_v39  ;;  %4313 = vmatprep.mubr.msk.bf16.mxu1 %vm576_vm3, %v4947_v39  ;;  %v427_v40 = vpop.permute.xlu0 %426  ;;  %v461_v42 = vpop.permute.xlu1 %460 }
  0x94   : > { %v498_v41 = vsel %vm484_vm1, %v4787_v8, %v427_v40 }
  0x95   : > { %2202 = vrot.lane.b32.xlu0 %v4700_v22, %s4697_s13  ;;  %v4962_v43 = vsel %vm535_vm2, %v498_v41, %v461_v42 }
  0x97   : > { %v429_v44 = vpop.permute.xlu0 %428  ;;  %v463_v46 = vpop.permute.xlu1 %462 }
  0x98   : > { %v501_v45 = vsel %vm484_vm1, %v4794_v9, %v429_v44 }
  0x99   : > { %2266 = vrot.lane.b32.xlu0 %v4700_v22, %s4698_s14  ;;  %v4979_v47 = vsel %vm535_vm2, %v501_v45, %v463_v46 }
  0x9a   : > { %4248 = vmatmul.mubr.msk.bf16.gmra.mxu0 %vm576_vm3, %v4923_v31  ;;  %4314 = vmatmul.mubr.msk.bf16.gmra.mxu1 %vm576_vm3, %v4923_v31 }
  0x9b   : > { %4251 = vmatprep.mubr.msk.bf16.mxu0 %vm576_vm3, %v4962_v43  ;;  %4317 = vmatprep.mubr.msk.bf16.mxu1 %vm576_vm3, %v4962_v43  ;;  %v431_v48 = vpop.permute.xlu0 %430  ;;  %v465_v50 = vpop.permute.xlu1 %464 }
  0x9c   : > { %v504_v49 = vsel %vm484_vm1, %v4801_v10, %v431_v48 }
  0x9d   : > { %2206 = vrot.lane.b32.xlu0 %v4700_v22, %s4697_s13  ;;  %v4996_v51 = vsel %vm535_vm2, %v504_v49, %v465_v50 }
  0x9f   : > { %v433_v52 = vpop.permute.xlu0 %432  ;;  %v467_v54 = vpop.permute.xlu1 %466 }
  0xa0   : > { %v507_v53 = vsel %vm484_vm1, %v4808_v11, %v433_v52 }
  0xa1   : > { %2270 = vrot.lane.b32.xlu0 %v4700_v22, %s4698_s14  ;;  %v5013_v55 = vsel %vm535_vm2, %v507_v53, %v467_v54 }
  0xa2   : > { %4252 = vmatmul.mubr.msk.bf16.gmra.mxu0 %vm576_vm3, %v4923_v31  ;;  %4318 = vmatmul.mubr.msk.bf16.gmra.mxu1 %vm576_vm3, %v4923_v31 }
  0xa3   : > { %4255 = vmatprep.mubr.msk.bf16.mxu0 %vm576_vm3, %v4979_v47  ;;  %4321 = vmatprep.mubr.msk.bf16.mxu1 %vm576_vm3, %v4979_v47  ;;  %v435_v56 = vpop.permute.xlu0 %434  ;;  %v469_v58 = vpop.permute.xlu1 %468 }
  0xa4   : > { %v510_v57 = vsel %vm484_vm1, %v4815_v12, %v435_v56 }
  0xa5   : > { %2210 = vrot.lane.b32.xlu0 %v4700_v22, %s4697_s13  ;;  %v5030_v59 = vsel %vm535_vm2, %v510_v57, %v469_v58 }
  0xa7   : > { %v437_v60 = vpop.permute.xlu0 %436  ;;  %v471_v62 = vpop.permute.xlu1 %470 }
  0xa8   : > { %v513_v61 = vsel %vm484_vm1, %v4822_v13, %v437_v60 }
  0xa9   : > { %2274 = vrot.lane.b32.xlu0 %v4700_v22, %s4698_s14  ;;  %v5047_v63 = vsel %vm535_vm2, %v513_v61, %v471_v62  ;;  %v4670_v61 = vld [vmem:[%s6726_s4] sm:$0x3f]  }
  0xaa   : > { %4256 = vmatmul.mubr.msk.bf16.gmra.mxu0 %vm576_vm3, %v4923_v31  ;;  %4322 = vmatmul.mubr.msk.bf16.gmra.mxu1 %vm576_vm3, %v4923_v31 }
  0xab   : > { %4259 = vmatprep.mubr.msk.bf16.mxu0 %vm576_vm3, %v4996_v51  ;;  %4325 = vmatprep.mubr.msk.bf16.mxu1 %vm576_vm3, %v4996_v51  ;;  %v439_v0 = vpop.permute.xlu0 %438  ;;  %v473_v2 = vpop.permute.xlu1 %472 }
  0xac   : > { %v516_v1 = vsel %vm484_vm1, %v4829_v14, %v439_v0  ;;  %4636 = vmatprep.subr.msk.bf16.mxu1 %vm611_vm0, %v4670_v61  ;;  %v2520_v0 = vsel %vm611_vm0, %v4670_v61, 0 }
  0xad   : > { %2214 = vrot.lane.b32.xlu0 %v4700_v22, %s4697_s13  ;;  %v5064_v3 = vsel %vm535_vm2, %v516_v1, %v473_v2  ;;  %4436 = vmatpush3.bf16.msra.mxu1 %v2520_v0 }
  0xaf   : > { %v441_v4 = vpop.permute.xlu0 %440  ;;  %v475_v6 = vpop.permute.xlu1 %474 }
  0xb0   : > { %v519_v5 = vsel %vm484_vm1, %v4836_v15, %v441_v4 }
  0xb1   : > { %2278 = vrot.lane.b32.xlu0 %v4700_v22, %s4698_s14  ;;  %v5081_v7 = vsel %vm535_vm2, %v519_v5, %v475_v6 }
  0xb2   : > { %4260 = vmatmul.mubr.msk.bf16.gmra.mxu0 %vm576_vm3, %v4923_v31  ;;  %4326 = vmatmul.mubr.msk.bf16.gmra.mxu1 %vm576_vm3, %v4923_v31 }
  0xb3   : > { %4263 = vmatprep.mubr.msk.bf16.mxu0 %vm576_vm3, %v5013_v55  ;;  %4329 = vmatprep.mubr.msk.bf16.mxu1 %vm576_vm3, %v5013_v55  ;;  %v443_v8 = vpop.permute.xlu0 %442  ;;  %v477_v10 = vpop.permute.xlu1 %476 }
  0xb4   : > { %v522_v9 = vsel %vm484_vm1, %v4843_v16, %v443_v8 }
  0xb5   : > { %2218 = vrot.lane.b32.xlu0 %v4700_v22, %s4697_s13  ;;  %v5094_v11 = vsel %vm535_vm2, %v522_v9, %v477_v10 }
  0xb7   : > { %v445_v12 = vpop.permute.xlu0 %444  ;;  %v479_v14 = vpop.permute.xlu1 %478 }
  0xb8   : > { %v525_v13 = vsel %vm484_vm1, %v4850_v17, %v445_v12 }
  0xb9   : > { %2282 = vrot.lane.b32.xlu0 %v4700_v22, %s4698_s14  ;;  %v5107_v15 = vsel %vm535_vm2, %v525_v13, %v479_v14 }
  0xba   : > { %4264 = vmatmul.mubr.msk.bf16.gmra.mxu0 %vm576_vm3, %v4923_v31  ;;  %4330 = vmatmul.mubr.msk.bf16.gmra.mxu1 %vm576_vm3, %v4923_v31 }
  0xbb   : > { %4267 = vmatprep.mubr.msk.bf16.mxu0 %vm576_vm3, %v5030_v59  ;;  %4333 = vmatprep.mubr.msk.bf16.mxu1 %vm576_vm3, %v5030_v59  ;;  %v447_v16 = vpop.permute.xlu0 %446  ;;  %v481_v21 = vpop.permute.xlu1 %480 }
  0xbc   : > { %v528_v17 = vsel %vm484_vm1, %v4857_v18, %v447_v16 }
  0xbd   : > { %2222 = vrot.lane.b32.xlu0 %v4700_v22, %s4697_s13 }
  0xbf   : > { %v449_v23 = vpop.permute.xlu0 %448  ;;  %v483_v24 = vpop.permute.xlu1 %482 }
  0xc0   : > { %v531_v18 = vsel %vm484_vm1, %v4864_v19, %v449_v23 }
  0xc1   : > { %2286 = vrot.lane.b32.xlu0 %v4700_v22, %s4698_s14  ;;  %v5133_v25 = vsel %vm535_vm2, %v531_v18, %v483_v24 }
  0xc2   : > { %4268 = vmatmul.mubr.msk.bf16.gmra.mxu0 %vm576_vm3, %v4923_v31  ;;  %4334 = vmatmul.mubr.msk.bf16.gmra.mxu1 %vm576_vm3, %v4923_v31 }
  0xc3   : > { %4271 = vmatprep.mubr.msk.bf16.mxu0 %vm576_vm3, %v5047_v63  ;;  %4337 = vmatprep.mubr.msk.bf16.mxu1 %vm576_vm3, %v5047_v63  ;;  %v451_v27 = vpop.permute.xlu0 %450 }
  0xc4   : > { %v534_v19 = vsel %vm484_vm1, %v4871_v20, %v451_v27  ;;  %v408_v20 = vlaneseq }
  0xc5   : > { %2226 = vrot.lane.b32.xlu0 %v4700_v22, %s4697_s13  ;;  %v5151_v28 = vsel %vm535_vm2, %v534_v19, %v4917_v29 }
  0xc6   : > { %v5205_v34 = vshrl.u32 %v408_v20, 7 }
  0xc8   : > { %6757 = vst [vmem:[#allocation3_spill] sm:$0xff] %v5205_v34  ;;  %vm1271_vm4 = vcmp.lt.s32.totalorder %v5205_v34, 1  ;;  %vm1697_vm5 = vcmp.lt.s32.totalorder %v5205_v34, 7 }
  0xc9   : > { %2290 = vrot.lane.b32.xlu0 %v4700_v22, %s4698_s14 }
  0xca   : > { %4272 = vmatmul.mubr.msk.bf16.gmra.mxu0 %vm576_vm3, %v4923_v31  ;;  %4338 = vmatmul.mubr.msk.bf16.gmra.mxu1 %vm576_vm3, %v4923_v31 }
  0xcb   : > { %4275 = vmatprep.mubr.msk.bf16.mxu0 %vm576_vm3, %v5064_v3  ;;  %4341 = vmatprep.mubr.msk.bf16.mxu1 %vm576_vm3, %v5064_v3 }
  0xcd   : > { %2230 = vrot.lane.b32.xlu0 %v4700_v22, %s4697_s13  ;;  %v5120_v22 = vsel %vm535_vm2, %v528_v17, %v481_v21 }
  0xd2   : > { %4276 = vmatmul.mubr.msk.bf16.gmra.mxu0 %vm576_vm3, %v4923_v31  ;;  %4342 = vmatmul.mubr.msk.bf16.gmra.mxu1 %vm576_vm3, %v4923_v31 }
  0xd3   : > { %4279 = vmatprep.mubr.msk.bf16.mxu0 %vm576_vm3, %v5081_v7  ;;  %4345 = vmatprep.mubr.msk.bf16.mxu1 %vm576_vm3, %v5081_v7 }
  0xda   : > { %4280 = vmatmul.mubr.msk.bf16.gmra.mxu0 %vm576_vm3, %v4923_v31  ;;  %4346 = vmatmul.mubr.msk.bf16.gmra.mxu1 %vm576_vm3, %v4923_v31 }
  0xdb   : > { %4283 = vmatprep.mubr.msk.bf16.mxu0 %vm576_vm3, %v5094_v11  ;;  %4349 = vmatprep.mubr.msk.bf16.mxu1 %vm576_vm3, %v5094_v11 }
  0xe2   : > { %4284 = vmatmul.mubr.msk.bf16.gmra.mxu0 %vm576_vm3, %v4923_v31  ;;  %4350 = vmatmul.mubr.msk.bf16.gmra.mxu1 %vm576_vm3, %v4923_v31 }
  0xe3   : > { %4287 = vmatprep.mubr.msk.bf16.mxu0 %vm576_vm3, %v5107_v15  ;;  %4353 = vmatprep.mubr.msk.bf16.mxu1 %vm576_vm3, %v5107_v15 }
  0xea   : > { %4288 = vmatmul.mubr.msk.bf16.gmra.mxu0 %vm576_vm3, %v4923_v31  ;;  %4354 = vmatmul.mubr.msk.bf16.gmra.mxu1 %vm576_vm3, %v4923_v31 }
  0xeb   : > { %4291 = vmatprep.mubr.msk.bf16.mxu0 %vm576_vm3, %v5120_v22  ;;  %4357 = vmatprep.mubr.msk.bf16.mxu1 %vm576_vm3, %v5120_v22 }
  0xf2   : > { %4292 = vmatmul.mubr.msk.bf16.gmra.mxu0 %vm576_vm3, %v4923_v31  ;;  %4358 = vmatmul.mubr.msk.bf16.gmra.mxu1 %vm576_vm3, %v4923_v31 }
  0xf3   : > { %4295 = vmatprep.mubr.msk.bf16.mxu0 %vm576_vm3, %v5133_v25  ;;  %4361 = vmatprep.mubr.msk.bf16.mxu1 %vm576_vm3, %v5133_v25 }
  0xfa   : > { %4296 = vmatmul.mubr.msk.bf16.gmra.mxu0 %vm576_vm3, %v4923_v31  ;;  %4362 = vmatmul.mubr.msk.bf16.gmra.mxu1 %vm576_vm3, %v4923_v31 }
  0xfb   : > { %4299 = vmatprep.mubr.msk.bf16.mxu0 %vm576_vm3, %v5151_v28  ;;  %4365 = vmatprep.mubr.msk.bf16.mxu1 %vm576_vm3, %v5151_v28 }
 0x102   : > { %4300 = vmatmul.mubr.msk.bf16.gmra.mxu0 %vm576_vm3, %v4923_v31  ;;  %4366 = vmatmul.mubr.msk.bf16.gmra.mxu1 %vm576_vm3, %v4923_v31 }
 0x103   : > { %4371 = vmatprep.mubr.msk.bf16.mxu0 %vm576_vm3, %v4910_v26 }
 0x10a   : > { %4372 = vmatmul.mubr.msk.bf16.vlgmr.msra.gmra.mxu0 %vm576_vm3, %v4923_v31 }
 0x10b   : > { %4375 = vmatprep.mubr.msk.bf16.mxu0 %vm576_vm3, %v4936_v35 }
 0x112   : > { %4376 = vmatmul.mubr.msk.bf16.gmra.mxu0 %vm576_vm3, %v4923_v31 }
 0x113   : > { %4379 = vmatprep.mubr.msk.bf16.mxu0 %vm576_vm3, %v4947_v39 }
 0x11a   : > { %4380 = vmatmul.mubr.msk.bf16.gmra.mxu0 %vm576_vm3, %v4923_v31 }
 0x11b   : > { %4383 = vmatprep.mubr.msk.bf16.mxu0 %vm576_vm3, %v4962_v43 }
 0x122   : > { %4384 = vmatmul.mubr.msk.bf16.gmra.mxu0 %vm576_vm3, %v4923_v31 }
 0x123   : > { %4387 = vmatprep.mubr.msk.bf16.mxu0 %vm576_vm3, %v4979_v47 }
 0x12a   : > { %4388 = vmatmul.mubr.msk.bf16.gmra.mxu0 %vm576_vm3, %v4923_v31 }
 0x12b   : > { %4391 = vmatprep.mubr.msk.bf16.mxu0 %vm576_vm3, %v4996_v51 }
 0x132   : > { %4392 = vmatmul.mubr.msk.bf16.gmra.mxu0 %vm576_vm3, %v4923_v31 }
 0x133   : > { %4395 = vmatprep.mubr.msk.bf16.mxu0 %vm576_vm3, %v5013_v55 }
 0x13a   : > { %4396 = vmatmul.mubr.msk.bf16.gmra.mxu0 %vm576_vm3, %v4923_v31 }
 0x13b   : > { %4399 = vmatprep.mubr.msk.bf16.mxu0 %vm576_vm3, %v5030_v59 }
 0x142   : > { %4400 = vmatmul.mubr.msk.bf16.gmra.mxu0 %vm576_vm3, %v4923_v31 }
 0x143   : > { %4403 = vmatprep.mubr.msk.bf16.mxu0 %vm576_vm3, %v5047_v63 }
 0x14a   : > { %v4241_v26 = vpop.f32.mrf.mxu0  ;;  %v5195_v30 = vpop.f32.mrf.mxu1  ;;  %4404 = vmatmul.mubr.msk.bf16.gmra.mxu0 %vm576_vm3, %v4923_v31 }
 0x14b   : > { %4407 = vmatprep.mubr.msk.bf16.mxu0 %vm576_vm3, %v5064_v3 }
 0x14c   : > { %v5201_v32 = vpop.f32.mrf.mxu0  ;;  %v5203_v33 = vpop.f32.mrf.mxu1 }
 0x14d   : > { %v6735_v39 = vrot.slane %v5201_v32, 7 }
 0x14e   : > { %v4242_v35 = vpop.f32.mrf.mxu0  ;;  %v4308_v36 = vpop.f32.mrf.mxu1 }
 0x14f   : > { %v1210_v46 = vrot.slane %v4242_v35, 7 }
 0x150   : > { %v652_v37 = vpop.f32.mrf.mxu0  ;;  %v5207_v38 = vpop.f32.mrf.mxu1 }
 0x151   : > { %v1208_v40 = vrot.slane %v652_v37, 7 }
 0x152   : > { %v4245_v41 = vpop.f32.mrf.mxu0  ;;  %v5211_v42 = vpop.f32.mrf.mxu1  ;;  %4408 = vmatmul.mubr.msk.bf16.gmra.mxu0 %vm576_vm3, %v4923_v31 }
 0x153   : > { %4411 = vmatprep.mubr.msk.bf16.mxu0 %vm576_vm3, %v5081_v7  ;;  %v5221_v43 = vsel %vm1271_vm4, %v6735_v39, %v1208_v40 }
 0x154   : > { %v665_v44 = vpop.f32.mrf.mxu0  ;;  %v5223_v45 = vpop.f32.mrf.mxu1 }
 0x155   : > { %v1211_v47 = vrot.slane %v665_v44, 7 }
 0x156   : > { %v4246_v48 = vpop.f32.mrf.mxu0  ;;  %v4312_v49 = vpop.f32.mrf.mxu1 }
 0x157   : > { %v5227_v50 = vsel %vm1271_vm4, %v1210_v46, %v1211_v47  ;;  %v1214_v59 = vrot.slane %v4246_v48, 7 }
 0x158   : > { %v668_v51 = vpop.f32.mrf.mxu0  ;;  %v5229_v52 = vpop.f32.mrf.mxu1 }
 0x159   : > { %v1212_v53 = vrot.slane %v668_v51, 7 }
 0x15a   : > { %v4249_v54 = vpop.f32.mrf.mxu0  ;;  %v5231_v55 = vpop.f32.mrf.mxu1  ;;  %4412 = vmatmul.mubr.msk.bf16.gmra.mxu0 %vm576_vm3, %v4923_v31 }
 0x15b   : > { %4415 = vmatprep.mubr.msk.bf16.mxu0 %vm576_vm3, %v5094_v11  ;;  %v5239_v56 = vsel %vm1271_vm4, %v1211_v47, %v1212_v53 }
 0x15c   : > { %v681_v57 = vpop.f32.mrf.mxu0  ;;  %v5241_v58 = vpop.f32.mrf.mxu1 }
 0x15d   : > { %v1215_v60 = vrot.slane %v681_v57, 7 }
 0x15e   : > { %v4250_v62 = vpop.f32.mrf.mxu0  ;;  %v4316_v63 = vpop.f32.mrf.mxu1 }
 0x15f   : > { %v5250_v1 = vsel %vm1271_vm4, %v1214_v59, %v1215_v60  ;;  %v1218_v10 = vrot.slane %v4250_v62, 7 }
 0x160   : > { %v684_v2 = vpop.f32.mrf.mxu0  ;;  %v5252_v3 = vpop.f32.mrf.mxu1 }
 0x161   : > { %v1216_v4 = vrot.slane %v684_v2, 7 }
 0x162   : > { %v4253_v5 = vpop.f32.mrf.mxu0  ;;  %v5254_v6 = vpop.f32.mrf.mxu1  ;;  %4416 = vmatmul.mubr.msk.bf16.gmra.mxu0 %vm576_vm3, %v4923_v31 }
 0x163   : > { %4419 = vmatprep.mubr.msk.bf16.mxu0 %vm576_vm3, %v5107_v15  ;;  %v5262_v7 = vsel %vm1271_vm4, %v1215_v60, %v1216_v4 }
 0x164   : > { %v697_v8 = vpop.f32.mrf.mxu0  ;;  %v5264_v9 = vpop.f32.mrf.mxu1 }
 0x165   : > { %v1219_v11 = vrot.slane %v697_v8, 7 }
 0x166   : > { %v4254_v12 = vpop.f32.mrf.mxu0  ;;  %v4320_v13 = vpop.f32.mrf.mxu1 }
 0x167   : > { %v5268_v14 = vsel %vm1271_vm4, %v1218_v10, %v1219_v11  ;;  %v1222_v19 = vrot.slane %v4254_v12, 7 }
 0x168   : > { %v700_v16 = vpop.f32.mrf.mxu0  ;;  %v5270_v17 = vpop.f32.mrf.mxu1 }
 0x169   : > { %v1220_v21 = vrot.slane %v700_v16, 7 }
 0x16a   : > { %v4257_v15 = vpop.f32.mrf.mxu0  ;;  %v5272_v23 = vpop.f32.mrf.mxu1  ;;  %4420 = vmatmul.mubr.msk.bf16.gmra.mxu0 %vm576_vm3, %v4923_v31 }
 0x16b   : > { %4423 = vmatprep.mubr.msk.bf16.mxu0 %vm576_vm3, %v5120_v22  ;;  %v5280_v18 = vsel %vm1271_vm4, %v1219_v11, %v1220_v21 }
 0x16c   : > { %v5282_v24 = vpop.f32.mrf.mxu0  ;;  %v5284_v27 = vpop.f32.mrf.mxu1 }
 0x16d   : > { %v6733_v20 = vrot.slane %v5282_v24, 7 }
 0x16e   : > { %v4258_v26 = vpop.f32.mrf.mxu0  ;;  %v4324_v35 = vpop.f32.mrf.mxu1 }
 0x16f   : > { %v5291_v36 = vsel %vm1271_vm4, %v1222_v19, %v6733_v20  ;;  %v1226_v47 = vrot.slane %v4258_v26, 7 }
 0x170   : > { %v5293_v22 = vpop.f32.mrf.mxu0  ;;  %v5295_v37 = vpop.f32.mrf.mxu1 }
 0x172   : > { %v4261_v40 = vpop.f32.mrf.mxu0  ;;  %v5297_v41 = vpop.f32.mrf.mxu1  ;;  %4424 = vmatmul.mubr.msk.bf16.gmra.mxu0 %vm576_vm3, %v4923_v31 }
 0x173   : > { %4427 = vmatprep.mubr.msk.bf16.mxu0 %vm576_vm3, %v5133_v25 }
 0x174   : > { %v5303_v44 = vpop.f32.mrf.mxu0  ;;  %v5305_v46 = vpop.f32.mrf.mxu1 }
 0x175   : > { %v6732_v48 = vrot.slane %v5303_v44, 7 }
 0x176   : > { %v4262_v49 = vpop.f32.mrf.mxu0  ;;  %v4328_v51 = vpop.f32.mrf.mxu1 }
 0x177   : > { %v5312_v53 = vsel %vm1271_vm4, %v1226_v47, %v6732_v48  ;;  %v1230_v62 = vrot.slane %v4262_v49, 7 }
 0x178   : > { %v5314_v54 = vpop.f32.mrf.mxu0  ;;  %v5316_v57 = vpop.f32.mrf.mxu1 }
 0x17a   : > { %v4265_v25 = vpop.f32.mrf.mxu0  ;;  %v5318_v59 = vpop.f32.mrf.mxu1  ;;  %4428 = vmatmul.mubr.msk.bf16.gmra.mxu0 %vm576_vm3, %v4923_v31 }
 0x17b   : > { %4431 = vmatprep.mubr.msk.bf16.mxu0 %vm576_vm3, %v5151_v28 }
 0x17c   : > { %v5324_v60 = vpop.f32.mrf.mxu0  ;;  %v5326_v61 = vpop.f32.mrf.mxu1 }
 0x17d   : > { %v6731_v63 = vrot.slane %v5324_v60, 7 }
 0x17e   : > { %v4266_v0 = vpop.f32.mrf.mxu0  ;;  %v4332_v2 = vpop.f32.mrf.mxu1 }
 0x17f   : > { %v5333_v4 = vsel %vm1271_vm4, %v1230_v62, %v6731_v63  ;;  %v1234_v13 = vrot.slane %v4266_v0, 7 }
 0x180   : > { %v5335_v5 = vpop.f32.mrf.mxu0  ;;  %v5337_v8 = vpop.f32.mrf.mxu1 }
 0x182   : > { %v4269_v28 = vpop.f32.mrf.mxu0  ;;  %v5339_v10 = vpop.f32.mrf.mxu1  ;;  %4432 = vmatmul.mubr.msk.bf16.gmra.mxu0 %vm576_vm3, %v4923_v31 }
 0x184   : > { %v5343_v11 = vpop.f32.mrf.mxu0  ;;  %v5345_v12 = vpop.f32.mrf.mxu1 }
 0x185   : > { %v6730_v16 = vrot.slane %v5343_v11, 7 }
 0x186   : > { %v4270_v21 = vpop.f32.mrf.mxu0  ;;  %v4336_v15 = vpop.f32.mrf.mxu1 }
 0x187   : > { %v5352_v19 = vsel %vm1271_vm4, %v1234_v13, %v6730_v16  ;;  %v1238_v51 = vrot.slane %v4270_v21, 7 }
 0x188   : > { %v5354_v26 = vpop.f32.mrf.mxu0  ;;  %v5356_v35 = vpop.f32.mrf.mxu1 }
 0x18a   : > { %v4273_v31 = vpop.f32.mrf.mxu0  ;;  %v5358_v40 = vpop.f32.mrf.mxu1 }
 0x18c   : > { %v5360_v47 = vpop.f32.mrf.mxu0  ;;  %v5362_v49 = vpop.f32.mrf.mxu1 }
 0x18d   : > { %6758 = vst [vmem:[#allocation4_spill] sm:$0xff] %v5360_v47  ;;  %v6734_v25 = vrot.slane %v5360_v47, 7 }
 0x18e   : > { %v4274_v62 = vpop.f32.mrf.mxu0  ;;  %v4340_v0 = vpop.f32.mrf.mxu1 }
 0x18f   : > { %v5369_v2 = vsel %vm1271_vm4, %v1238_v51, %v6734_v25  ;;  %v1242_v63 = vrot.slane %v4274_v62, 7 }
 0x190   : > { %v5371_v28 = vpop.f32.mrf.mxu0  ;;  %v5373_v13 = vpop.f32.mrf.mxu1 }
 0x192   : > { %v4277_v15 = vpop.f32.mrf.mxu0  ;;  %v5375_v31 = vpop.f32.mrf.mxu1 }
 0x193   : > { %6759 = vst [vmem:[#allocation5_spill] sm:$0xff] %v5375_v31 }
 0x194   : > { %v5377_v16 = vpop.f32.mrf.mxu0  ;;  %v5379_v21 = vpop.f32.mrf.mxu1 }
 0x195   : > { %6760 = vst [vmem:[#allocation6_spill] sm:$0xff] %v5377_v16  ;;  %6761 = vst [vmem:[#allocation7_spill] sm:$0xff] %v5379_v21  ;;  %v6740_v0 = vrot.slane %v5377_v16, 7 }
 0x196   : > { %v4278_v48 = vpop.f32.mrf.mxu0  ;;  %v4344_v20 = vpop.f32.mrf.mxu1 }
 0x197   : > { %v5386_v51 = vsel %vm1271_vm4, %v1242_v63, %v6740_v0  ;;  %v1246_v21 = vrot.slane %v4278_v48, 7 }
 0x198   : > { %6762 = vst [vmem:[#allocation8_spill] sm:$0xff] %v5386_v51  ;;  %v5388_v25 = vpop.f32.mrf.mxu0  ;;  %v5390_v15 = vpop.f32.mrf.mxu1 }
 0x199   : > { %6763 = vst [vmem:[#allocation9_spill] sm:$0xff] %v5388_v25  ;;  %6764 = vst [vmem:[#allocation10_spill] sm:$0xff] %v5390_v15 }
 0x19a   : > { %v4281_v39 = vpop.f32.mrf.mxu0  ;;  %v5392_v29 = vpop.f32.mrf.mxu1 }
 0x19b   : > { %6765 = vst [vmem:[#allocation11_spill] sm:$0xff] %v5392_v29 }
 0x19c   : > { %v5394_v31 = vpop.f32.mrf.mxu0  ;;  %v5396_v62 = vpop.f32.mrf.mxu1 }
 0x19d   : > { %6766 = vst [vmem:[#allocation12_spill] sm:$0xff] %v5394_v31  ;;  %6767 = vst [vmem:[#allocation13_spill] sm:$0xff] %v5396_v62  ;;  %v6742_v20 = vrot.slane %v5394_v31, 7 }
 0x19e   : > { %v4282_v47 = vpop.f32.mrf.mxu0  ;;  %v4348_v16 = vpop.f32.mrf.mxu1 }
 0x19f   : > { %v5403_v63 = vsel %vm1271_vm4, %v1246_v21, %v6742_v20  ;;  %v1250_v62 = vrot.slane %v4282_v47, 7 }
 0x1a0   : > { %6768 = vst [vmem:[#allocation14_spill] sm:$0xff] %v5403_v63  ;;  %v5405_v0 = vpop.f32.mrf.mxu0  ;;  %v5407_v39 = vpop.f32.mrf.mxu1 }
 0x1a1   : > { %6769 = vst [vmem:[#allocation15_spill] sm:$0xff] %v5405_v0  ;;  %6770 = vst [vmem:[#allocation16_spill] sm:$0xff] %v5407_v39 }
 0x1a2   : > { %v4285_v29 = vpop.f32.mrf.mxu0  ;;  %v5409_v51 = vpop.f32.mrf.mxu1 }
 0x1a3   : > { %6771 = vst [vmem:[#allocation17_spill] sm:$0xff] %v5409_v51 }
 0x1a4   : > { %v5411_v25 = vpop.f32.mrf.mxu0  ;;  %v5413_v48 = vpop.f32.mrf.mxu1 }
 0x1a5   : > { %6772 = vst [vmem:[#allocation18_spill] sm:$0xff] %v5411_v25  ;;  %6773 = vst [vmem:[#allocation19_spill] sm:$0xff] %v5413_v48  ;;  %v6744_v16 = vrot.slane %v5411_v25, 7 }
 0x1a6   : > { %v4286_v15 = vpop.f32.mrf.mxu0  ;;  %v4352_v31 = vpop.f32.mrf.mxu1 }
 0x1a7   : > { %v5420_v21 = vsel %vm1271_vm4, %v1250_v62, %v6744_v16  ;;  %v1254_v48 = vrot.slane %v4286_v15, 7 }
 0x1a8   : > { %6774 = vst [vmem:[#allocation20_spill] sm:$0xff] %v5420_v21  ;;  %v5422_v20 = vpop.f32.mrf.mxu0  ;;  %v5424_v29 = vpop.f32.mrf.mxu1 }
 0x1a9   : > { %6775 = vst [vmem:[#allocation21_spill] sm:$0xff] %v5422_v20  ;;  %6776 = vst [vmem:[#allocation22_spill] sm:$0xff] %v5424_v29 }
 0x1aa   : > { %v4289_v51 = vpop.f32.mrf.mxu0  ;;  %v5426_v63 = vpop.f32.mrf.mxu1 }
 0x1ab   : > { %6777 = vst [vmem:[#allocation23_spill] sm:$0xff] %v5426_v63 }
 0x1ac   : > { %v5428_v0 = vpop.f32.mrf.mxu0  ;;  %v5430_v47 = vpop.f32.mrf.mxu1 }
 0x1ad   : > { %6778 = vst [vmem:[#allocation24_spill] sm:$0xff] %v5428_v0  ;;  %6779 = vst [vmem:[#allocation25_spill] sm:$0xff] %v5430_v47  ;;  %v6746_v31 = vrot.slane %v5428_v0, 7 }
 0x1ae   : > { %v4290_v39 = vpop.f32.mrf.mxu0  ;;  %v4356_v25 = vpop.f32.mrf.mxu1 }
 0x1af   : > { %v5437_v62 = vsel %vm1271_vm4, %v1254_v48, %v6746_v31  ;;  %v1258_v47 = vrot.slane %v4290_v39, 7 }
 0x1b0   : > { %6780 = vst [vmem:[#allocation26_spill] sm:$0xff] %v5437_v62  ;;  %v5439_v16 = vpop.f32.mrf.mxu0  ;;  %v5441_v51 = vpop.f32.mrf.mxu1 }
 0x1b1   : > { %6781 = vst [vmem:[#allocation27_spill] sm:$0xff] %v5439_v16  ;;  %6782 = vst [vmem:[#allocation28_spill] sm:$0xff] %v5441_v51 }
 0x1b2   : > { %v4293_v63 = vpop.f32.mrf.mxu0  ;;  %v5443_v21 = vpop.f32.mrf.mxu1 }
 0x1b3   : > { %6783 = vst [vmem:[#allocation29_spill] sm:$0xff] %v5443_v21 }
 0x1b4   : > { %v5445_v20 = vpop.f32.mrf.mxu0  ;;  %v5447_v15 = vpop.f32.mrf.mxu1 }
 0x1b5   : > { %6784 = vst [vmem:[#allocation30_spill] sm:$0xff] %v5445_v20  ;;  %6785 = vst [vmem:[#allocation31_spill] sm:$0xff] %v5447_v15  ;;  %v6748_v25 = vrot.slane %v5445_v20, 7 }
 0x1b6   : > { %v4294_v29 = vpop.f32.mrf.mxu0  ;;  %v4360_v0 = vpop.f32.mrf.mxu1 }
 0x1b7   : > { %v5454_v48 = vsel %vm1271_vm4, %v1258_v47, %v6748_v25  ;;  %v1262_v15 = vrot.slane %v4294_v29, 7 }
 0x1b8   : > { %6786 = vst [vmem:[#allocation32_spill] sm:$0xff] %v5454_v48  ;;  %v5456_v31 = vpop.f32.mrf.mxu0  ;;  %v5458_v63 = vpop.f32.mrf.mxu1 }
 0x1b9   : > { %6787 = vst [vmem:[#allocation33_spill] sm:$0xff] %v5456_v31  ;;  %6788 = vst [vmem:[#allocation34_spill] sm:$0xff] %v5458_v63 }
 0x1ba   : > { %v4297_v21 = vpop.f32.mrf.mxu0  ;;  %v5460_v62 = vpop.f32.mrf.mxu1 }
 0x1bb   : > { %6789 = vst [vmem:[#allocation35_spill] sm:$0xff] %v5460_v62 }
 0x1bc   : > { %v5462_v16 = vpop.f32.mrf.mxu0  ;;  %v5464_v39 = vpop.f32.mrf.mxu1 }
 0x1bd   : > { %6790 = vst [vmem:[#allocation36_spill] sm:$0xff] %v5462_v16  ;;  %6791 = vst [vmem:[#allocation37_spill] sm:$0xff] %v5464_v39  ;;  %v6750_v0 = vrot.slane %v5462_v16, 7 }
 0x1be   : > { %v4298_v51 = vpop.f32.mrf.mxu0  ;;  %v4364_v20 = vpop.f32.mrf.mxu1 }
 0x1bf   : > { %v5471_v47 = vsel %vm1271_vm4, %v1262_v15, %v6750_v0  ;;  %v1266_v39 = vrot.slane %v4298_v51, 7  ;;  %v1633_v51 = vrot.slane %v5203_v33, 1 }
 0x1c0   : > { %6792 = vst [vmem:[#allocation38_spill] sm:$0xff] %v5471_v47  ;;  %v5473_v25 = vpop.f32.mrf.mxu0  ;;  %v5475_v21 = vpop.f32.mrf.mxu1 }
 0x1c1   : > { %6793 = vst [vmem:[#allocation39_spill] sm:$0xff] %v5473_v25 }
 0x1c2   : > { %v4301_v62 = vpop.f32.mrf.mxu0  ;;  %v5477_v48 = vpop.f32.mrf.mxu1 }
 0x1c3   : > { %6794 = vst [vmem:[#allocation40_spill] sm:$0xff] %v5477_v48  ;;  %v1634_v62 = vrot.slane %v5207_v38, 1 }
 0x1c4   : > { %v5479_v31 = vpop.f32.mrf.mxu0  ;;  %v5481_v29 = vpop.f32.mrf.mxu1 }
 0x1c5   : > { %6795 = vst [vmem:[#allocation41_spill] sm:$0xff] %v5479_v31  ;;  %6796 = vst [vmem:[#allocation42_spill] sm:$0xff] %v5481_v29  ;;  %v6752_v20 = vrot.slane %v5479_v31, 7  ;;  %v6798_v29 = vrot.slane %v5201_v32, 7 }
 0x1c6   : > { %v4302_v63 = vpop.f32.mrf.mxu0  ;;  %v4368_v16 = vpop.f32.mrf.mxu1 }
 0x1c7   : > { %v5488_v15 = vsel %vm1271_vm4, %v1266_v39, %v6752_v20  ;;  %v1270_v0 = vrot.slane %v4302_v63, 7  ;;  %v1760_v39 = vsel %vm1697_vm5, %v1633_v51, %v1634_v62  ;;  %v5504_v63 = vld [vmem:[%s6724_s2] ss:$0 sm:$0xff]  ;;  %v1635_v20 = vrot.slane %v5195_v30, 1 }
 0x1c8   : > { %6797 = vst [vmem:[#allocation43_spill] sm:$0xff] %v5488_v15  ;;  %v5490_v47 = vpop.f32.mrf.mxu0  ;;  %v5515_v51 = vld [vmem:[%s6725_s3] ss:$0 sm:$0xff] }
 0x1c9   : > { %v1335_v16 = vsel %vm1271_vm4, %v1270_v0, %v6798_v29  ;;  %v1638_v0 = vrot.slane %v5229_v52, 1 }
 0x1ca   : > { %v4373_v48 = vpop.f32.mrf.mxu0 }
 0x1cc   : > { %v1378_v31 = vpop.f32.mrf.mxu0 }
 0x1cd   : > { %v1379_v25 = vadd.f32 %v1378_v31, %v1335_v16  ;;  %v1759_v31 = vsel %vm1697_vm5, %v1634_v62, %v1635_v20 }
 0x1ce   : > { %v4374_v38 = vpop.f32.mrf.mxu0 }
 0x1cf   : > { %v1762_v48 = vadd.f32 %v1760_v39, %v1379_v25  ;;  %v1637_v25 = vrot.slane %v5223_v45, 1  ;;  %v4671_v39 = vld [vmem:[%s6726_s4 + $0x10] sm:$0x3f]  }
 0x1d0   : > { %v1381_v33 = vpop.f32.mrf.mxu0  ;;  %4637 = vmatprep.subr.msk.bf16.mxu0 %vm611_vm0, %v4671_v39 }
 0x1d1   : > { %v1833_v32 = vmul.f32 %v5504_v63, %v1762_v48  ;;  %v1382_v15 = vadd.f32 %v1381_v33, %v5221_v43  ;;  %v1756_v62 = vsel %vm1697_vm5, %v1637_v25, %v1638_v0  ;;  %v1639_v33 = vrot.slane %v5211_v42, 1  ;;  %v5535_v25 = vld [vmem:[%s6726_s4 + $0x8] sm:$0x3f]  }
 0x1d2   : > { %v4377_v29 = vpop.f32.mrf.mxu0  ;;  %4638 = vmatprep.subr.msk.bf16.mxu1 %vm611_vm0, %v5535_v25 }
 0x1d3   : > { %v1763_v16 = vadd.f32 %v1759_v31, %v1382_v15  ;;  %v1904_v20 = vadd.f32 %v5515_v51, %v1833_v32  ;;  %v2807_v15 = vsel %vm611_vm0, %v4671_v39, 0  ;;  %v1755_v39 = vsel %vm1697_vm5, %v1638_v0, %v1639_v33 }
 0x1d4   : > { %v1394_v30 = vpop.f32.mrf.mxu0  ;;  %4502 = vmatpush3.bf16.msra.mxu0 %v2807_v15  ;;  %v1643_v33 = vrot.slane %v5231_v55, 1 }
 0x1d5   : > { %v1834_v43 = vmul.f32 %v5504_v63, %v1763_v16  ;;  %v1395_v52 = vadd.f32 %v1394_v30, %v5227_v50  ;;  %v1968_v32 = vmax.f32 %v1904_v20, 0.0  ;;  %v1642_v30 = vrot.slane %v5252_v3, 1 }
 0x1d6   : > { %v4378_v38 = vpop.f32.mrf.mxu0 }
 0x1d7   : > { %v1766_v45 = vadd.f32 %v1756_v62, %v1395_v52  ;;  %v1905_v48 = vadd.f32 %v5515_v51, %v1834_v43 }
 0x1d8   : > { %v1397_v31 = vpop.f32.mrf.mxu0 }
 0x1d9   : > { %v1837_v29 = vmul.f32 %v5504_v63, %v1766_v45  ;;  %v1398_v50 = vadd.f32 %v1397_v31, %v5239_v56  ;;  %v1969_v16 = vmax.f32 %v1905_v48, 0.0  ;;  %v1641_v56 = vrot.slane %v5241_v58, 1 }
 0x1da   : > { %v4381_v43 = vpop.f32.mrf.mxu0 }
 0x1db   : > { %v1767_v52 = vadd.f32 %v1755_v39, %v1398_v50  ;;  %v5540_v42 = vpack.c.bf16 %v1969_v16, %v1968_v32  ;;  %v1908_v3 = vadd.f32 %v5515_v51, %v1837_v29  ;;  %v1752_v0 = vsel %vm1697_vm5, %v1641_v56, %v1642_v30 }
 0x1dc   : > { %v1410_v20 = vpop.f32.mrf.mxu0  ;;  %v1646_v16 = vrot.slane %v5270_v17, 1  ;;  %v1751_v29 = vsel %vm1697_vm5, %v1642_v30, %v1643_v33  ;;  %v1645_v56 = vrot.slane %v5264_v9, 1  ;;  %v1650_v33 = vrot.slane %v5295_v37, 1 }
 0x1dd   : > { %v1838_v62 = vmul.f32 %v5504_v63, %v1767_v52  ;;  %v1411_v38 = vadd.f32 %v1410_v20, %v5250_v1  ;;  %2168 = vrot.lane.b32.xlu1 %v5540_v42, %s4697_s13  ;;  %v1972_v1 = vmax.f32 %v1908_v3, 0.0 }
 0x1de   : > { %v4382_v15 = vpop.f32.mrf.mxu0  ;;  %v1748_v17 = vsel %vm1697_vm5, %v1645_v56, %v1646_v16 }
 0x1df   : > { %v1770_v45 = vadd.f32 %v1752_v0, %v1411_v38  ;;  %v1909_v48 = vadd.f32 %v5515_v51, %v1838_v62  ;;  %v1647_v0 = vrot.slane %v5254_v6, 1  ;;  %v1649_v6 = vrot.slane %v5284_v27, 1 }
 0x1e0   : > { %v1413_v58 = vpop.f32.mrf.mxu0  ;;  %v1651_v27 = vrot.slane %v5272_v23, 1 }
 0x1e1   : > { %v1841_v31 = vmul.f32 %v5504_v63, %v1770_v45  ;;  %v1414_v50 = vadd.f32 %v1413_v58, %v5262_v7  ;;  %v1973_v32 = vmax.f32 %v1909_v48, 0.0  ;;  %v1747_v58 = vsel %vm1697_vm5, %v1646_v16, %v1647_v0 }
 0x1e2   : > { %v4385_v39 = vpop.f32.mrf.mxu0  ;;  %v1744_v16 = vsel %vm1697_vm5, %v1649_v6, %v1650_v33 }
 0x1e3   : > { %v1771_v43 = vadd.f32 %v1751_v29, %v1414_v50  ;;  %v5559_v52 = vpack.c.bf16 %v1973_v32, %v1972_v1  ;;  %v1912_v7 = vadd.f32 %v5515_v51, %v1841_v31  ;;  %v1224_v32 = vrot.slane %v5293_v22, 7 }
 0x1e4   : > { %v1426_v20 = vpop.f32.mrf.mxu0  ;;  %v6799_v22 = vrot.slane %v5282_v24, 7 }
 0x1e5   : > { %v1842_v55 = vmul.f32 %v5504_v63, %v1771_v43  ;;  %v1427_v62 = vadd.f32 %v1426_v20, %v5268_v14  ;;  %2232 = vrot.lane.b32.xlu1 %v5559_v52, %s4698_s14  ;;  %v1976_v14 = vmax.f32 %v1912_v7, 0.0 }
 0x1e6   : > { %v4386_v30 = vpop.f32.mrf.mxu0 }
 0x1e7   : > { %v1774_v38 = vadd.f32 %v1748_v17, %v1427_v62  ;;  %v1913_v3 = vadd.f32 %v5515_v51, %v1842_v55  ;;  %v1318_v55 = vsel %vm1271_vm4, %v6799_v22, %v1224_v32 }
 0x1e8   : > { %v1429_v9 = vpop.f32.mrf.mxu0 }
 0x1e9   : > { %v1845_v15 = vmul.f32 %v5504_v63, %v1774_v38  ;;  %v1430_v45 = vadd.f32 %v1429_v9, %v5280_v18  ;;  %2172 = vrot.lane.b32.xlu1 %v5559_v52, %s4697_s13  ;;  %v1977_v48 = vmax.f32 %v1913_v3, 0.0  ;;  %v1654_v38 = vrot.slane %v5316_v57, 1 }
 0x1ea   : > { %v4389_v31 = vpop.f32.mrf.mxu0  ;;  %v1743_v3 = vsel %vm1697_vm5, %v1650_v33, %v1651_v27  ;;  %v1653_v9 = vrot.slane %v5305_v46, 1  ;;  %v1655_v46 = vrot.slane %v5297_v41, 1 }
 0x1eb   : > { %v1775_v50 = vadd.f32 %v1747_v58, %v1430_v45  ;;  %v5578_v1 = vpack.c.bf16 %v1977_v48, %v1976_v14  ;;  %v1916_v37 = vadd.f32 %v5515_v51, %v1845_v15  ;;  %v1228_v15 = vrot.slane %v5314_v54, 7 }
 0x1ec   : > { %v1442_v29 = vpop.f32.mrf.mxu0  ;;  %v1740_v33 = vsel %vm1697_vm5, %v1653_v9, %v1654_v38  ;;  %v6800_v54 = vrot.slane %v5303_v44, 7  ;;  %v1662_v9 = vrot.slane %v5356_v35, 1 }
 0x1ed   : > { %v1846_v18 = vmul.f32 %v5504_v63, %v1775_v50  ;;  %v1443_v39 = vadd.f32 %v1442_v29, %v5291_v36  ;;  %2236 = vrot.lane.b32.xlu1 %v5578_v1, %s4698_s14  ;;  %v1980_v17 = vmax.f32 %v1916_v37, 0.0  ;;  %v1658_v37 = vrot.slane %v5337_v8, 1 }
 0x1ee   : > { %v4390_v43 = vpop.f32.mrf.mxu0  ;;  %v1314_v6 = vsel %vm1271_vm4, %v6800_v54, %v1228_v15 }
 0x1ef   : > { %v1778_v56 = vadd.f32 %v1744_v16, %v1443_v39  ;;  %v1917_v20 = vadd.f32 %v5515_v51, %v1846_v18  ;;  %v1739_v16 = vsel %vm1697_vm5, %v1654_v38, %v1655_v46 }
 0x1f0   : > { %v1445_v36 = vpop.f32.mrf.mxu0 }
 0x1f1   : > { %v1849_v62 = vmul.f32 %v5504_v63, %v1778_v56  ;;  %v1446_v7 = vadd.f32 %v1445_v36, %v1318_v55  ;;  %2176 = vrot.lane.b32.xlu1 %v5578_v1, %s4697_s13  ;;  %v1981_v30 = vmax.f32 %v1917_v20, 0.0  ;;  %v1657_v56 = vrot.slane %v5326_v61, 1 }
 0x1f2   : > { %v4393_v23 = vpop.f32.mrf.mxu0  ;;  %v1232_v20 = vrot.slane %v5335_v5, 7  ;;  %v1659_v61 = vrot.slane %v5318_v59, 1  ;;  %v6801_v5 = vrot.slane %v5324_v60, 7 }
 0x1f3   : > { %v1779_v0 = vadd.f32 %v1743_v3, %v1446_v7  ;;  %v5601_v24 = vpack.c.bf16 %v1981_v30, %v1980_v17  ;;  %v1920_v57 = vadd.f32 %v5515_v51, %v1849_v62  ;;  %v1736_v36 = vsel %vm1697_vm5, %v1657_v56, %v1658_v37 }
 0x1f4   : > { %v1458_v45 = vpop.f32.mrf.mxu0  ;;  %v1310_v30 = vsel %vm1271_vm4, %v6801_v5, %v1232_v20  ;;  %v1735_v15 = vsel %vm1697_vm5, %v1658_v37, %v1659_v61 }
 0x1f5   : > { %v1850_v14 = vmul.f32 %v5504_v63, %v1779_v0  ;;  %v1459_v48 = vadd.f32 %v1458_v45, %v5312_v53  ;;  %2240 = vrot.lane.b32.xlu1 %v5601_v24, %s4698_s14  ;;  %v1984_v18 = vmax.f32 %v1920_v57, 0.0 }
 0x1f6   : > { %v4394_v58 = vpop.f32.mrf.mxu0 }
 0x1f7   : > { %v1782_v31 = vadd.f32 %v1740_v33, %v1459_v48  ;;  %v1921_v50 = vadd.f32 %v5515_v51, %v1850_v14  ;;  %v1661_v14 = vrot.slane %v5345_v12, 1  ;;  %v1236_v48 = vrot.slane %v5354_v26, 7 }
 0x1f8   : > { %v1461_v53 = vpop.f32.mrf.mxu0  ;;  %v1663_v12 = vrot.slane %v5339_v10, 1  ;;  %v6802_v26 = vrot.slane %v5343_v11, 7 }
 0x1f9   : > { %v1853_v32 = vmul.f32 %v5504_v63, %v1782_v31  ;;  %v1462_v29 = vadd.f32 %v1461_v53, %v1314_v6  ;;  %2180 = vrot.lane.b32.xlu1 %v5601_v24, %s4697_s13  ;;  %v1985_v39 = vmax.f32 %v1921_v50, 0.0  ;;  %v1732_v31 = vsel %vm1697_vm5, %v1661_v14, %v1662_v9 }
 0x1fa   : > { %v4397_v41 = vpop.f32.mrf.mxu0  ;;  %v1306_v6 = vsel %vm1271_vm4, %v6802_v26, %v1236_v48  ;;  %v1731_v37 = vsel %vm1697_vm5, %v1662_v9, %v1663_v12  ;;  %v6806_v9 = vld [vmem:[#allocation7_spill] sm:$0xff]  ;;  %v6809_v12 = vld [vmem:[#allocation5_spill] sm:$0xff] }
 0x1fb   : > { %v1783_v43 = vadd.f32 %v1739_v16, %v1462_v29  ;;  %v5624_v44 = vpack.c.bf16 %v1985_v39, %v1984_v18  ;;  %v1924_v8 = vadd.f32 %v5515_v51, %v1853_v32  ;;  %v1666_v39 = vrot.slane %v5373_v13, 1 }
 0x1fc   : > { %v1474_v27 = vpop.f32.mrf.mxu0  ;;  %v1665_v41 = vrot.slane %v5362_v49, 1  ;;  %v1667_v49 = vrot.slane %v5358_v40, 1  ;;  %v1671_v26 = vrot.slane %v6809_v12, 1  ;;  %v6821_v12 = vld [vmem:[#allocation21_spill] sm:$0xff] }
 0x1fd   : > { %v1854_v22 = vmul.f32 %v5504_v63, %v1783_v43  ;;  %v1475_v55 = vadd.f32 %v1474_v27, %v5333_v4  ;;  %2244 = vrot.lane.b32.xlu1 %v5624_v44, %s4698_s14  ;;  %v1988_v23 = vmax.f32 %v1924_v8, 0.0  ;;  %v1240_v43 = vrot.slane %v5371_v28, 7  ;;  %v6803_v28 = vld [vmem:[#allocation4_spill] sm:$0xff] }
 0x1fe   : > { %v4398_v62 = vpop.f32.mrf.mxu0 }
 0x1ff   : > { %v1786_v7 = vadd.f32 %v1736_v36, %v1475_v55  ;;  %v1925_v17 = vadd.f32 %v5515_v51, %v1854_v22  ;;  %v1728_v22 = vsel %vm1697_vm5, %v1665_v41, %v1666_v39  ;;  %v6804_v62 = vrot.slane %v6803_v28, 7  ;;  %v6815_v28 = vld [vmem:[#allocation14_spill] sm:$0xff] }
 0x200   : > { %v1477_v4 = vpop.f32.mrf.mxu0 }
 0x201   : > { %v1857_v38 = vmul.f32 %v5504_v63, %v1786_v7  ;;  %v1478_v3 = vadd.f32 %v1477_v4, %v1310_v30  ;;  %2184 = vrot.lane.b32.xlu1 %v5624_v44, %s4697_s13  ;;  %v1989_v0 = vmax.f32 %v1925_v17, 0.0  ;;  %v1302_v7 = vsel %vm1271_vm4, %v6804_v62, %v1240_v43  ;;  %v6805_v4 = vld [vmem:[#allocation10_spill] sm:$0xff] }
 0x202   : > { %v4401_v59 = vpop.f32.mrf.mxu0 }
 0x203   : > { %v1787_v45 = vadd.f32 %v1735_v15, %v1478_v3  ;;  %v5647_v60 = vpack.c.bf16 %v1989_v0, %v1988_v23  ;;  %v1928_v35 = vadd.f32 %v5515_v51, %v1857_v38  ;;  %v1670_v38 = vrot.slane %v6805_v4, 1  ;;  %v6807_v59 = vld [vmem:[#allocation9_spill] sm:$0xff] }
 0x204   : > { %v1490_v57 = vpop.f32.mrf.mxu0  ;;  %v1727_v3 = vsel %vm1697_vm5, %v1666_v39, %v1667_v49  ;;  %v1669_v15 = vrot.slane %v6806_v9, 1 }
 0x205   : > { %v1858_v33 = vmul.f32 %v5504_v63, %v1787_v45  ;;  %v1491_v58 = vadd.f32 %v1490_v57, %v5352_v19  ;;  %2248 = vrot.lane.b32.xlu1 %v5647_v60, %s4698_s14  ;;  %v1992_v29 = vmax.f32 %v1928_v35, 0.0  ;;  %v1244_v45 = vrot.slane %v6807_v59, 7  ;;  %v6808_v57 = vld [vmem:[#allocation8_spill] sm:$0xff] }
 0x206   : > { %v4402_v50 = vpop.f32.mrf.mxu0  ;;  %v1724_v35 = vsel %vm1697_vm5, %v1669_v15, %v1670_v38  ;;  %v1723_v41 = vsel %vm1697_vm5, %v1670_v38, %v1671_v26  ;;  %v6817_v38 = vld [vmem:[#allocation12_spill] sm:$0xff]  ;;  %v1252_v26 = vrot.slane %v6821_v12, 7 }
 0x207   : > { %v1790_v46 = vadd.f32 %v1732_v31, %v1491_v58  ;;  %v1929_v54 = vadd.f32 %v5515_v51, %v1858_v33  ;;  %v5704_v50 = vpop.permute.xlu0 %2170 }
 0x208   : > { %v1493_v19 = vpop.f32.mrf.mxu0 }
 0x209   : > { %v1861_v53 = vmul.f32 %v5504_v63, %v1790_v46  ;;  %v1494_v32 = vadd.f32 %v1493_v19, %v1306_v6  ;;  %2188 = vrot.lane.b32.xlu1 %v5647_v60, %s4697_s13  ;;  %v1993_v18 = vmax.f32 %v1929_v54, 0.0  ;;  %v6810_v6 = vld [vmem:[#allocation6_spill] sm:$0xff] }
 0x20a   : > { %v4405_v10 = vpop.f32.mrf.mxu0  ;;  %v6811_v19 = vrot.slane %v6810_v6, 7 }
 0x20b   : > { %v1791_v16 = vadd.f32 %v1731_v37, %v1494_v32  ;;  %v5670_v11 = vpack.c.bf16 %v1993_v18, %v1992_v29  ;;  %v1932_v13 = vadd.f32 %v5515_v51, %v1861_v53  ;;  %v6812_v10 = vld [vmem:[#allocation16_spill] sm:$0xff] }
 0x20c   : > { %v1506_v56 = vpop.f32.mrf.mxu0  ;;  %v1298_v53 = vsel %vm1271_vm4, %v6811_v19, %v1244_v45 }
 0x20d   : > { %v1862_v20 = vmul.f32 %v5504_v63, %v1791_v16  ;;  %v1507_v27 = vadd.f32 %v1506_v56, %v5369_v2  ;;  %2252 = vrot.lane.b32.xlu1 %v5670_v11, %s4698_s14  ;;  %v1996_v5 = vmax.f32 %v1932_v13, 0.0  ;;  %v1674_v16 = vrot.slane %v6812_v10, 1 }
 0x20e   : > { %v4406_v55 = vpop.f32.mrf.mxu0 }
 0x20f   : > { %v1794_v8 = vadd.f32 %v1728_v22, %v1507_v27  ;;  %v1933_v36 = vadd.f32 %v5515_v51, %v1862_v20  ;;  %v6813_v27 = vld [vmem:[#allocation13_spill] sm:$0xff]  ;;  %v6814_v22 = vld [vmem:[#allocation15_spill] sm:$0xff] }
 0x210   : > { %v1509_v2 = vpop.f32.mrf.mxu0  ;;  %v1673_v13 = vrot.slane %v6813_v27, 1  ;;  %v1248_v55 = vrot.slane %v6814_v22, 7 }
 0x211   : > { %v1865_v17 = vmul.f32 %v5504_v63, %v1794_v8  ;;  %v1510_v61 = vadd.f32 %v1509_v2, %v1302_v7  ;;  %2192 = vrot.lane.b32.xlu1 %v5670_v11, %s4697_s13  ;;  %v1997_v30 = vmax.f32 %v1933_v36, 0.0  ;;  %v5722_v36 = vpop.permute.xlu0 %2234 }
 0x212   : > { %v4409_v40 = vpop.f32.mrf.mxu0  ;;  %v1720_v2 = vsel %vm1697_vm5, %v1673_v13, %v1674_v16 }
 0x213   : > { %v1795_v23 = vadd.f32 %v1727_v3, %v1510_v61  ;;  %v5693_v0 = vpack.c.bf16 %v1997_v30, %v1996_v5  ;;  %v1936_v58 = vadd.f32 %v5515_v51, %v1865_v17  ;;  %v6816_v30 = vld [vmem:[#allocation11_spill] sm:$0xff]  ;;  %v6818_v3 = vrot.slane %v6817_v38, 7 }
 0x214   : > { %v1522_v14 = vpop.f32.mrf.mxu0  ;;  %v1675_v4 = vrot.slane %v6816_v30, 1  ;;  %v6827_v30 = vld [vmem:[#allocation25_spill] sm:$0xff]  ;;  %v6828_v38 = vld [vmem:[#allocation27_spill] sm:$0xff] }
 0x215   : > { %v1866_v48 = vmul.f32 %v5504_v63, %v1795_v23  ;;  %v1523_v33 = vadd.f32 %v1522_v14, %v6808_v57  ;;  %2256 = vrot.lane.b32.xlu1 %v5693_v0, %s4698_s14  ;;  %v2000_v39 = vmax.f32 %v1936_v58, 0.0  ;;  %v1294_v40 = vsel %vm1271_vm4, %v6818_v3, %v1248_v55  ;;  %v6819_v14 = vld [vmem:[#allocation22_spill] sm:$0xff]  ;;  %v5743_v58 = vpop.permute.xlu0 %2174 }
 0x216   : > { %v4410_v31 = vpop.f32.mrf.mxu0  ;;  %v1719_v57 = vsel %vm1697_vm5, %v1674_v16, %v1675_v4  ;;  %v6823_v16 = vld [vmem:[#allocation17_spill] sm:$0xff]  ;;  %v1681_v4 = vrot.slane %v6827_v30, 1  ;;  %v1256_v3 = vrot.slane %v6828_v38, 7 }
 0x217   : > { %v1798_v46 = vadd.f32 %v1724_v35, %v1523_v33  ;;  %v1937_v54 = vadd.f32 %v5515_v51, %v1866_v48  ;;  %v1678_v48 = vrot.slane %v6819_v14, 1 }
 0x218   : > { %v1525_v32 = vpop.f32.mrf.mxu0 }
 0x219   : > { %v1869_v29 = vmul.f32 %v5504_v63, %v1798_v46  ;;  %v1526_v18 = vadd.f32 %v1525_v32, %v1298_v53  ;;  %2196 = vrot.lane.b32.xlu1 %v5693_v0, %s4697_s13  ;;  %v2001_v37 = vmax.f32 %v1937_v54, 0.0  ;;  %v6820_v46 = vld [vmem:[#allocation19_spill] sm:$0xff]  ;;  %v6822_v53 = vld [vmem:[#allocation20_spill] sm:$0xff]  ;;  %v5762_v22 = vpop.permute.xlu0 %2238 }
 0x21a   : > { %v4413_v43 = vpop.f32.mrf.mxu0  ;;  %v1677_v54 = vrot.slane %v6820_v46, 1 }
 0x21b   : > { %v1799_v56 = vadd.f32 %v1723_v41, %v1526_v18  ;;  %v5718_v20 = vpack.c.bf16 %v2001_v37, %v2000_v39  ;;  %v1940_v7 = vadd.f32 %v5515_v51, %v1869_v29  ;;  %v1679_v41 = vrot.slane %v6823_v16, 1  ;;  %v6824_v43 = vld [vmem:[#allocation18_spill] sm:$0xff] }
 0x21c   : > { %v1538_v8 = vpop.f32.mrf.mxu0  ;;  %v1716_v18 = vsel %vm1697_vm5, %v1677_v54, %v1678_v48  ;;  %v6831_v54 = vld [vmem:[#allocation24_spill] sm:$0xff] }
 0x21d   : > { %v1870_v49 = vmul.f32 %v5504_v63, %v1799_v56  ;;  %v1539_v62 = vadd.f32 %v1538_v8, %v6815_v28  ;;  %2260 = vrot.lane.b32.xlu1 %v5718_v20, %s4698_s14  ;;  %v2004_v59 = vmax.f32 %v1940_v7, 0.0  ;;  %v6825_v56 = vrot.slane %v6824_v43, 7  ;;  %v6834_v43 = vld [vmem:[#allocation31_spill] sm:$0xff] }
 0x21e   : > { %v4414_v17 = vpop.f32.mrf.mxu0  ;;  %v6832_v12 = vrot.slane %v6831_v54, 7 }
 0x21f   : > { %v1802_v61 = vadd.f32 %v1720_v2, %v1539_v62  ;;  %v1941_v5 = vadd.f32 %v5515_v51, %v1870_v49  ;;  %v1290_v27 = vsel %vm1271_vm4, %v6825_v56, %v1252_v26  ;;  %v6826_v62 = vld [vmem:[#allocation28_spill] sm:$0xff]  ;;  %v1715_v2 = vsel %vm1697_vm5, %v1678_v48, %v1679_v41  ;;  %v5781_v48 = vpop.permute.xlu0 %2178 }
 0x220   : > { %v1541_v23 = vpop.f32.mrf.mxu0  ;;  %v1682_v7 = vrot.slane %v6826_v62, 1  ;;  %v1286_v26 = vsel %vm1271_vm4, %v6832_v12, %v1256_v3  ;;  %v1685_v56 = vrot.slane %v6834_v43, 1  ;;  %v6838_v3 = vld [vmem:[#allocation30_spill] sm:$0xff] }
 0x221   : > { %v1873_v9 = vmul.f32 %v5504_v63, %v1802_v61  ;;  %v1542_v15 = vadd.f32 %v1541_v23, %v1294_v40  ;;  %2200 = vrot.lane.b32.xlu1 %v5718_v20, %s4697_s13  ;;  %v2005_v45 = vmax.f32 %v1941_v5, 0.0 }
 0x222   : > { %v4417_v33 = vpop.f32.mrf.mxu0 }
 0x223   : > { %v1803_v35 = vadd.f32 %v1719_v57, %v1542_v15  ;;  %v5745_v31 = vpack.c.bf16 %v2005_v45, %v2004_v59  ;;  %v1944_v29 = vadd.f32 %v5515_v51, %v1873_v9  ;;  %v6829_v9 = vld [vmem:[#allocation26_spill] sm:$0xff]  ;;  %v1712_v45 = vsel %vm1697_vm5, %v1681_v4, %v1682_v7  ;;  %v6837_v4 = vld [vmem:[#allocation29_spill] sm:$0xff] }
 0x224   : > { %v1554_v6 = vpop.f32.mrf.mxu0  ;;  %v1687_v38 = vrot.slane %v6837_v4, 1 }
 0x225   : > { %v1874_v19 = vmul.f32 %v5504_v63, %v1803_v35  ;;  %v1555_v32 = vadd.f32 %v1554_v6, %v6822_v53  ;;  %2264 = vrot.lane.b32.xlu1 %v5745_v31, %s4698_s14  ;;  %v2008_v49 = vmax.f32 %v1944_v29, 0.0  ;;  %v6830_v35 = vld [vmem:[#allocation23_spill] sm:$0xff] }
 0x226   : > { %v4418_v39 = vpop.f32.mrf.mxu0  ;;  %v1683_v46 = vrot.slane %v6830_v35, 1 }
 0x227   : > { %v1806_v37 = vadd.f32 %v1716_v18, %v1555_v32  ;;  %v1945_v10 = vadd.f32 %v5515_v51, %v1874_v19  ;;  %v6833_v18 = vld [vmem:[#allocation34_spill] sm:$0xff] }
 0x228   : > { %v1557_v13 = vpop.f32.mrf.mxu0  ;;  %v1686_v39 = vrot.slane %v6833_v18, 1  ;;  %v6842_v18 = vld [vmem:[#allocation38_spill] sm:$0xff] }
 0x229   : > { %v1877_v55 = vmul.f32 %v5504_v63, %v1806_v37  ;;  %v1558_v8 = vadd.f32 %v1557_v13, %v1290_v27  ;;  %2204 = vrot.lane.b32.xlu1 %v5745_v31, %s4697_s13  ;;  %v2009_v28 = vmax.f32 %v1945_v10, 0.0  ;;  %v1711_v37 = vsel %vm1697_vm5, %v1682_v7, %v1683_v46  ;;  %v6835_v27 = vld [vmem:[#allocation33_spill] sm:$0xff] }
 0x22a   : > { %v4421_v17 = vpop.f32.mrf.mxu0  ;;  %v1260_v13 = vrot.slane %v6835_v27, 7  ;;  %v6843_v27 = vld [vmem:[#allocation35_spill] sm:$0xff] }
 0x22b   : > { %v1807_v61 = vadd.f32 %v1715_v2, %v1558_v8  ;;  %v5770_v5 = vpack.c.bf16 %v2009_v28, %v2008_v49  ;;  %v1948_v59 = vadd.f32 %v5515_v51, %v1877_v55  ;;  %v5799_v8 = vpop.permute.xlu0 %2242  ;;  %v6836_v28 = vld [vmem:[#allocation32_spill] sm:$0xff]  ;;  %v1708_v2 = vsel %vm1697_vm5, %v1685_v56, %v1686_v39 }
 0x22c   : > { %v1570_v40 = vpop.f32.mrf.mxu0 }
 0x22d   : > { %v1878_v23 = vmul.f32 %v5504_v63, %v1807_v61  ;;  %v1571_v15 = vadd.f32 %v1570_v40, %v6829_v9  ;;  %2268 = vrot.lane.b32.xlu1 %v5770_v5, %s4698_s14  ;;  %v2012_v32 = vmax.f32 %v1948_v59, 0.0  ;;  %v6839_v40 = vrot.slane %v6838_v3, 7 }
 0x22e   : > { %v4422_v14 = vpop.f32.mrf.mxu0 }
 0x22f   : > { %v1810_v57 = vadd.f32 %v1712_v45, %v1571_v15  ;;  %v1949_v33 = vadd.f32 %v5515_v51, %v1878_v23  ;;  %v1282_v23 = vsel %vm1271_vm4, %v6839_v40, %v1260_v13  ;;  %v5820_v46 = vpop.permute.xlu0 %2182  ;;  %v1691_v13 = vrot.slane %v6843_v27, 1 }
 0x230   : > { %v1573_v6 = vpop.f32.mrf.mxu0 }
 0x231   : > { %v1881_v19 = vmul.f32 %v5504_v63, %v1810_v57  ;;  %v1574_v53 = vadd.f32 %v1573_v6, %v1286_v26  ;;  %2208 = vrot.lane.b32.xlu1 %v5770_v5, %s4697_s13  ;;  %v2013_v29 = vmax.f32 %v1949_v33, 0.0  ;;  %v1690_v57 = vrot.slane %v5475_v21, 1  ;;  %v6840_v26 = vld [vmem:[#allocation37_spill] sm:$0xff] }
 0x232   : > { %v4425_v10 = vpop.f32.mrf.mxu0  ;;  %v1707_v33 = vsel %vm1697_vm5, %v1686_v39, %v1687_v38  ;;  %v1689_v6 = vrot.slane %v6840_v26, 1 }
 0x233   : > { %v1811_v16 = vadd.f32 %v1711_v37, %v1574_v53  ;;  %v5795_v41 = vpack.c.bf16 %v2013_v29, %v2012_v32  ;;  %v1952_v7 = vadd.f32 %v5515_v51, %v1881_v19  ;;  %v6841_v19 = vld [vmem:[#allocation39_spill] sm:$0xff]  ;;  %v1703_v38 = vsel %vm1697_vm5, %v1690_v57, %v1691_v13 }
 0x234   : > { %v1586_v55 = vpop.f32.mrf.mxu0  ;;  %v1264_v53 = vrot.slane %v6841_v19, 7  ;;  %v1704_v39 = vsel %vm1697_vm5, %v1689_v6, %v1690_v57 }
 0x235   : > { %v1882_v49 = vmul.f32 %v5504_v63, %v1811_v16  ;;  %v1587_v62 = vadd.f32 %v1586_v55, %v6836_v28  ;;  %2272 = vrot.lane.b32.xlu1 %v5795_v41, %s4698_s14  ;;  %v2016_v45 = vmax.f32 %v1952_v7, 0.0  ;;  %v1195_v16 = vpop.f32.mrf.mxu1  ;;  %v6844_v55 = vld [vmem:[#allocation36_spill] sm:$0xff]  ;;  %v5839_v7 = vpop.permute.xlu0 %2246 }
 0x236   : > { %v4426_v17 = vpop.f32.mrf.mxu0  ;;  %v1694_v4 = vrot.slane %v1195_v16, 1 }
 0x237   : > { %v1814_v61 = vadd.f32 %v1708_v2, %v1587_v62  ;;  %v1953_v30 = vadd.f32 %v5515_v51, %v1882_v49  ;;  %v6845_v49 = vrot.slane %v6844_v55, 7 }
 0x238   : > { %v1589_v9 = vpop.f32.mrf.mxu0 }
 0x239   : > { %v1885_v15 = vmul.f32 %v5504_v63, %v1814_v61  ;;  %v1590_v59 = vadd.f32 %v1589_v9, %v1282_v23  ;;  %2212 = vrot.lane.b32.xlu1 %v5795_v41, %s4697_s13  ;;  %v2017_v14 = vmax.f32 %v1953_v30, 0.0  ;;  %v1278_v28 = vsel %vm1271_vm4, %v6845_v49, %v1264_v53  ;;  %v6846_v9 = vld [vmem:[#allocation42_spill] sm:$0xff]  ;;  %v5857_v6 = vpop.permute.xlu0 %2186 }
 0x23a   : > { %v4429_v35 = vpop.f32.mrf.mxu0 }
 0x23b   : > { %v1815_v54 = vadd.f32 %v1707_v33, %v1590_v59  ;;  %v5822_v12 = vpack.c.bf16 %v2017_v14, %v2016_v45  ;;  %v1956_v21 = vadd.f32 %v5515_v51, %v1885_v15  ;;  %v1693_v15 = vrot.slane %v6846_v9, 1  ;;  %v6847_v33 = vld [vmem:[#allocation43_spill] sm:$0xff] }
 0x23c   : > { %v1602_v32 = vpop.f32.mrf.mxu0  ;;  %v1268_v59 = vrot.slane %v5490_v47, 7  ;;  %v6848_v47 = vld [vmem:[#allocation40_spill] sm:$0xff] }
 0x23d   : > { %v1886_v29 = vmul.f32 %v5504_v63, %v1815_v54  ;;  %v1603_v37 = vadd.f32 %v1602_v32, %v6842_v18  ;;  %2276 = vrot.lane.b32.xlu1 %v5822_v12, %s4698_s14  ;;  %v2020_v61 = vmax.f32 %v1956_v21, 0.0  ;;  %v1700_v57 = vsel %vm1697_vm5, %v1693_v15, %v1694_v4  ;;  %v5872_v55 = vpop.permute.xlu0 %2250 }
 0x23e   : > { %v4430_v10 = vpop.f32.mrf.mxu0  ;;  %v1695_v32 = vrot.slane %v6848_v47, 1 }
 0x23f   : > { %v1818_v43 = vadd.f32 %v1704_v39, %v1603_v37  ;;  %v1957_v56 = vadd.f32 %v5515_v51, %v1886_v29  ;;  %v6849_v29 = vld [vmem:[#allocation41_spill] sm:$0xff] }
 0x240   : > { %v1605_v62 = vpop.f32.mrf.mxu0  ;;  %v6850_v18 = vrot.slane %v6849_v29, 7 }
 0x241   : > { %v1889_v2 = vmul.f32 %v5504_v63, %v1818_v43  ;;  %v1606_v17 = vadd.f32 %v1605_v62, %v1278_v28  ;;  %2216 = vrot.lane.b32.xlu1 %v5822_v12, %s4697_s13  ;;  %v2021_v30 = vmax.f32 %v1957_v56, 0.0  ;;  %v1699_v56 = vsel %vm1697_vm5, %v1694_v4, %v1695_v32 }
 0x242   : > { %v4433_v3 = vpop.f32.mrf.mxu0  ;;  %v1274_v37 = vsel %vm1271_vm4, %v6850_v18, %v1268_v59 }
 0x243   : > { %v1819_v40 = vadd.f32 %v1703_v38, %v1606_v17  ;;  %v5846_v23 = vpack.c.bf16 %v2021_v30, %v2020_v61  ;;  %v1960_v54 = vadd.f32 %v5515_v51, %v1889_v2  ;;  %v5881_v61 = vpop.permute.xlu0 %2190 }
 0x244   : > { %v1618_v45 = vpop.f32.mrf.mxu0 }
 0x245   : > { %v1890_v14 = vmul.f32 %v5504_v63, %v1819_v40  ;;  %v1619_v35 = vadd.f32 %v1618_v45, %v6847_v33  ;;  %2280 = vrot.lane.b32.xlu1 %v5846_v23, %s4698_s14  ;;  %v2024_v16 = vmax.f32 %v1960_v54, 0.0 }
 0x246   : > { %v4434_v26 = vpop.f32.mrf.mxu0 }
 0x247   : > { %v1822_v19 = vadd.f32 %v1700_v57, %v1619_v35  ;;  %v1961_v53 = vadd.f32 %v5515_v51, %v1890_v14  ;;  %v2255_v15 = vpop.permute.xlu0 %2254  ;;  %v2307_v35 = vsel %vm484_vm1, 0.0|0.0, %v5781_v48 }
 0x248   : > { %v1621_v21 = vpop.f32.mrf.mxu0  ;;  %v5933_v26 = vsel %vm535_vm2, %v2307_v35, %v5799_v8 }
 0x249   : > { %v1893_v39 = vmul.f32 %v5504_v63, %v1822_v19  ;;  %v1622_v10 = vadd.f32 %v1621_v21, %v1274_v37  ;;  %2220 = vrot.lane.b32.xlu1 %v5846_v23, %s4697_s13  ;;  %v2025_v43 = vmax.f32 %v1961_v53, 0.0  ;;  %v2313_v19 = vsel %vm484_vm1, 0.0|0.0, %v5820_v46 }
 0x24a   : > { %v5952_v32 = vsel %vm535_vm2, %v2313_v19, %v5839_v7  ;;  %v2319_v46 = vsel %vm484_vm1, 0.0|0.0, %v5857_v6 }
 0x24b   : > { %v1823_v27 = vadd.f32 %v1699_v56, %v1622_v10  ;;  %v5870_v13 = vpack.c.bf16 %v2025_v43, %v2024_v16  ;;  %v1964_v28 = vadd.f32 %v5515_v51, %v1893_v39  ;;  %v5971_v39 = vsel %vm535_vm2, %v2319_v46, %v5872_v55 }
 0x24c   : > { %v2325_v10 = vsel %vm484_vm1, 0.0|0.0, %v5881_v61 }
 0x24d   : > { %v1894_v49 = vmul.f32 %v5504_v63, %v1823_v27  ;;  %2284 = vrot.lane.b32.xlu1 %v5870_v13, %s4698_s14  ;;  %v2028_v2 = vmax.f32 %v1964_v28, 0.0  ;;  %v2295_v63 = vsel %vm484_vm1, 0, %v5704_v50  ;;  %v2301_v50 = vsel %vm484_vm1, 0.0|0.0, %v5743_v58 }
 0x24e   : > { %v5894_v9 = vsel %vm535_vm2, %v2295_v63, %v5722_v36  ;;  %v2195_v36 = vpop.permute.xlu0 %2194  ;;  %v5914_v33 = vsel %vm535_vm2, %v2301_v50, %v5762_v22  ;;  %v5989_v27 = vsel %vm535_vm2, %v2325_v10, %v2255_v15 }
 0x24f   : > { %v1965_v62 = vadd.f32 %v5515_v51, %v1894_v49  ;;  %v2169_v30 = vpop.permute.xlu1 %2168  ;;  %v3168_v51 = vsel %vm611_vm0, %v5535_v25, 0  ;;  %v2331_v49 = vsel %vm484_vm1, 0.0|0.0, %v2195_v36 }
 0x250   : > { %v2293_v38 = vsel %vm484_vm1, 0, %v2169_v30 }
 0x251   : > { %2224 = vrot.lane.b32.xlu1 %v5870_v13, %s4697_s13  ;;  %v2029_v17 = vmax.f32 %v1965_v62, 0.0 }
 0x252   : > { %v2259_v58 = vpop.permute.xlu0 %2258 }
 0x253   : > { %v2134_v4 = vpack.c.bf16 %v2029_v17, %v2028_v2  ;;  %v6006_v17 = vsel %vm535_vm2, %v2331_v49, %v2259_v58 }
 0x255   : > { %2288 = vrot.lane.b32.xlu1 %v2134_v4, %s4698_s14 }
 0x256   : > { %v2199_v48 = vpop.permute.xlu0 %2198 }
 0x257   : > { %v2233_v3 = vpop.permute.xlu1 %2232  ;;  %v2337_v30 = vsel %vm484_vm1, 0.0|0.0, %v2199_v48 }
 0x258   : > { %v5888_v40 = vsel %vm535_vm2, %v2293_v38, %v2233_v3 }
 0x259   : > { %4437 = vmatprep.mubr.msk.bf16.mxu1 %vm576_vm3, %v5888_v40  ;;  %4503 = vmatprep.mubr.msk.bf16.mxu0 %vm576_vm3, %v5888_v40 }
 0x25a   : > { %2228 = vrot.lane.b32.xlu1 %v2134_v4, %s4697_s13  ;;  %4438 = vmatmul.mubr.msk.bf16.vlgmr.msra.gmra.mxu1 %vm576_vm3, %v5894_v9  ;;  %v2263_v29 = vpop.permute.xlu0 %2262 }
 0x25b   : > { %4504 = vmatmul.mubr.msk.bf16.vlgmr.msra.gmra.mxu0 %vm576_vm3, %v5894_v9  ;;  %4568 = vmatpush3.bf16.msra.mxu1 %v3168_v51  ;;  %v2173_v25 = vpop.permute.xlu1 %2172  ;;  %v6023_v51 = vsel %vm535_vm2, %v2337_v30, %v2263_v29 }
 0x25c   : > { %v2298_v59 = vsel %vm484_vm1, %v5540_v42, %v2173_v25 }
 0x25e   : > { %v2203_v18 = vpop.permute.xlu0 %2202 }
 0x25f   : > { %v2237_v45 = vpop.permute.xlu1 %2236  ;;  %v2343_v25 = vsel %vm484_vm1, 0.0|0.0, %v2203_v18 }
 0x260   : > { %v5910_v14 = vsel %vm535_vm2, %v2298_v59, %v2237_v45 }
 0x261   : > { %4441 = vmatprep.mubr.msk.bf16.mxu1 %vm576_vm3, %v5910_v14  ;;  %4507 = vmatprep.mubr.msk.bf16.mxu0 %vm576_vm3, %v5910_v14 }
 0x262   : > { %4442 = vmatmul.mubr.msk.bf16.gmra.mxu1 %vm576_vm3, %v5914_v33  ;;  %v2267_v6 = vpop.permute.xlu0 %2266 }
 0x263   : > { %4508 = vmatmul.mubr.msk.bf16.gmra.mxu0 %vm576_vm3, %v5914_v33  ;;  %v2177_v42 = vpop.permute.xlu1 %2176  ;;  %v6040_v45 = vsel %vm535_vm2, %v2343_v25, %v2267_v6 }
 0x264   : > { %v2304_v22 = vsel %vm484_vm1, %v5559_v52, %v2177_v42 }
 0x266   : > { %v2207_v55 = vpop.permute.xlu0 %2206 }
 0x267   : > { %v2241_v54 = vpop.permute.xlu1 %2240  ;;  %v2349_v58 = vsel %vm484_vm1, 0.0|0.0, %v2207_v55 }
 0x268   : > { %v5929_v57 = vsel %vm535_vm2, %v2304_v22, %v2241_v54 }
 0x269   : > { %4445 = vmatprep.mubr.msk.bf16.mxu1 %vm576_vm3, %v5929_v57  ;;  %4511 = vmatprep.mubr.msk.bf16.mxu0 %vm576_vm3, %v5929_v57 }
 0x26a   : > { %4446 = vmatmul.mubr.msk.bf16.gmra.mxu1 %vm576_vm3, %v5933_v26  ;;  %v2271_v61 = vpop.permute.xlu0 %2270 }
 0x26b   : > { %4512 = vmatmul.mubr.msk.bf16.gmra.mxu0 %vm576_vm3, %v5933_v26  ;;  %v2181_v52 = vpop.permute.xlu1 %2180  ;;  %v6057_v48 = vsel %vm535_vm2, %v2349_v58, %v2271_v61 }
 0x26c   : > { %v2310_v8 = vsel %vm484_vm1, %v5578_v1, %v2181_v52 }
 0x26e   : > { %v2211_v4 = vpop.permute.xlu0 %2210 }
 0x26f   : > { %v2245_v53 = vpop.permute.xlu1 %2244  ;;  %v2355_v19 = vsel %vm484_vm1, 0.0|0.0, %v2211_v4 }
 0x270   : > { %v5948_v47 = vsel %vm535_vm2, %v2310_v8, %v2245_v53 }
 0x271   : > { %4449 = vmatprep.mubr.msk.bf16.mxu1 %vm576_vm3, %v5948_v47  ;;  %4515 = vmatprep.mubr.msk.bf16.mxu0 %vm576_vm3, %v5948_v47 }
 0x272   : > { %4450 = vmatmul.mubr.msk.bf16.gmra.mxu1 %vm576_vm3, %v5952_v32  ;;  %v2275_v15 = vpop.permute.xlu0 %2274 }
 0x273   : > { %4516 = vmatmul.mubr.msk.bf16.gmra.mxu0 %vm576_vm3, %v5952_v32  ;;  %v2185_v1 = vpop.permute.xlu1 %2184  ;;  %v6074_v46 = vsel %vm535_vm2, %v2355_v19, %v2275_v15 }
 0x274   : > { %v2316_v7 = vsel %vm484_vm1, %v5601_v24, %v2185_v1 }
 0x276   : > { %v2215_v42 = vpop.permute.xlu0 %2214 }
 0x277   : > { %v2249_v37 = vpop.permute.xlu1 %2248 }
 0x278   : > { %v5967_v21 = vsel %vm535_vm2, %v2316_v7, %v2249_v37  ;;  %v2361_v7 = vsel %vm484_vm1, 0.0|0.0, %v2215_v42 }
 0x279   : > { %4453 = vmatprep.mubr.msk.bf16.mxu1 %vm576_vm3, %v5967_v21  ;;  %4519 = vmatprep.mubr.msk.bf16.mxu0 %vm576_vm3, %v5967_v21 }
 0x27a   : > { %4454 = vmatmul.mubr.msk.bf16.gmra.mxu1 %vm576_vm3, %v5971_v39  ;;  %v2279_v52 = vpop.permute.xlu0 %2278 }
 0x27b   : > { %4520 = vmatmul.mubr.msk.bf16.gmra.mxu0 %vm576_vm3, %v5971_v39  ;;  %v2189_v24 = vpop.permute.xlu1 %2188  ;;  %v6091_v10 = vsel %vm535_vm2, %v2361_v7, %v2279_v52 }
 0x27c   : > { %v2322_v16 = vsel %vm484_vm1, %v5624_v44, %v2189_v24 }
 0x27e   : > { %v2219_v8 = vpop.permute.xlu0 %2218 }
 0x27f   : > { %v2253_v43 = vpop.permute.xlu1 %2252 }
 0x280   : > { %v5986_v56 = vsel %vm535_vm2, %v2322_v16, %v2253_v43  ;;  %v2367_v43 = vsel %vm484_vm1, 0.0|0.0, %v2219_v8 }
 0x281   : > { %4457 = vmatprep.mubr.msk.bf16.mxu1 %vm576_vm3, %v5986_v56  ;;  %4523 = vmatprep.mubr.msk.bf16.mxu0 %vm576_vm3, %v5986_v56 }
 0x282   : > { %4458 = vmatmul.mubr.msk.bf16.gmra.mxu1 %vm576_vm3, %v5989_v27  ;;  %v2283_v18 = vpop.permute.xlu0 %2282 }
 0x283   : > { %4524 = vmatmul.mubr.msk.bf16.gmra.mxu0 %vm576_vm3, %v5989_v27  ;;  %v2193_v44 = vpop.permute.xlu1 %2192 }
 0x284   : > { %v2328_v28 = vsel %vm484_vm1, %v5647_v60, %v2193_v44 }
 0x286   : > { %v2223_v16 = vpop.permute.xlu0 %2222 }
 0x287   : > { %v2257_v62 = vpop.permute.xlu1 %2256  ;;  %v2373_v61 = vsel %vm484_vm1, 0.0|0.0, %v2223_v16 }
 0x288   : > { %v6003_v2 = vsel %vm535_vm2, %v2328_v28, %v2257_v62  ;;  %v6108_v28 = vsel %vm535_vm2, %v2367_v43, %v2283_v18 }
 0x289   : > { %4461 = vmatprep.mubr.msk.bf16.mxu1 %vm576_vm3, %v6003_v2  ;;  %4527 = vmatprep.mubr.msk.bf16.mxu0 %vm576_vm3, %v6003_v2 }
 0x28a   : > { %4462 = vmatmul.mubr.msk.bf16.gmra.mxu1 %vm576_vm3, %v6006_v17  ;;  %v2287_v62 = vpop.permute.xlu0 %2286 }
 0x28b   : > { %4528 = vmatmul.mubr.msk.bf16.gmra.mxu0 %vm576_vm3, %v6006_v17  ;;  %v2197_v60 = vpop.permute.xlu1 %2196 }
 0x28c   : > { %v2334_v63 = vsel %vm484_vm1, %v5670_v11, %v2197_v60 }
 0x28e   : > { %v2227_v60 = vpop.permute.xlu0 %2226 }
 0x28f   : > { %v2261_v38 = vpop.permute.xlu1 %2260  ;;  %v2379_v15 = vsel %vm484_vm1, 0.0|0.0, %v2227_v60 }
 0x290   : > { %v6020_v3 = vsel %vm535_vm2, %v2334_v63, %v2261_v38  ;;  %v6125_v38 = vsel %vm535_vm2, %v2373_v61, %v2287_v62 }
 0x291   : > { %4465 = vmatprep.mubr.msk.bf16.mxu1 %vm576_vm3, %v6020_v3  ;;  %4531 = vmatprep.mubr.msk.bf16.mxu0 %vm576_vm3, %v6020_v3 }
 0x292   : > { %4466 = vmatmul.mubr.msk.bf16.gmra.mxu1 %vm576_vm3, %v6023_v51 }
 0x293   : > { %4532 = vmatmul.mubr.msk.bf16.gmra.mxu0 %vm576_vm3, %v6023_v51  ;;  %v2201_v11 = vpop.permute.xlu1 %2200 }
 0x294   : > { %v2340_v50 = vsel %vm484_vm1, %v5693_v0, %v2201_v11  ;;  %v2291_v11 = vpop.permute.xlu0 %2290 }
 0x295   : > { %v6142_v42 = vsel %vm535_vm2, %v2379_v15, %v2291_v11 }
 0x297   : > { %v2265_v36 = vpop.permute.xlu1 %2264 }
 0x298   : > { %v6037_v59 = vsel %vm535_vm2, %v2340_v50, %v2265_v36 }
 0x299   : > { %4469 = vmatprep.mubr.msk.bf16.mxu1 %vm576_vm3, %v6037_v59  ;;  %4535 = vmatprep.mubr.msk.bf16.mxu0 %vm576_vm3, %v6037_v59 }
 0x29a   : > { %4470 = vmatmul.mubr.msk.bf16.gmra.mxu1 %vm576_vm3, %v6040_v45 }
 0x29b   : > { %4536 = vmatmul.mubr.msk.bf16.gmra.mxu0 %vm576_vm3, %v6040_v45  ;;  %v2205_v0 = vpop.permute.xlu1 %2204 }
 0x29c   : > { %v2346_v35 = vsel %vm484_vm1, %v5718_v20, %v2205_v0  ;;  %v2231_v0 = vpop.permute.xlu0 %2230 }
 0x29f   : > { %v2269_v22 = vpop.permute.xlu1 %2268 }
 0x2a0   : > { %v6054_v54 = vsel %vm535_vm2, %v2346_v35, %v2269_v22  ;;  %v2385_v35 = vsel %vm484_vm1, 0.0|0.0, %v2231_v0  ;;  %v6851_v22 = vld [vmem:[#allocation2_spill] sm:$0xff] }
 0x2a1   : > { %4473 = vmatprep.mubr.msk.bf16.mxu1 %vm576_vm3, %v6054_v54  ;;  %4539 = vmatprep.mubr.msk.bf16.mxu0 %vm576_vm3, %v6054_v54 }
 0x2a2   : > { %4474 = vmatmul.mubr.msk.bf16.gmra.mxu1 %vm576_vm3, %v6057_v48 }
 0x2a3   : > { %4540 = vmatmul.mubr.msk.bf16.gmra.mxu0 %vm576_vm3, %v6057_v48  ;;  %v2209_v20 = vpop.permute.xlu1 %2208 }
 0x2a4   : > { %v2352_v53 = vsel %vm484_vm1, %v5745_v31, %v2209_v20  ;;  %v6165_v20 = vsel %vm535_vm2, %v2385_v35, %v6851_v22 }
 0x2a7   : > { %v2273_v29 = vpop.permute.xlu1 %2272 }
 0x2a8   : > { %v6071_v1 = vsel %vm535_vm2, %v2352_v53, %v2273_v29 }
 0x2a9   : > { %4477 = vmatprep.mubr.msk.bf16.mxu1 %vm576_vm3, %v6071_v1  ;;  %4543 = vmatprep.mubr.msk.bf16.mxu0 %vm576_vm3, %v6071_v1 }
 0x2aa   : > { %4478 = vmatmul.mubr.msk.bf16.gmra.mxu1 %vm576_vm3, %v6074_v46 }
 0x2ab   : > { %4544 = vmatmul.mubr.msk.bf16.gmra.mxu0 %vm576_vm3, %v6074_v46  ;;  %v2213_v31 = vpop.permute.xlu1 %2212 }
 0x2ac   : > { %v2358_v37 = vsel %vm484_vm1, %v5770_v5, %v2213_v31 }
 0x2af   : > { %v2277_v24 = vpop.permute.xlu1 %2276 }
 0x2b0   : > { %v6088_v6 = vsel %vm535_vm2, %v2358_v37, %v2277_v24 }
 0x2b1   : > { %4481 = vmatprep.mubr.msk.bf16.mxu1 %vm576_vm3, %v6088_v6  ;;  %4547 = vmatprep.mubr.msk.bf16.mxu0 %vm576_vm3, %v6088_v6 }
 0x2b2   : > { %4482 = vmatmul.mubr.msk.bf16.gmra.mxu1 %vm576_vm3, %v6091_v10 }
 0x2b3   : > { %4548 = vmatmul.mubr.msk.bf16.gmra.mxu0 %vm576_vm3, %v6091_v10  ;;  %v2217_v5 = vpop.permute.xlu1 %2216 }
 0x2b4   : > { %v2364_v55 = vsel %vm484_vm1, %v5795_v41, %v2217_v5 }
 0x2b7   : > { %v2281_v44 = vpop.permute.xlu1 %2280 }
 0x2b8   : > { %v6105_v49 = vsel %vm535_vm2, %v2364_v55, %v2281_v44 }
 0x2b9   : > { %4485 = vmatprep.mubr.msk.bf16.mxu1 %vm576_vm3, %v6105_v49  ;;  %4551 = vmatprep.mubr.msk.bf16.mxu0 %vm576_vm3, %v6105_v49 }
 0x2ba   : > { %4486 = vmatmul.mubr.msk.bf16.gmra.mxu1 %vm576_vm3, %v6108_v28 }
 0x2bb   : > { %4552 = vmatmul.mubr.msk.bf16.gmra.mxu0 %vm576_vm3, %v6108_v28  ;;  %v2221_v41 = vpop.permute.xlu1 %2220 }
 0x2bc   : > { %v2370_v30 = vsel %vm484_vm1, %v5822_v12, %v2221_v41 }
 0x2bf   : > { %v2285_v4 = vpop.permute.xlu1 %2284 }
 0x2c0   : > { %v6122_v63 = vsel %vm535_vm2, %v2370_v30, %v2285_v4 }
 0x2c1   : > { %4489 = vmatprep.mubr.msk.bf16.mxu1 %vm576_vm3, %v6122_v63  ;;  %4555 = vmatprep.mubr.msk.bf16.mxu0 %vm576_vm3, %v6122_v63 }
 0x2c2   : > { %4490 = vmatmul.mubr.msk.bf16.gmra.mxu1 %vm576_vm3, %v6125_v38 }
 0x2c3   : > { %4556 = vmatmul.mubr.msk.bf16.gmra.mxu0 %vm576_vm3, %v6125_v38  ;;  %v2225_v12 = vpop.permute.xlu1 %2224 }
 0x2c4   : > { %v2376_v25 = vsel %vm484_vm1, %v5846_v23, %v2225_v12 }
 0x2c7   : > { %v2289_v50 = vpop.permute.xlu1 %2288 }
 0x2c8   : > { %v6139_v36 = vsel %vm535_vm2, %v2376_v25, %v2289_v50 }
 0x2c9   : > { %4493 = vmatprep.mubr.msk.bf16.mxu1 %vm576_vm3, %v6139_v36  ;;  %4559 = vmatprep.mubr.msk.bf16.mxu0 %vm576_vm3, %v6139_v36 }
 0x2ca   : > { %4494 = vmatmul.mubr.msk.bf16.gmra.mxu1 %vm576_vm3, %v6142_v42 }
 0x2cb   : > { %4560 = vmatmul.mubr.msk.bf16.gmra.mxu0 %vm576_vm3, %v6142_v42 }
 0x2cc   : > { %v2229_v23 = vpop.permute.xlu1 %2228 }
 0x2cd   : > { %v2382_v58 = vsel %vm484_vm1, %v5870_v13, %v2229_v23 }
 0x2ce   : > { %v6157_v52 = vsel %vm535_vm2, %v2382_v58, %v6851_v22 }
 0x2cf   : > { %4497 = vmatprep.mubr.msk.bf16.mxu1 %vm576_vm3, %v6157_v52  ;;  %4563 = vmatprep.mubr.msk.bf16.mxu0 %vm576_vm3, %v6157_v52 }
 0x2d2   : > { %4498 = vmatmul.mubr.msk.bf16.gmra.mxu1 %vm576_vm3, %v6165_v20 }
 0x2d3   : > { %4564 = vmatmul.mubr.msk.bf16.gmra.mxu0 %vm576_vm3, %v6165_v20  ;;  %4569 = vmatprep.mubr.msk.bf16.mxu1 %vm576_vm3, %v5888_v40 }
 0x2da   : > { %4570 = vmatmul.mubr.msk.bf16.vlgmr.msra.gmra.mxu1 %vm576_vm3, %v5894_v9 }
 0x2db   : > { %4573 = vmatprep.mubr.msk.bf16.mxu1 %vm576_vm3, %v5910_v14 }
 0x2e2   : > { %4574 = vmatmul.mubr.msk.bf16.gmra.mxu1 %vm576_vm3, %v5914_v33 }
 0x2e3   : > { %4577 = vmatprep.mubr.msk.bf16.mxu1 %vm576_vm3, %v5929_v57 }
 0x2ea   : > { %4578 = vmatmul.mubr.msk.bf16.gmra.mxu1 %vm576_vm3, %v5933_v26 }
 0x2eb   : > { %4581 = vmatprep.mubr.msk.bf16.mxu1 %vm576_vm3, %v5948_v47 }
 0x2f2   : > { %4582 = vmatmul.mubr.msk.bf16.gmra.mxu1 %vm576_vm3, %v5952_v32 }
 0x2f3   : > { %4585 = vmatprep.mubr.msk.bf16.mxu1 %vm576_vm3, %v5967_v21 }
 0x2fa   : > { %4586 = vmatmul.mubr.msk.bf16.gmra.mxu1 %vm576_vm3, %v5971_v39 }
 0x2fb   : > { %4589 = vmatprep.mubr.msk.bf16.mxu1 %vm576_vm3, %v5986_v56 }
 0x302   : > { %4590 = vmatmul.mubr.msk.bf16.gmra.mxu1 %vm576_vm3, %v5989_v27 }
 0x303   : > { %4593 = vmatprep.mubr.msk.bf16.mxu1 %vm576_vm3, %v6003_v2 }
 0x30a   : > { %4594 = vmatmul.mubr.msk.bf16.gmra.mxu1 %vm576_vm3, %v6006_v17 }
 0x30b   : > { %4597 = vmatprep.mubr.msk.bf16.mxu1 %vm576_vm3, %v6020_v3 }
 0x312   : > { %4598 = vmatmul.mubr.msk.bf16.gmra.mxu1 %vm576_vm3, %v6023_v51 }
 0x313   : > { %4601 = vmatprep.mubr.msk.bf16.mxu1 %vm576_vm3, %v6037_v59 }
 0x31a   : > { %v4439_v13 = vpop.f32.mrf.mxu1  ;;  %4602 = vmatmul.mubr.msk.bf16.gmra.mxu1 %vm576_vm3, %v6040_v45 }
 0x31b   : > { %v4505_v40 = vpop.f32.mrf.mxu0  ;;  %4605 = vmatprep.mubr.msk.bf16.mxu1 %vm576_vm3, %v6054_v54 }
 0x31c   : > { %v6209_v9 = vpop.f32.mrf.mxu1  ;;  %v3429_v39 = vrot.slane %v4505_v40, 1 }
 0x31d   : > { %v2843_v14 = vpop.f32.mrf.mxu0  ;;  %v6753_v47 = vrot.slane %v6209_v9, 7 }
 0x31e   : > { %v4440_v33 = vpop.f32.mrf.mxu1  ;;  %v3427_v56 = vrot.slane %v2843_v14, 1 }
 0x31f   : > { %v4506_v57 = vpop.f32.mrf.mxu0  ;;  %v3084_v54 = vrot.slane %v4440_v33, 7 }
 0x320   : > { %v2559_v26 = vpop.f32.mrf.mxu1 }
 0x321   : > { %v3083_v32 = vrot.slane %v2559_v26, 7  ;;  %v2846_v21 = vpop.f32.mrf.mxu0 }
 0x322   : > { %v3428_v27 = vrot.slane %v2846_v21, 1  ;;  %v4443_v2 = vpop.f32.mrf.mxu1  ;;  %4606 = vmatmul.mubr.msk.bf16.gmra.mxu1 %vm576_vm3, %v6057_v48 }
 0x323   : > { %v4509_v17 = vpop.f32.mrf.mxu0  ;;  %4609 = vmatprep.mubr.msk.bf16.mxu1 %vm576_vm3, %v6071_v1  ;;  %v6220_v3 = vsel %vm1271_vm4, %v6753_v47, %v3083_v32 }
 0x324   : > { %v2571_v51 = vpop.f32.mrf.mxu1  ;;  %v6224_v59 = vsel %vm1697_vm5, %v3427_v56, %v3428_v27  ;;  %v6228_v45 = vsel %vm1697_vm5, %v3428_v27, %v3429_v39  ;;  %v3432_v7 = vrot.slane %v4509_v17, 1 }
 0x325   : > { %v3085_v48 = vrot.slane %v2571_v51, 7  ;;  %v2858_v19 = vpop.f32.mrf.mxu0 }
 0x326   : > { %v4444_v8 = vpop.f32.mrf.mxu1  ;;  %v3430_v37 = vrot.slane %v2858_v19, 1 }
 0x327   : > { %v4510_v53 = vpop.f32.mrf.mxu0  ;;  %v6232_v29 = vsel %vm1271_vm4, %v3084_v54, %v3085_v48  ;;  %v3087_v41 = vrot.slane %v4444_v8, 7 }
 0x328   : > { %v2574_v1 = vpop.f32.mrf.mxu1 }
 0x329   : > { %v3086_v31 = vrot.slane %v2574_v1, 7  ;;  %v2861_v18 = vpop.f32.mrf.mxu0 }
 0x32a   : > { %v3431_v24 = vrot.slane %v2861_v18, 1  ;;  %v4447_v16 = vpop.f32.mrf.mxu1  ;;  %4610 = vmatmul.mubr.msk.bf16.gmra.mxu1 %vm576_vm3, %v6074_v46 }
 0x32b   : > { %v4513_v5 = vpop.f32.mrf.mxu0  ;;  %4613 = vmatprep.mubr.msk.bf16.mxu1 %vm576_vm3, %v6088_v6  ;;  %v6240_v43 = vsel %vm1271_vm4, %v3085_v48, %v3086_v31 }
 0x32c   : > { %v2586_v55 = vpop.f32.mrf.mxu1  ;;  %v6244_v44 = vsel %vm1697_vm5, %v3430_v37, %v3431_v24  ;;  %v6248_v62 = vsel %vm1697_vm5, %v3431_v24, %v3432_v7  ;;  %v3435_v15 = vrot.slane %v4513_v5, 1 }
 0x32d   : > { %v3088_v61 = vrot.slane %v2586_v55, 7  ;;  %v2873_v46 = vpop.f32.mrf.mxu0 }
 0x32e   : > { %v4448_v60 = vpop.f32.mrf.mxu1  ;;  %v3433_v25 = vrot.slane %v2873_v46, 1 }
 0x32f   : > { %v4514_v30 = vpop.f32.mrf.mxu0  ;;  %v6252_v6 = vsel %vm1271_vm4, %v3087_v41, %v3088_v61  ;;  %v3090_v40 = vrot.slane %v4448_v60, 7 }
 0x330   : > { %v2589_v4 = vpop.f32.mrf.mxu1 }
 0x331   : > { %v3089_v12 = vrot.slane %v2589_v4, 7  ;;  %v2876_v11 = vpop.f32.mrf.mxu0 }
 0x332   : > { %v3434_v50 = vrot.slane %v2876_v11, 1  ;;  %v4451_v0 = vpop.f32.mrf.mxu1  ;;  %4614 = vmatmul.mubr.msk.bf16.gmra.mxu1 %vm576_vm3, %v6091_v10 }
 0x333   : > { %v4517_v23 = vpop.f32.mrf.mxu0  ;;  %4617 = vmatprep.mubr.msk.bf16.mxu1 %vm576_vm3, %v6105_v49  ;;  %v6260_v58 = vsel %vm1271_vm4, %v3088_v61, %v3089_v12 }
 0x334   : > { %v2601_v35 = vpop.f32.mrf.mxu1  ;;  %v6264_v22 = vsel %vm1697_vm5, %v3433_v25, %v3434_v50  ;;  %v6268_v13 = vsel %vm1697_vm5, %v3434_v50, %v3435_v15  ;;  %v3438_v39 = vrot.slane %v4517_v23, 1 }
 0x335   : > { %v3091_v14 = vrot.slane %v2601_v35, 7  ;;  %v2888_v10 = vpop.f32.mrf.mxu0 }
 0x336   : > { %v4452_v33 = vpop.f32.mrf.mxu1  ;;  %v3436_v56 = vrot.slane %v2888_v10, 1 }
 0x337   : > { %v4518_v57 = vpop.f32.mrf.mxu0  ;;  %v6272_v49 = vsel %vm1271_vm4, %v3090_v40, %v3091_v14  ;;  %v3093_v8 = vrot.slane %v4452_v33, 7 }
 0x338   : > { %v2604_v26 = vpop.f32.mrf.mxu1 }
 0x339   : > { %v3092_v32 = vrot.slane %v2604_v26, 7  ;;  %v2891_v21 = vpop.f32.mrf.mxu0 }
 0x33a   : > { %v3437_v27 = vrot.slane %v2891_v21, 1  ;;  %v4455_v2 = vpop.f32.mrf.mxu1  ;;  %4618 = vmatmul.mubr.msk.bf16.gmra.mxu1 %vm576_vm3, %v6108_v28 }
 0x33b   : > { %v4521_v17 = vpop.f32.mrf.mxu0  ;;  %4621 = vmatprep.mubr.msk.bf16.mxu1 %vm576_vm3, %v6122_v63  ;;  %v6280_v51 = vsel %vm1271_vm4, %v3091_v14, %v3092_v32 }
 0x33c   : > { %v2616_v54 = vpop.f32.mrf.mxu1  ;;  %v6284_v48 = vsel %vm1697_vm5, %v3436_v56, %v3437_v27  ;;  %v6288_v19 = vsel %vm1697_vm5, %v3437_v27, %v3438_v39  ;;  %v3441_v24 = vrot.slane %v4521_v17, 1 }
 0x33d   : > { %v3094_v53 = vrot.slane %v2616_v54, 7  ;;  %v2903_v28 = vpop.f32.mrf.mxu0 }
 0x33e   : > { %v4456_v1 = vpop.f32.mrf.mxu1  ;;  %v3439_v16 = vrot.slane %v2903_v28, 1 }
 0x33f   : > { %v4522_v31 = vpop.f32.mrf.mxu0  ;;  %v6292_v63 = vsel %vm1271_vm4, %v3093_v8, %v3094_v53  ;;  %v3096_v4 = vrot.slane %v4456_v1, 7 }
 0x340   : > { %v2619_v18 = vpop.f32.mrf.mxu1 }
 0x341   : > { %v3095_v7 = vrot.slane %v2619_v18, 7  ;;  %v2906_v37 = vpop.f32.mrf.mxu0 }
 0x342   : > { %v3440_v5 = vrot.slane %v2906_v37, 1  ;;  %v4459_v55 = vpop.f32.mrf.mxu1  ;;  %4622 = vmatmul.mubr.msk.bf16.gmra.mxu1 %vm576_vm3, %v6125_v38 }
 0x343   : > { %v4525_v41 = vpop.f32.mrf.mxu0  ;;  %4625 = vmatprep.mubr.msk.bf16.mxu1 %vm576_vm3, %v6139_v36  ;;  %v6300_v61 = vsel %vm1271_vm4, %v3094_v53, %v3095_v7 }
 0x344   : > { %v2631_v46 = vpop.f32.mrf.mxu1  ;;  %v6304_v60 = vsel %vm1697_vm5, %v3439_v16, %v3440_v5  ;;  %v6308_v30 = vsel %vm1697_vm5, %v3440_v5, %v3441_v24  ;;  %v3444_v23 = vrot.slane %v4525_v41, 1 }
 0x345   : > { %v3097_v12 = vrot.slane %v2631_v46, 7  ;;  %v2918_v38 = vpop.f32.mrf.mxu0 }
 0x346   : > { %v4460_v11 = vpop.f32.mrf.mxu1  ;;  %v3442_v35 = vrot.slane %v2918_v38, 1 }
 0x347   : > { %v4526_v15 = vpop.f32.mrf.mxu0  ;;  %v6312_v36 = vsel %vm1271_vm4, %v3096_v4, %v3097_v12  ;;  %v3099_v21 = vrot.slane %v4460_v11, 7 }
 0x348   : > { %v2634_v25 = vpop.f32.mrf.mxu1 }
 0x349   : > { %v3098_v50 = vrot.slane %v2634_v25, 7  ;;  %v2921_v0 = vpop.f32.mrf.mxu0 }
 0x34a   : > { %v3443_v40 = vrot.slane %v2921_v0, 1  ;;  %v4463_v14 = vpop.f32.mrf.mxu1  ;;  %4626 = vmatmul.mubr.msk.bf16.gmra.mxu1 %vm576_vm3, %v6142_v42 }
 0x34b   : > { %v4529_v10 = vpop.f32.mrf.mxu0  ;;  %4629 = vmatprep.mubr.msk.bf16.mxu1 %vm576_vm3, %v6157_v52  ;;  %v6320_v33 = vsel %vm1271_vm4, %v3097_v12, %v3098_v50 }
 0x34c   : > { %v2646_v57 = vpop.f32.mrf.mxu1  ;;  %v6324_v26 = vsel %vm1697_vm5, %v3442_v35, %v3443_v40  ;;  %v6328_v32 = vsel %vm1697_vm5, %v3443_v40, %v3444_v23  ;;  %v3447_v8 = vrot.slane %v4529_v10, 1 }
 0x34d   : > { %v3100_v39 = vrot.slane %v2646_v57, 7  ;;  %v2933_v42 = vpop.f32.mrf.mxu0 }
 0x34e   : > { %v4464_v56 = vpop.f32.mrf.mxu1  ;;  %v3445_v53 = vrot.slane %v2933_v42, 1 }
 0x34f   : > { %v4530_v27 = vpop.f32.mrf.mxu0  ;;  %v6332_v52 = vsel %vm1271_vm4, %v3099_v21, %v3100_v39  ;;  %v3102_v16 = vrot.slane %v4464_v56, 7 }
 0x350   : > { %v2649_v2 = vpop.f32.mrf.mxu1 }
 0x351   : > { %v3101_v17 = vrot.slane %v2649_v2, 7  ;;  %v2936_v54 = vpop.f32.mrf.mxu0 }
 0x352   : > { %v3446_v28 = vrot.slane %v2936_v54, 1  ;;  %v4467_v1 = vpop.f32.mrf.mxu1  ;;  %4630 = vmatmul.mubr.msk.bf16.gmra.mxu1 %vm576_vm3, %v6165_v20 }
 0x353   : > { %v4533_v31 = vpop.f32.mrf.mxu0  ;;  %v6338_v18 = vsel %vm1271_vm4, %v3100_v39, %v3101_v17 }
 0x354   : > { %v2661_v7 = vpop.f32.mrf.mxu1  ;;  %v6342_v37 = vsel %vm1697_vm5, %v3445_v53, %v3446_v28  ;;  %v6346_v24 = vsel %vm1697_vm5, %v3446_v28, %v3447_v8  ;;  %v3450_v11 = vrot.slane %v4533_v31, 1 }
 0x355   : > { %v3103_v5 = vrot.slane %v2661_v7, 7  ;;  %v2948_v55 = vpop.f32.mrf.mxu0 }
 0x356   : > { %v4468_v41 = vpop.f32.mrf.mxu1  ;;  %v3448_v15 = vrot.slane %v2948_v55, 1 }
 0x357   : > { %v4534_v46 = vpop.f32.mrf.mxu0  ;;  %v6350_v20 = vsel %vm1271_vm4, %v3102_v16, %v3103_v5  ;;  %v3105_v10 = vrot.slane %v4468_v41, 7 }
 0x358   : > { %v2664_v4 = vpop.f32.mrf.mxu1 }
 0x359   : > { %v3104_v12 = vrot.slane %v2664_v4, 7  ;;  %v2951_v38 = vpop.f32.mrf.mxu0 }
 0x35a   : > { %v3449_v25 = vrot.slane %v2951_v38, 1  ;;  %v4471_v50 = vpop.f32.mrf.mxu1 }
 0x35b   : > { %v4537_v0 = vpop.f32.mrf.mxu0  ;;  %v6354_v23 = vsel %vm1271_vm4, %v3103_v5, %v3104_v12 }
 0x35c   : > { %v2676_v35 = vpop.f32.mrf.mxu1  ;;  %v6358_v40 = vsel %vm1697_vm5, %v3448_v15, %v3449_v25  ;;  %v6362_v14 = vsel %vm1697_vm5, %v3449_v25, %v3450_v11  ;;  %v3453_v54 = vrot.slane %v4537_v0, 1 }
 0x35d   : > { %v3106_v57 = vrot.slane %v2676_v35, 7  ;;  %v2963_v21 = vpop.f32.mrf.mxu0 }
 0x35e   : > { %v4472_v39 = vpop.f32.mrf.mxu1  ;;  %v3451_v8 = vrot.slane %v2963_v21, 1 }
 0x35f   : > { %v4538_v42 = vpop.f32.mrf.mxu0  ;;  %v6366_v56 = vsel %vm1271_vm4, %v3105_v10, %v3106_v57  ;;  %v3108_v55 = vrot.slane %v4472_v39, 7 }
 0x360   : > { %v2679_v27 = vpop.f32.mrf.mxu1 }
 0x361   : > { %v3107_v2 = vrot.slane %v2679_v27, 7  ;;  %v2966_v17 = vpop.f32.mrf.mxu0 }
 0x362   : > { %v3452_v53 = vrot.slane %v2966_v17, 1  ;;  %v4475_v28 = vpop.f32.mrf.mxu1 }
 0x363   : > { %v4541_v1 = vpop.f32.mrf.mxu0  ;;  %v6370_v31 = vsel %vm1271_vm4, %v3106_v57, %v3107_v2 }
 0x364   : > { %v2691_v7 = vpop.f32.mrf.mxu1  ;;  %v6374_v16 = vsel %vm1697_vm5, %v3451_v8, %v3452_v53  ;;  %v6378_v5 = vsel %vm1697_vm5, %v3452_v53, %v3453_v54  ;;  %v3456_v50 = vrot.slane %v4541_v1, 1 }
 0x365   : > { %v3109_v41 = vrot.slane %v2691_v7, 7  ;;  %v2978_v46 = vpop.f32.mrf.mxu0 }
 0x366   : > { %v4476_v4 = vpop.f32.mrf.mxu1  ;;  %v3454_v0 = vrot.slane %v2978_v46, 1 }
 0x367   : > { %v4542_v12 = vpop.f32.mrf.mxu0  ;;  %v6382_v38 = vsel %vm1271_vm4, %v3108_v55, %v3109_v41  ;;  %v3111_v2 = vrot.slane %v4476_v4, 7 }
 0x368   : > { %v2694_v11 = vpop.f32.mrf.mxu1 }
 0x369   : > { %v3110_v15 = vrot.slane %v2694_v11, 7  ;;  %v2981_v25 = vpop.f32.mrf.mxu0 }
 0x36a   : > { %v3455_v35 = vrot.slane %v2981_v25, 1  ;;  %v4479_v10 = vpop.f32.mrf.mxu1 }
 0x36b   : > { %v4545_v57 = vpop.f32.mrf.mxu0  ;;  %v6386_v21 = vsel %vm1271_vm4, %v3109_v41, %v3110_v15 }
 0x36c   : > { %v2706_v39 = vpop.f32.mrf.mxu1  ;;  %v6390_v42 = vsel %vm1697_vm5, %v3454_v0, %v3455_v35  ;;  %v6394_v27 = vsel %vm1697_vm5, %v3455_v35, %v3456_v50  ;;  %v3459_v41 = vrot.slane %v4545_v57, 1 }
 0x36d   : > { %v3112_v17 = vrot.slane %v2706_v39, 7  ;;  %v2993_v54 = vpop.f32.mrf.mxu0 }
 0x36e   : > { %v4480_v8 = vpop.f32.mrf.mxu1  ;;  %v3457_v46 = vrot.slane %v2993_v54, 1 }
 0x36f   : > { %v4546_v53 = vpop.f32.mrf.mxu0  ;;  %v6398_v28 = vsel %vm1271_vm4, %v3111_v2, %v3112_v17  ;;  %v3114_v35 = vrot.slane %v4480_v8, 7 }
 0x370   : > { %v2709_v1 = vpop.f32.mrf.mxu1 }
 0x371   : > { %v3113_v7 = vrot.slane %v2709_v1, 7  ;;  %v2996_v55 = vpop.f32.mrf.mxu0 }
 0x372   : > { %v3458_v12 = vrot.slane %v2996_v55, 1  ;;  %v4483_v11 = vpop.f32.mrf.mxu1 }
 0x373   : > { %v4549_v15 = vpop.f32.mrf.mxu0  ;;  %v6402_v25 = vsel %vm1271_vm4, %v3112_v17, %v3113_v7 }
 0x374   : > { %v2721_v4 = vpop.f32.mrf.mxu1  ;;  %v6406_v50 = vsel %vm1697_vm5, %v3457_v46, %v3458_v12  ;;  %v6410_v0 = vsel %vm1697_vm5, %v3458_v12, %v3459_v41  ;;  %v3462_v7 = vrot.slane %v4549_v15, 1 }
 0x375   : > { %6852 = vst [vmem:[#allocation4_spill] sm:$0xff] %v6410_v0  ;;  %v3115_v10 = vrot.slane %v2721_v4, 7  ;;  %v3008_v57 = vpop.f32.mrf.mxu0 }
 0x376   : > { %v4484_v39 = vpop.f32.mrf.mxu1  ;;  %v3460_v55 = vrot.slane %v3008_v57, 1 }
 0x377   : > { %v4550_v2 = vpop.f32.mrf.mxu0  ;;  %v6414_v54 = vsel %vm1271_vm4, %v3114_v35, %v3115_v10  ;;  %v3117_v35 = vrot.slane %v4484_v39, 7 }
 0x378   : > { %6853 = vst [vmem:[#allocation10_spill] sm:$0xff] %v6414_v54  ;;  %v2724_v17 = vpop.f32.mrf.mxu1 }
 0x379   : > { %v3116_v53 = vrot.slane %v2724_v17, 7  ;;  %v3011_v1 = vpop.f32.mrf.mxu0 }
 0x37a   : > { %v3461_v46 = vrot.slane %v3011_v1, 1  ;;  %v4487_v11 = vpop.f32.mrf.mxu1 }
 0x37b   : > { %v4553_v47 = vpop.f32.mrf.mxu0  ;;  %v6418_v41 = vsel %vm1271_vm4, %v3115_v10, %v3116_v53 }
 0x37c   : > { %6854 = vst [vmem:[#allocation7_spill] sm:$0xff] %v6418_v41  ;;  %v2736_v8 = vpop.f32.mrf.mxu1  ;;  %v6422_v12 = vsel %vm1697_vm5, %v3460_v55, %v3461_v46  ;;  %v6426_v4 = vsel %vm1697_vm5, %v3461_v46, %v3462_v7  ;;  %v3465_v41 = vrot.slane %v4553_v47, 1 }
 0x37d   : > { %6855 = vst [vmem:[#allocation9_spill] sm:$0xff] %v6422_v12  ;;  %6856 = vst [vmem:[#allocation8_spill] sm:$0xff] %v6426_v4  ;;  %v3118_v2 = vrot.slane %v2736_v8, 7  ;;  %v3023_v15 = vpop.f32.mrf.mxu0 }
 0x37e   : > { %v4488_v57 = vpop.f32.mrf.mxu1  ;;  %v3463_v54 = vrot.slane %v3023_v15, 1 }
 0x37f   : > { %v4554_v17 = vpop.f32.mrf.mxu0  ;;  %v6430_v1 = vsel %vm1271_vm4, %v3117_v35, %v3118_v2  ;;  %v3120_v35 = vrot.slane %v4488_v57, 7 }
 0x380   : > { %6857 = vst [vmem:[#allocation5_spill] sm:$0xff] %v6430_v1  ;;  %v2739_v10 = vpop.f32.mrf.mxu1 }
 0x381   : > { %v3119_v53 = vrot.slane %v2739_v10, 7  ;;  %v3026_v11 = vpop.f32.mrf.mxu0 }
 0x382   : > { %v3464_v55 = vrot.slane %v3026_v11, 1  ;;  %v4491_v12 = vpop.f32.mrf.mxu1 }
 0x383   : > { %v4557_v0 = vpop.f32.mrf.mxu0  ;;  %v6434_v7 = vsel %vm1271_vm4, %v3118_v2, %v3119_v53 }
 0x384   : > { %6858 = vst [vmem:[#allocation6_spill] sm:$0xff] %v6434_v7  ;;  %v2751_v39 = vpop.f32.mrf.mxu1  ;;  %v6438_v46 = vsel %vm1697_vm5, %v3463_v54, %v3464_v55  ;;  %v6442_v8 = vsel %vm1697_vm5, %v3464_v55, %v3465_v41  ;;  %v3468_v7 = vrot.slane %v4557_v0, 1 }
 0x385   : > { %6859 = vst [vmem:[#allocation16_spill] sm:$0xff] %v6438_v46  ;;  %6860 = vst [vmem:[#allocation13_spill] sm:$0xff] %v6442_v8  ;;  %v3121_v17 = vrot.slane %v2751_v39, 7  ;;  %v3038_v47 = vpop.f32.mrf.mxu0 }
 0x386   : > { %v4492_v15 = vpop.f32.mrf.mxu1  ;;  %v3466_v1 = vrot.slane %v3038_v47, 1 }
 0x387   : > { %v4558_v10 = vpop.f32.mrf.mxu0  ;;  %v6446_v12 = vsel %vm1271_vm4, %v3120_v35, %v3121_v17  ;;  %v3123_v35 = vrot.slane %v4492_v15, 7 }
 0x388   : > { %6861 = vst [vmem:[#allocation15_spill] sm:$0xff] %v6446_v12  ;;  %v2754_v2 = vpop.f32.mrf.mxu1 }
 0x389   : > { %v3122_v53 = vrot.slane %v2754_v2, 7  ;;  %v3041_v11 = vpop.f32.mrf.mxu0 }
 0x38a   : > { %v3467_v54 = vrot.slane %v3041_v11, 1  ;;  %v4495_v46 = vpop.f32.mrf.mxu1 }
 0x38b   : > { %v4561_v4 = vpop.f32.mrf.mxu0  ;;  %v6450_v41 = vsel %vm1271_vm4, %v3121_v17, %v3122_v53 }
 0x38c   : > { %6862 = vst [vmem:[#allocation14_spill] sm:$0xff] %v6450_v41  ;;  %v2766_v57 = vpop.f32.mrf.mxu1  ;;  %v6454_v55 = vsel %vm1697_vm5, %v3466_v1, %v3467_v54  ;;  %v6458_v39 = vsel %vm1697_vm5, %v3467_v54, %v3468_v7  ;;  %v3471_v41 = vrot.slane %v4561_v4, 1 }
 0x38d   : > { %6863 = vst [vmem:[#allocation11_spill] sm:$0xff] %v6454_v55  ;;  %v3124_v10 = vrot.slane %v2766_v57, 7  ;;  %v3053_v0 = vpop.f32.mrf.mxu0 }
 0x38e   : > { %v4496_v47 = vpop.f32.mrf.mxu1  ;;  %v3469_v12 = vrot.slane %v3053_v0, 1 }
 0x38f   : > { %v4562_v2 = vpop.f32.mrf.mxu0  ;;  %v6462_v46 = vsel %vm1271_vm4, %v3123_v35, %v3124_v10  ;;  %v3126_v35 = vrot.slane %v4496_v47, 7  ;;  %v6866_v47 = vrot.slane %v6209_v9, 7  ;;  %v4673_v9 = vld [vmem:[%s4768_s12] sm:$0xff]  }
 0x390   : > { %v2769_v17 = vpop.f32.mrf.mxu1 }
 0x391   : > { %v3125_v53 = vrot.slane %v2769_v17, 7  ;;  %v3056_v11 = vpop.f32.mrf.mxu0 }
 0x392   : > { %v3470_v1 = vrot.slane %v3056_v11, 1  ;;  %v4499_v55 = vpop.f32.mrf.mxu1 }
 0x393   : > { %v6464_v8 = vpop.f32.mrf.mxu0  ;;  %v6468_v7 = vsel %vm1271_vm4, %v3124_v10, %v3125_v53 }
 0x394   : > { %6864 = vst [vmem:[#allocation12_spill] sm:$0xff] %v6464_v8  ;;  %v2781_v15 = vpop.f32.mrf.mxu1  ;;  %v6472_v54 = vsel %vm1697_vm5, %v3469_v12, %v3470_v1  ;;  %v6476_v57 = vsel %vm1697_vm5, %v3470_v1, %v3471_v41 }
 0x395   : > { %v3127_v4 = vrot.slane %v2781_v15, 7  ;;  %v6478_v0 = vpop.f32.mrf.mxu0 }
 0x396   : > { %v4500_v55 = vpop.f32.mrf.mxu1 }
 0x397   : > { %v4566_v2 = vpop.f32.mrf.mxu0  ;;  %v6482_v10 = vsel %vm1271_vm4, %v3126_v35, %v3127_v4  ;;  %v3129_v17 = vrot.slane %v4500_v55, 7  ;;  %v6495_v35 = vld [vmem:[%s6727_s5] ss:$0 sm:$0xff] }
 0x398   : > { %v2784_v53 = vpop.f32.mrf.mxu1 }
 0x399   : > { %v3128_v11 = vrot.slane %v2784_v53, 7  ;;  %v3161_v1 = vsel %vm1271_vm4, %v3129_v17, %v6866_v47 }
 0x39a   : > { %v4571_v12 = vpop.f32.mrf.mxu1 }
 0x39b   : > { %v6486_v41 = vsel %vm1271_vm4, %v3127_v4, %v3128_v11  ;;  %v6501_v4 = vld [vmem:[%s6728_s6] ss:$0 sm:$0xff]  ;;  %v3539_v12 = vunpack.c.l.bf16 %v4673_v9 }
 0x39c   : > { %6865 = vst [vmem:[#allocation22_spill] sm:$0xff] %v6486_v41  ;;  %v3204_v15 = vpop.f32.mrf.mxu1  ;;  %v3540_v41 = vunpack.c.h.bf16 %v4673_v9 }
 0x39d   : > { %v3205_v2 = vadd.f32 %v3204_v15, %v3161_v1 }
 0x39e   : > { %v4572_v55 = vpop.f32.mrf.mxu1 }
 0x39f   : > { %v3507_v53 = vadd.f32 %v6224_v59, %v3205_v2 }
 0x3a0   : > { %v3207_v11 = vpop.f32.mrf.mxu1 }
 0x3a1   : > { %v3578_v17 = vmul.f32 %v6495_v35, %v3507_v53  ;;  %v3208_v47 = vadd.f32 %v3207_v11, %v6220_v3 }
 0x3a2   : > { %v4575_v1 = vpop.f32.mrf.mxu1 }
 0x3a3   : > { %v3617_v15 = vadd.f32 %v6501_v4, %v3578_v17  ;;  %v3508_v55 = vadd.f32 %v6228_v45, %v3208_v47 }
 0x3a4   : > { %v3218_v59 = vpop.f32.mrf.mxu1 }
 0x3a5   : > { %v3649_v2 = vadd.f32 %v3617_v15, %v3539_v12  ;;  %v3579_v8 = vmul.f32 %v6495_v35, %v3508_v55  ;;  %v3219_v34 = vadd.f32 %v3218_v59, %v6232_v29  ;;  %v4674_v12 = vld [vmem:[%s4768_s12 + $0x8] sm:$0xff]  }
 0x3a6   : > { %v4576_v3 = vpop.f32.mrf.mxu1  ;;  %v3541_v47 = vunpack.c.l.bf16 %v4674_v12 }
 0x3a7   : > { %v3681_v53 = vmax.f32 %v3649_v2, 0.0  ;;  %v3618_v11 = vadd.f32 %v6501_v4, %v3579_v8  ;;  %v3509_v45 = vadd.f32 %v6244_v44, %v3219_v34  ;;  %v3542_v44 = vunpack.c.h.bf16 %v4674_v12 }
 0x3a8   : > { %v3221_v17 = vpop.f32.mrf.mxu1 }
 0x3a9   : > { %3713 = vst.msk [vmem:[%s6514_s11] sm:$0xff] %vm484_vm1, %v3681_v53  ;;  %v3650_v9 = vadd.f32 %v3618_v11, %v3540_v41  ;;  %v3580_v29 = vmul.f32 %v6495_v35, %v3509_v45  ;;  %v3222_v1 = vadd.f32 %v3221_v17, %v6240_v43 }
 0x3aa   : > { %v4579_v15 = vpop.f32.mrf.mxu1 }
 0x3ab   : > { %v3682_v55 = vmax.f32 %v3650_v9, 0.0  ;;  %v3619_v59 = vadd.f32 %v6501_v4, %v3580_v29  ;;  %v3510_v8 = vadd.f32 %v6248_v62, %v3222_v1  ;;  %v4675_v9 = vld [vmem:[%s4768_s12 + $0x10] sm:$0xff]  }
 0x3ac   : > { %v3232_v2 = vpop.f32.mrf.mxu1  ;;  %v3543_v29 = vunpack.c.l.bf16 %v4675_v9 }
 0x3ad   : > { %3714 = vst.msk [vmem:[%s6514_s11 + $0x8] sm:$0xff] %vm484_vm1, %v3682_v55  ;;  %v3651_v34 = vadd.f32 %v3619_v59, %v3541_v47  ;;  %v3581_v41 = vmul.f32 %v6495_v35, %v3510_v8  ;;  %v3233_v3 = vadd.f32 %v3232_v2, %v6252_v6  ;;  %v3544_v8 = vunpack.c.h.bf16 %v4675_v9 }
 0x3ae   : > { %v4580_v53 = vpop.f32.mrf.mxu1 }
 0x3af   : > { %v3683_v43 = vmax.f32 %v3651_v34, 0.0  ;;  %v3620_v11 = vadd.f32 %v6501_v4, %v3581_v41  ;;  %v3511_v45 = vadd.f32 %v6264_v22, %v3233_v3 }
 0x3b0   : > { %v3235_v17 = vpop.f32.mrf.mxu1 }
 0x3b1   : > { %3715 = vst.msk [vmem:[%s6514_s11 + $0x10] sm:$0xff] %vm484_vm1, %v3683_v43  ;;  %v3652_v62 = vadd.f32 %v3620_v11, %v3542_v44  ;;  %v3582_v47 = vmul.f32 %v6495_v35, %v3511_v45  ;;  %v3236_v12 = vadd.f32 %v3235_v17, %v6260_v58  ;;  %v4676_v43 = vld [vmem:[%s4768_s12 + $0x18] sm:$0xff]  }
 0x3b2   : > { %v4583_v1 = vpop.f32.mrf.mxu1  ;;  %v3545_v11 = vunpack.c.l.bf16 %v4676_v43 }
 0x3b3   : > { %v3684_v6 = vmax.f32 %v3652_v62, 0.0  ;;  %v3621_v15 = vadd.f32 %v6501_v4, %v3582_v47  ;;  %v3512_v55 = vadd.f32 %v6268_v13, %v3236_v12  ;;  %v3546_v12 = vunpack.c.h.bf16 %v4676_v43 }
 0x3b4   : > { %v3246_v59 = vpop.f32.mrf.mxu1 }
 0x3b5   : > { %3716 = vst.msk [vmem:[%s6514_s11 + $0x18] sm:$0xff] %vm484_vm1, %v3684_v6  ;;  %v3653_v22 = vadd.f32 %v3621_v15, %v3543_v29  ;;  %v3583_v2 = vmul.f32 %v6495_v35, %v3512_v55  ;;  %v3247_v34 = vadd.f32 %v3246_v59, %v6272_v49 }
 0x3b6   : > { %v4584_v44 = vpop.f32.mrf.mxu1 }
 0x3b7   : > { %v3685_v58 = vmax.f32 %v3653_v22, 0.0  ;;  %v3622_v41 = vadd.f32 %v6501_v4, %v3583_v2  ;;  %v3513_v3 = vadd.f32 %v6284_v48, %v3247_v34 }
 0x3b8   : > { %v3249_v53 = vpop.f32.mrf.mxu1 }
 0x3b9   : > { %3717 = vst.msk [vmem:[%s6514_s11 + $0x20] sm:$0xff] %vm484_vm1, %v3685_v58  ;;  %v3654_v13 = vadd.f32 %v3622_v41, %v3544_v8  ;;  %v3584_v45 = vmul.f32 %v6495_v35, %v3513_v3  ;;  %v3250_v17 = vadd.f32 %v3249_v53, %v6280_v51  ;;  %v4677_v8 = vld [vmem:[%s4768_s12 + $0x20] sm:$0xff]  }
 0x3ba   : > { %v4587_v62 = vpop.f32.mrf.mxu1  ;;  %v3547_v2 = vunpack.c.l.bf16 %v4677_v8 }
 0x3bb   : > { %v3686_v49 = vmax.f32 %v3654_v13, 0.0  ;;  %v3623_v9 = vadd.f32 %v6501_v4, %v3584_v45  ;;  %v3514_v29 = vadd.f32 %v6288_v19, %v3250_v17  ;;  %v3548_v13 = vunpack.c.h.bf16 %v4677_v8 }
 0x3bc   : > { %v3260_v47 = vpop.f32.mrf.mxu1 }
 0x3bd   : > { %3718 = vst.msk [vmem:[%s6514_s11 + $0x28] sm:$0xff] %vm484_vm1, %v3686_v49  ;;  %v3655_v48 = vadd.f32 %v3623_v9, %v3545_v11  ;;  %v3585_v1 = vmul.f32 %v6495_v35, %v3514_v29  ;;  %v3261_v6 = vadd.f32 %v3260_v47, %v6292_v63  ;;  %v4678_v9 = vld [vmem:[%s4768_s12 + $0x28] sm:$0xff]  }
 0x3be   : > { %v4588_v15 = vpop.f32.mrf.mxu1  ;;  %v3549_v29 = vunpack.c.l.bf16 %v4678_v9 }
 0x3bf   : > { %v3687_v51 = vmax.f32 %v3655_v48, 0.0  ;;  %v3624_v55 = vadd.f32 %v6501_v4, %v3585_v1  ;;  %v3515_v59 = vadd.f32 %v6304_v60, %v3261_v6 }
 0x3c0   : > { %v3263_v22 = vpop.f32.mrf.mxu1 }
 0x3c1   : > { %3719 = vst.msk [vmem:[%s6514_s11 + $0x30] sm:$0xff] %vm484_vm1, %v3687_v51  ;;  %v3656_v19 = vadd.f32 %v3624_v55, %v3546_v12  ;;  %v3586_v34 = vmul.f32 %v6495_v35, %v3515_v59  ;;  %v3264_v44 = vadd.f32 %v3263_v22, %v6300_v61  ;;  %v3550_v51 = vunpack.c.h.bf16 %v4678_v9 }
 0x3c2   : > { %v4591_v58 = vpop.f32.mrf.mxu1 }
 0x3c3   : > { %v3688_v63 = vmax.f32 %v3656_v19, 0.0  ;;  %v3625_v41 = vadd.f32 %v6501_v4, %v3586_v34  ;;  %v3516_v3 = vadd.f32 %v6308_v30, %v3264_v44  ;;  %v4679_v34 = vld [vmem:[%s4768_s12 + $0x30] sm:$0xff]  }
 0x3c4   : > { %v3274_v53 = vpop.f32.mrf.mxu1  ;;  %v3551_v44 = vunpack.c.l.bf16 %v4679_v34 }
 0x3c5   : > { %3720 = vst.msk [vmem:[%s6514_s11 + $0x38] sm:$0xff] %vm484_vm1, %v3688_v63  ;;  %v3657_v60 = vadd.f32 %v3625_v41, %v3547_v2  ;;  %v3587_v43 = vmul.f32 %v6495_v35, %v3516_v3  ;;  %v3275_v11 = vadd.f32 %v3274_v53, %v6312_v36 }
 0x3c6   : > { %v4592_v45 = vpop.f32.mrf.mxu1 }
 0x3c7   : > { %v3689_v61 = vmax.f32 %v3657_v60, 0.0  ;;  %v3626_v17 = vadd.f32 %v6501_v4, %v3587_v43  ;;  %v3517_v62 = vadd.f32 %v6324_v26, %v3275_v11 }
 0x3c8   : > { %v3277_v49 = vpop.f32.mrf.mxu1 }
 0x3c9   : > { %3721 = vst.msk [vmem:[%s6514_s11 + $0x40] sm:$0xff] %vm484_vm1, %v3689_v61  ;;  %v3658_v30 = vadd.f32 %v3626_v17, %v3548_v13  ;;  %v3588_v47 = vmul.f32 %v6495_v35, %v3517_v62  ;;  %v3278_v48 = vadd.f32 %v3277_v49, %v6320_v33  ;;  %v3552_v13 = vunpack.c.h.bf16 %v4679_v34  ;;  %v4680_v49 = vld [vmem:[%s4768_s12 + $0x38] sm:$0xff]  }
 0x3ca   : > { %v4595_v12 = vpop.f32.mrf.mxu1 }
 0x3cb   : > { %v3690_v36 = vmax.f32 %v3658_v30, 0.0  ;;  %v3627_v1 = vadd.f32 %v6501_v4, %v3588_v47  ;;  %v3518_v6 = vadd.f32 %v6328_v32, %v3278_v48  ;;  %v3553_v30 = vunpack.c.l.bf16 %v4680_v49 }
 0x3cc   : > { %v3288_v15 = vpop.f32.mrf.mxu1 }
 0x3cd   : > { %3722 = vst.msk [vmem:[%s6514_s11 + $0x48] sm:$0xff] %vm484_vm1, %v3690_v36  ;;  %v3659_v26 = vadd.f32 %v3627_v1, %v3549_v29  ;;  %v3589_v55 = vmul.f32 %v6495_v35, %v3518_v6  ;;  %v3289_v59 = vadd.f32 %v3288_v15, %v6332_v52  ;;  %v3554_v1 = vunpack.c.h.bf16 %v4680_v49 }
 0x3ce   : > { %v4596_v22 = vpop.f32.mrf.mxu1 }
 0x3cf   : > { %v3691_v33 = vmax.f32 %v3659_v26, 0.0  ;;  %v3628_v19 = vadd.f32 %v6501_v4, %v3589_v55  ;;  %v3519_v8 = vadd.f32 %v6342_v37, %v3289_v59  ;;  %v4681_v22 = vld [vmem:[%s4768_s12 + $0x40] sm:$0xff]  }
 0x3d0   : > { %v3291_v2 = vpop.f32.mrf.mxu1 }
 0x3d1   : > { %3723 = vst.msk [vmem:[%s6514_s11 + $0x50] sm:$0xff] %vm484_vm1, %v3691_v33  ;;  %v3660_v32 = vadd.f32 %v3628_v19, %v3550_v51  ;;  %v3590_v58 = vmul.f32 %v6495_v35, %v3519_v8  ;;  %v3292_v63 = vadd.f32 %v3291_v2, %v6338_v18  ;;  %v3555_v33 = vunpack.c.l.bf16 %v4681_v22 }
 0x3d2   : > { %v4599_v41 = vpop.f32.mrf.mxu1 }
 0x3d3   : > { %v3692_v52 = vmax.f32 %v3660_v32, 0.0  ;;  %v3629_v3 = vadd.f32 %v6501_v4, %v3590_v58  ;;  %v3520_v53 = vadd.f32 %v6346_v24, %v3292_v63  ;;  %v3556_v58 = vunpack.c.h.bf16 %v4681_v22 }
 0x3d4   : > { %v3302_v60 = vpop.f32.mrf.mxu1 }
 0x3d5   : > { %3724 = vst.msk [vmem:[%s6514_s11 + $0x58] sm:$0xff] %vm484_vm1, %v3692_v52  ;;  %v3661_v37 = vadd.f32 %v3629_v3, %v3551_v44  ;;  %v3591_v43 = vmul.f32 %v6495_v35, %v3520_v53  ;;  %v3303_v11 = vadd.f32 %v3302_v60, %v6350_v20 }
 0x3d6   : > { %v4600_v45 = vpop.f32.mrf.mxu1 }
 0x3d7   : > { %v3693_v18 = vmax.f32 %v3661_v37, 0.0  ;;  %v3630_v61 = vadd.f32 %v6501_v4, %v3591_v43  ;;  %v3521_v17 = vadd.f32 %v6358_v40, %v3303_v11  ;;  %v4682_v37 = vld [vmem:[%s4768_s12 + $0x48] sm:$0xff]  }
 0x3d8   : > { %v3305_v62 = vpop.f32.mrf.mxu1 }
 0x3d9   : > { %3725 = vst.msk [vmem:[%s6514_s11 + $0x60] sm:$0xff] %vm484_vm1, %v3693_v18  ;;  %v3662_v24 = vadd.f32 %v3630_v61, %v3552_v13  ;;  %v3592_v9 = vmul.f32 %v6495_v35, %v3521_v17  ;;  %v3306_v29 = vadd.f32 %v3305_v62, %v6354_v23  ;;  %v3557_v13 = vunpack.c.l.bf16 %v4682_v37 }
 0x3da   : > { %v4603_v47 = vpop.f32.mrf.mxu1  ;;  %v3558_v62 = vunpack.c.h.bf16 %v4682_v37  ;;  %v6872_v37 = vld [vmem:[#allocation5_spill] sm:$0xff] }
 0x3db   : > { %v3694_v20 = vmax.f32 %v3662_v24, 0.0  ;;  %v3631_v48 = vadd.f32 %v6501_v4, %v3592_v9  ;;  %v3522_v12 = vadd.f32 %v6362_v14, %v3306_v29 }
 0x3dc   : > { %v3316_v36 = vpop.f32.mrf.mxu1 }
 0x3dd   : > { %3726 = vst.msk [vmem:[%s6514_s11 + $0x68] sm:$0xff] %vm484_vm1, %v3694_v20  ;;  %v3663_v40 = vadd.f32 %v3631_v48, %v3553_v30  ;;  %v3593_v6 = vmul.f32 %v6495_v35, %v3522_v12  ;;  %v3317_v15 = vadd.f32 %v3316_v36, %v6366_v56  ;;  %v4683_v20 = vld [vmem:[%s4768_s12 + $0x50] sm:$0xff]  }
 0x3de   : > { %v4604_v26 = vpop.f32.mrf.mxu1  ;;  %v3559_v48 = vunpack.c.l.bf16 %v4683_v20 }
 0x3df   : > { %v3695_v23 = vmax.f32 %v3663_v40, 0.0  ;;  %v3632_v51 = vadd.f32 %v6501_v4, %v3593_v6  ;;  %v3523_v55 = vadd.f32 %v6374_v16, %v3317_v15  ;;  %v6867_v6 = vld [vmem:[#allocation4_spill] sm:$0xff] }
 0x3e0   : > { %v3319_v59 = vpop.f32.mrf.mxu1 }
 0x3e1   : > { %3727 = vst.msk [vmem:[%s6514_s11 + $0x70] sm:$0xff] %vm484_vm1, %v3695_v23  ;;  %v3664_v14 = vadd.f32 %v3632_v51, %v3554_v1  ;;  %v3594_v19 = vmul.f32 %v6495_v35, %v3523_v55  ;;  %v3320_v8 = vadd.f32 %v3319_v59, %v6370_v31  ;;  %v3560_v23 = vunpack.c.h.bf16 %v4683_v20  ;;  %v6868_v55 = vld [vmem:[#allocation10_spill] sm:$0xff] }
 0x3e2   : > { %v4607_v2 = vpop.f32.mrf.mxu1 }
 0x3e3   : > { %v3696_v56 = vmax.f32 %v3664_v14, 0.0  ;;  %v3633_v32 = vadd.f32 %v6501_v4, %v3594_v19  ;;  %v3524_v34 = vadd.f32 %v6378_v5, %v3320_v8 }
 0x3e4   : > { %v3330_v44 = vpop.f32.mrf.mxu1 }
 0x3e5   : > { %3728 = vst.msk [vmem:[%s6514_s11 + $0x78] sm:$0xff] %vm484_vm1, %v3696_v56  ;;  %v3665_v16 = vadd.f32 %v3633_v32, %v3555_v33  ;;  %v3595_v63 = vmul.f32 %v6495_v35, %v3524_v34  ;;  %v3331_v41 = vadd.f32 %v3330_v44, %v6382_v38  ;;  %v6869_v33 = vld [vmem:[#allocation9_spill] sm:$0xff]  ;;  %v6870_v44 = vld [vmem:[#allocation7_spill] sm:$0xff] }
 0x3e6   : > { %v4608_v52 = vpop.f32.mrf.mxu1  ;;  %v4684_v56 = vld [vmem:[%s4768_s12 + $0x58] sm:$0xff]  }
 0x3e7   : > { %v3697_v31 = vmax.f32 %v3665_v16, 0.0  ;;  %v3634_v3 = vadd.f32 %v6501_v4, %v3595_v63  ;;  %v3525_v53 = vadd.f32 %v6390_v42, %v3331_v41  ;;  %v3561_v32 = vunpack.c.l.bf16 %v4684_v56  ;;  %v6871_v52 = vld [vmem:[#allocation8_spill] sm:$0xff] }
 0x3e8   : > { %v3333_v60 = vpop.f32.mrf.mxu1 }
 0x3e9   : > { %3729 = vst.msk [vmem:[%s6514_s11 + $0x80] sm:$0xff] %vm484_vm1, %v3697_v31  ;;  %v3666_v5 = vadd.f32 %v3634_v3, %v3556_v58  ;;  %v3596_v43 = vmul.f32 %v6495_v35, %v3525_v53  ;;  %v3334_v11 = vadd.f32 %v3333_v60, %v6386_v21  ;;  %v3562_v60 = vunpack.c.h.bf16 %v4684_v56 }
 0x3ea   : > { %v4611_v45 = vpop.f32.mrf.mxu1 }
 0x3eb   : > { %v3698_v38 = vmax.f32 %v3666_v5, 0.0  ;;  %v3635_v18 = vadd.f32 %v6501_v4, %v3596_v43  ;;  %v3526_v61 = vadd.f32 %v6394_v27, %v3334_v11 }
 0x3ec   : > { %v3344_v17 = vpop.f32.mrf.mxu1 }
 0x3ed   : > { %3730 = vst.msk [vmem:[%s6514_s11 + $0x88] sm:$0xff] %vm484_vm1, %v3698_v38  ;;  %v3667_v42 = vadd.f32 %v3635_v18, %v3557_v13  ;;  %v3597_v24 = vmul.f32 %v6495_v35, %v3526_v61  ;;  %v3345_v49 = vadd.f32 %v3344_v17, %v6398_v28  ;;  %v6873_v38 = vld [vmem:[#allocation16_spill] sm:$0xff] }
 0x3ee   : > { %v4612_v30 = vpop.f32.mrf.mxu1 }
 0x3ef   : > { %v3699_v21 = vmax.f32 %v3667_v42, 0.0  ;;  %v3636_v9 = vadd.f32 %v6501_v4, %v3597_v24  ;;  %v3527_v29 = vadd.f32 %v6406_v50, %v3345_v49  ;;  %v4685_v42 = vld [vmem:[%s4768_s12 + $0x60] sm:$0xff]  }
 0x3f0   : > { %v3347_v47 = vpop.f32.mrf.mxu1  ;;  %v6874_v49 = vld [vmem:[#allocation6_spill] sm:$0xff] }
 0x3f1   : > { %3731 = vst.msk [vmem:[%s6514_s11 + $0x90] sm:$0xff] %vm484_vm1, %v3699_v21  ;;  %v3668_v27 = vadd.f32 %v3636_v9, %v3558_v62  ;;  %v3598_v12 = vmul.f32 %v6495_v35, %v3527_v29  ;;  %v3348_v36 = vadd.f32 %v3347_v47, %v6402_v25  ;;  %v3563_v62 = vunpack.c.l.bf16 %v4685_v42  ;;  %v6875_v47 = vld [vmem:[#allocation13_spill] sm:$0xff] }
 0x3f2   : > { %v4615_v40 = vpop.f32.mrf.mxu1 }
 0x3f3   : > { %v3700_v28 = vmax.f32 %v3668_v27, 0.0  ;;  %v3637_v1 = vadd.f32 %v6501_v4, %v3598_v12  ;;  %v3528_v15 = vadd.f32 %v6867_v6, %v3348_v36  ;;  %v3564_v12 = vunpack.c.h.bf16 %v4685_v42  ;;  %v6876_v40 = vld [vmem:[#allocation15_spill] sm:$0xff] }
 0x3f4   : > { %v3358_v26 = vpop.f32.mrf.mxu1 }
 0x3f5   : > { %3732 = vst.msk [vmem:[%s6514_s11 + $0x98] sm:$0xff] %vm484_vm1, %v3700_v28  ;;  %v3669_v50 = vadd.f32 %v3637_v1, %v3559_v48  ;;  %v3599_v51 = vmul.f32 %v6495_v35, %v3528_v15  ;;  %v3359_v59 = vadd.f32 %v3358_v26, %v6868_v55  ;;  %v6877_v26 = vld [vmem:[#allocation11_spill] sm:$0xff] }
 0x3f6   : > { %v4616_v14 = vpop.f32.mrf.mxu1  ;;  %v4686_v55 = vld [vmem:[%s4768_s12 + $0x68] sm:$0xff]  }
 0x3f7   : > { %v3701_v25 = vmax.f32 %v3669_v50, 0.0  ;;  %v3638_v22 = vadd.f32 %v6501_v4, %v3599_v51  ;;  %v3529_v19 = vadd.f32 %v6869_v33, %v3359_v59  ;;  %v3565_v59 = vunpack.c.l.bf16 %v4686_v55 }
 0x3f8   : > { %v3361_v8 = vpop.f32.mrf.mxu1 }
 0x3f9   : > { %3733 = vst.msk [vmem:[%s6514_s11 + $0xa0] sm:$0xff] %vm484_vm1, %v3701_v25  ;;  %v3670_v2 = vadd.f32 %v3638_v22, %v3560_v23  ;;  %v3600_v34 = vmul.f32 %v6495_v35, %v3529_v19  ;;  %v3362_v16 = vadd.f32 %v3361_v8, %v6870_v44  ;;  %v6878_v25 = vld [vmem:[#allocation14_spill] sm:$0xff] }
 0x3fa   : > { %v4619_v58 = vpop.f32.mrf.mxu1 }
 0x3fb   : > { %v3702_v63 = vmax.f32 %v3670_v2, 0.0  ;;  %v3639_v41 = vadd.f32 %v6501_v4, %v3600_v34  ;;  %v3530_v31 = vadd.f32 %v6871_v52, %v3362_v16  ;;  %v3566_v34 = vunpack.c.h.bf16 %v4686_v55 }
 0x3fc   : > { %v3372_v3 = vpop.f32.mrf.mxu1 }
 0x3fd   : > { %3734 = vst.msk [vmem:[%s6514_s11 + $0xa8] sm:$0xff] %vm484_vm1, %v3702_v63  ;;  %v3671_v53 = vadd.f32 %v3639_v41, %v3561_v32  ;;  %v3601_v5 = vmul.f32 %v6495_v35, %v3530_v31  ;;  %v3373_v13 = vadd.f32 %v3372_v3, %v6872_v37  ;;  %v3071_v63 = vpop.f32.mrf.mxu0 }
 0x3fe   : > { %v4620_v43 = vpop.f32.mrf.mxu1 }
 0x3ff   : > { %v3703_v11 = vmax.f32 %v3671_v53, 0.0  ;;  %v3640_v45 = vadd.f32 %v6501_v4, %v3601_v5  ;;  %v3531_v18 = vadd.f32 %v6873_v38, %v3373_v13  ;;  %v4687_v53 = vld [vmem:[%s4768_s12 + $0x70] sm:$0xff]   ;;  %v3473_v13 = vrot.slane %v3071_v63, 1 }
 0x400   : > { %v3375_v61 = vpop.f32.mrf.mxu1 }
 0x401   : > { %3735 = vst.msk [vmem:[%s6514_s11 + $0xb0] sm:$0xff] %vm484_vm1, %v3703_v11  ;;  %v3672_v17 = vadd.f32 %v3640_v45, %v3562_v60  ;;  %v3602_v24 = vmul.f32 %v6495_v35, %v3531_v18  ;;  %v3376_v30 = vadd.f32 %v3375_v61, %v6874_v49  ;;  %v3567_v60 = vunpack.c.l.bf16 %v4687_v53 }
 0x402   : > { %v4623_v21 = vpop.f32.mrf.mxu1  ;;  %v3568_v61 = vunpack.c.h.bf16 %v4687_v53 }
 0x403   : > { %v3704_v9 = vmax.f32 %v3672_v17, 0.0  ;;  %v3641_v29 = vadd.f32 %v6501_v4, %v3602_v24  ;;  %v3532_v27 = vadd.f32 %v6875_v47, %v3376_v30  ;;  %v4688_v47 = vld [vmem:[%s4768_s12 + $0x78] sm:$0xff]  }
 0x404   : > { %v3386_v20 = vpop.f32.mrf.mxu1 }
 0x405   : > { %3736 = vst.msk [vmem:[%s6514_s11 + $0xb8] sm:$0xff] %vm484_vm1, %v3704_v9  ;;  %v3673_v48 = vadd.f32 %v3641_v29, %v3563_v62  ;;  %v3603_v36 = vmul.f32 %v6495_v35, %v3532_v27  ;;  %v3387_v28 = vadd.f32 %v3386_v20, %v6876_v40  ;;  %v3569_v27 = vunpack.c.l.bf16 %v4688_v47  ;;  %v6881_v20 = vld [vmem:[#allocation22_spill] sm:$0xff] }
 0x406   : > { %v4624_v1 = vpop.f32.mrf.mxu1 }
 0x407   : > { %v3705_v6 = vmax.f32 %v3673_v48, 0.0  ;;  %v3642_v15 = vadd.f32 %v6501_v4, %v3603_v36  ;;  %v3533_v50 = vadd.f32 %v6877_v26, %v3387_v28 }
 0x408   : > { %v3389_v23 = vpop.f32.mrf.mxu1 }
 0x409   : > { %3737 = vst.msk [vmem:[%s6514_s11 + $0xc0] sm:$0xff] %vm484_vm1, %v3705_v6  ;;  %v3674_v51 = vadd.f32 %v3642_v15, %v3564_v12  ;;  %v3604_v14 = vmul.f32 %v6495_v35, %v3533_v50  ;;  %v3390_v22 = vadd.f32 %v3389_v23, %v6878_v25  ;;  %v3570_v6 = vunpack.c.h.bf16 %v4688_v47 }
 0x40a   : > { %v4627_v33 = vpop.f32.mrf.mxu1 }
 0x40b   : > { %v3706_v19 = vmax.f32 %v3674_v51, 0.0  ;;  %v3643_v8 = vadd.f32 %v6501_v4, %v3604_v14  ;;  %v3534_v2 = vadd.f32 %v6458_v39, %v3390_v22 }
 0x40c   : > { %v3400_v56 = vpop.f32.mrf.mxu1 }
 0x40d   : > { %3738 = vst.msk [vmem:[%s6514_s11 + $0xc8] sm:$0xff] %vm484_vm1, %v3706_v19  ;;  %v3675_v32 = vadd.f32 %v3643_v8, %v3565_v59  ;;  %v3605_v44 = vmul.f32 %v6495_v35, %v3534_v2  ;;  %v3401_v16 = vadd.f32 %v3400_v56, %v6462_v46 }
 0x40e   : > { %v4628_v58 = vpop.f32.mrf.mxu1 }
 0x40f   : > { %v3707_v41 = vmax.f32 %v3675_v32, 0.0  ;;  %v3644_v52 = vadd.f32 %v6501_v4, %v3605_v44  ;;  %v3535_v31 = vadd.f32 %v6472_v54, %v3401_v16  ;;  %v3472_v54 = vrot.slane %v6478_v0, 1  ;;  %v6880_v0 = vld [vmem:[#allocation12_spill] sm:$0xff] }
 0x410   : > { %v3403_v3 = vpop.f32.mrf.mxu1  ;;  %v3474_v21 = vrot.slane %v6880_v0, 1 }
 0x411   : > { %3739 = vst.msk [vmem:[%s6514_s11 + $0xd0] sm:$0xff] %vm484_vm1, %v3707_v41  ;;  %v3676_v39 = vadd.f32 %v3644_v52, %v3566_v34  ;;  %v3606_v5 = vmul.f32 %v6495_v35, %v3535_v31  ;;  %v3404_v37 = vadd.f32 %v3403_v3, %v6468_v7  ;;  %v3476_v62 = vsel %vm1697_vm5, %v3472_v54, %v3473_v13 }
 0x412   : > { %v4631_v46 = vpop.f32.mrf.mxu1  ;;  %v3475_v12 = vsel %vm1697_vm5, %v3473_v13, %v3474_v21 }
 0x413   : > { %v3708_v43 = vmax.f32 %v3676_v39, 0.0  ;;  %v3645_v11 = vadd.f32 %v6501_v4, %v3606_v5  ;;  %v3536_v45 = vadd.f32 %v6476_v57, %v3404_v37 }
 0x414   : > { %v3414_v38 = vpop.f32.mrf.mxu1 }
 0x415   : > { %3740 = vst.msk [vmem:[%s6514_s11 + $0xd8] sm:$0xff] %vm484_vm1, %v3708_v43  ;;  %v3677_v18 = vadd.f32 %v3645_v11, %v3567_v60  ;;  %v3607_v17 = vmul.f32 %v6495_v35, %v3536_v45  ;;  %v3415_v7 = vadd.f32 %v3414_v38, %v6482_v10 }
 0x416   : > { %v4632_v24 = vpop.f32.mrf.mxu1 }
 0x417   : > { %v3709_v49 = vmax.f32 %v3677_v18, 0.0  ;;  %v3646_v57 = vadd.f32 %v6501_v4, %v3607_v17  ;;  %v3537_v30 = vadd.f32 %v3476_v62, %v3415_v7 }
 0x418   : > { %v3417_v9 = vpop.f32.mrf.mxu1 }
 0x419   : > { %3741 = vst.msk [vmem:[%s6514_s11 + $0xe0] sm:$0xff] %vm484_vm1, %v3709_v49  ;;  %v3678_v29 = vadd.f32 %v3646_v57, %v3568_v61  ;;  %v3608_v10 = vmul.f32 %v6495_v35, %v3537_v30  ;;  %v3418_v48 = vadd.f32 %v3417_v9, %v6881_v20 }
 0x41b   : > { %v3710_v36 = vmax.f32 %v3678_v29, 0.0  ;;  %v3647_v40 = vadd.f32 %v6501_v4, %v3608_v10  ;;  %v3538_v28 = vadd.f32 %v3475_v12, %v3418_v48 }
 0x41d   : > { %3742 = vst.msk [vmem:[%s6514_s11 + $0xe8] sm:$0xff] %vm484_vm1, %v3710_v36  ;;  %v3679_v1 = vadd.f32 %v3647_v40, %v3569_v27  ;;  %v3609_v15 = vmul.f32 %v6495_v35, %v3538_v28 }
 0x41f   : > { %v3711_v26 = vmax.f32 %v3679_v1, 0.0  ;;  %v3648_v50 = vadd.f32 %v6501_v4, %v3609_v15 }
 0x421   : > { %3743 = vst.msk [vmem:[%s6514_s11 + $0xf0] sm:$0xff] %vm484_vm1, %v3711_v26  ;;  %v3680_v23 = vadd.f32 %v3648_v50, %v3570_v6 }
 0x423   : > { %v3712_v51 = vmax.f32 %v3680_v23, 0.0 }
 0x425   : > { %3744 = vst.msk [vmem:[%s6514_s11 + $0xf8] sm:$0xff] %vm484_vm1, %v3712_v51 }
 0x426 PF: > { %s17_s24 = sadd.s32 1, %s4695_s24  }
 0x427   : > { %p14_p4 = scmp.ge.s32.totalorder %s17_s24, 4  }
 0x429   :  { %16 = sbr.rel (!%p14_p4) target bundleno = 1 (0x1), region = 82 }

</bundles_post_ra>
